<compile_context>
chip_gen: v7x
topology: tpu7x:2x2x1
jax: 0.10.0
libtpu: 0.0.40
codegen_flags: <defaults>
</compile_context>

<pallas_src>
import functools

import jax
import jax.numpy as jnp
from jax import lax
from jax.experimental import pallas as pl
from jax.experimental.pallas import tpu as pltpu


# Contract hidden (T, E_in) against a PyTorch-layout weight (E_out, E_in) on the
# in_features axis of BOTH operands -> (T, E_out).  No in-kernel transpose.
_NT_DIMS = (((1,), (1,)), ((), ()))


def _clip_attention_kernel(
    hs_ref,                      # (1, Tp, E)   compute dtype (bf16)
    wq_ref, bq_ref,              # (E, E) compute dtype, (1, E) f32
    wk_ref, bk_ref,
    wv_ref, bv_ref,
    wo_ref, bo_ref,
    attn_out_ref,                # (1, Tp, E) out dtype
    k_out_ref,                   # (1, Tp, E)
    v_out_ref,                   # (1, Tp, E)
    attn_scratch,                # VMEM (Tp, E) f32
    *,
    num_heads: int,
    head_dim: int,
    scale: float,
    seq_len: int,
):
    cdt = hs_ref.dtype
    hs = hs_ref[0]                                       # (Tp, E)
    t_pad = hs.shape[0]

    # Projections: low-precision MXU matmuls, f32 accumulation, f32 bias add.
    # PyTorch nn.Linear: y = x @ W.T + b with W stored (out, in).
    q = lax.dot_general(hs, wq_ref[...], _NT_DIMS, preferred_element_type=jnp.float32)
    q = (q + bq_ref[0]) * scale
    k = lax.dot_general(hs, wk_ref[...], _NT_DIMS, preferred_element_type=jnp.float32) + bk_ref[0]
    v = lax.dot_general(hs, wv_ref[...], _NT_DIMS, preferred_element_type=jnp.float32) + bv_ref[0]

    # Stash projected k/v (reshaped to per-head form outside the kernel).
    k_out_ref[0, :, :] = k.astype(k_out_ref.dtype)
    v_out_ref[0, :, :] = v.astype(v_out_ref.dtype)

    qc = q.astype(cdt)
    kc = k.astype(cdt)
    vc = v.astype(cdt)

    # Additive key-padding mask (padded query rows are stripped in the wrapper).
    if seq_len < t_pad:
        col = lax.broadcasted_iota(jnp.int32, (1, t_pad), 1)
        key_mask = jnp.where(col < seq_len, 0.0, -1e30).astype(jnp.float32)
    else:
        key_mask = None

    # Per-head attention; each head's output is written directly into the VMEM
    # scratch accumulator (no concatenate, no simultaneous per-head live temps).
    # TODO(synk): for many heads on v6e/v7x, batch heads through one dot_general
    #             with a head batch dim instead of this unrolled loop.
    for h in range(num_heads):
        lo = h * head_dim
        hi = lo + head_dim
        qh = qc[:, lo:hi]                                # (Tp, Dh)
        kh = kc[:, lo:hi]
        vh = vc[:, lo:hi]

        # q @ k^T via contraction on both last dims — no explicit transpose.
        scores = lax.dot_general(qh, kh, (((1,), (1,)), ((), ())),
                                 preferred_element_type=jnp.float32)   # (Tp, Tp)
        if key_mask is not None:
            scores = scores + key_mask
        scores = scores - jnp.max(scores, axis=-1, keepdims=True)
        probs = jnp.exp(scores)
        inv = pl.reciprocal(jnp.sum(probs, axis=-1, keepdims=True), approx=True)
        probs = probs * inv
        # dropout: training=False -> identity
        attn_scratch[:, lo:hi] = jnp.dot(probs.astype(cdt), vh,
                                         preferred_element_type=jnp.float32)

    attn = attn_scratch[...].astype(cdt)                               # (Tp, E)
    out = lax.dot_general(attn, wo_ref[...], _NT_DIMS,
                          preferred_element_type=jnp.float32) + bo_ref[0]
    attn_out_ref[0, :, :] = out.astype(attn_out_ref.dtype)


def clip_attention_forward(hidden_states, params, *, num_heads,
                           compute_dtype=jnp.bfloat16):
    """Pallas implementation of CLIPAttention.forward(hidden_states).

    Returns (attn_output, attn_weights_reshaped, key_states, value_states)
    with output_attentions=False -> attn_weights_reshaped is None.
    key_states / value_states have shape (bsz*num_heads, src_len, head_dim).
    """
    bsz, tgt_len, embed_dim = hidden_states.shape
    head_dim = embed_dim // num_heads
    assert head_dim * num_heads == embed_dim
    scale = float(head_dim) ** -0.5

    wq, bq = params["q_proj"]
    wk, bk = params["k_proj"]
    wv, bv = params["v_proj"]
    wo, bo = params["out_proj"]

    out_dtype = hidden_states.dtype

    # Pad sequence length to a lane-friendly multiple of 128; padded key columns
    # are masked inside the kernel, padded query rows are stripped below.
    t_pad = ((tgt_len + 127) // 128) * 128
    hs = hidden_states
    if t_pad != tgt_len:
        hs = jnp.pad(hs, ((0, 0), (0, t_pad - tgt_len), (0, 0)))
    hs = hs.astype(compute_dtype)

    # Cast weights once in the wrapper (halves per-step DMA + resident VMEM vs
    # f32); biases stay f32 and are added after the f32-accumulated matmuls.
    wq_c, wk_c, wv_c, wo_c = (w.astype(compute_dtype) for w in (wq, wk, wv, wo))
    bq2, bk2, bv2, bo2 = (b.reshape(1, embed_dim).astype(jnp.float32)
                          for b in (bq, bk, bv, bo))

    kernel = functools.partial(
        _clip_attention_kernel,
        num_heads=num_heads, head_dim=head_dim, scale=scale, seq_len=tgt_len,
    )

    seq_spec = pl.BlockSpec((1, t_pad, embed_dim), lambda b: (b, 0, 0))
    w_spec = pl.BlockSpec((embed_dim, embed_dim), lambda b: (0, 0))
    b_spec = pl.BlockSpec((1, embed_dim), lambda b: (0, 0))

    c_sz = jnp.dtype(compute_dtype).itemsize
    o_sz = jnp.dtype(out_dtype).itemsize

    # Explicit VMEM budget (double-buffered blocks + scratch), capped for v7x.
    block_bytes = (
        2 * t_pad * embed_dim * c_sz                  # hidden_states block
        + 4 * 2 * embed_dim * embed_dim * c_sz        # four weight blocks
        + 4 * 2 * embed_dim * 4                       # four bias blocks (f32)
        + 3 * 2 * t_pad * embed_dim * o_sz            # three output blocks
        + t_pad * embed_dim * 4                       # attention scratch (f32)
    )
    vmem_limit = int(min(64 * 1024 * 1024, max(32 * 1024 * 1024, 2 * block_bytes)))

    flops = bsz * (8 * t_pad * embed_dim * embed_dim        # 4 projections
                   + 4 * t_pad * t_pad * embed_dim)         # scores + probs@v
    transcendentals = bsz * num_heads * t_pad * t_pad       # exp
    bytes_accessed = (
        bsz * t_pad * embed_dim * c_sz                      # hidden_states
        + 4 * embed_dim * embed_dim * c_sz                  # weights
        + 4 * embed_dim * 4                                 # biases
        + 3 * bsz * t_pad * embed_dim * o_sz                # outputs
    )

    attn_out_p, k_proj_p, v_proj_p = pl.pallas_call(
        kernel,
        grid=(bsz,),
        in_specs=[
            seq_spec,                # hidden_states
            w_spec, b_spec,          # q_proj
            w_spec, b_spec,          # k_proj
            w_spec, b_spec,          # v_proj
            w_spec, b_spec,          # out_proj
        ],
        out_specs=(seq_spec, seq_spec, seq_spec),
        out_shape=(
            jax.ShapeDtypeStruct((bsz, t_pad, embed_dim), out_dtype),
            jax.ShapeDtypeStruct((bsz, t_pad, embed_dim), out_dtype),
            jax.ShapeDtypeStruct((bsz, t_pad, embed_dim), out_dtype),
        ),
        scratch_shapes=[pltpu.VMEM((t_pad, embed_dim), jnp.float32)],
        compiler_params=pltpu.CompilerParams(
            # TODO(synk): v7x megacore — add a second parallel grid axis over
            # query tiles when bsz == 1 so both TensorCores get work.
            dimension_semantics=("parallel",),
            vmem_limit_bytes=vmem_limit,
        ),
        cost_estimate=pl.CostEstimate(
            flops=int(flops),
            transcendentals=int(transcendentals),
            bytes_accessed=int(bytes_accessed),
        ),
    )(hs, wq_c, bq2, wk_c, bk2, wv_c, bv2, wo_c, bo2)

    attn_out = attn_out_p[:, :tgt_len, :]
    k_proj = k_proj_p[:, :tgt_len, :]
    v_proj = v_proj_p[:, :tgt_len, :]

    def _shape_kv(x):
        # (B, T, E) -> (B, H, T, Dh) -> (B*H, T, Dh)   (matches _shape + view)
        return (
            x.reshape(bsz, tgt_len, num_heads, head_dim)
            .transpose(0, 2, 1, 3)
            .reshape(bsz * num_heads, tgt_len, head_dim)
        )

    key_states = _shape_kv(k_proj)
    value_states = _shape_kv(v_proj)

    attn_weights_reshaped = None  # output_attentions=False
    return attn_out, attn_weights_reshaped, key_states, value_states


def _reference_forward(hidden_states, params, *, num_heads):
    """Plain-JAX f32 reference mirroring the PyTorch forward (eval mode)."""
    bsz, tgt_len, embed_dim = hidden_states.shape
    head_dim = embed_dim // num_heads
    scale = float(head_dim) ** -0.5

    def linear(x, w, b):
        return jnp.einsum("bte,oe->bto", x, w) + b

    wq, bq = params["q_proj"]
    wk, bk = params["k_proj"]
    wv, bv = params["v_proj"]
    wo, bo = params["out_proj"]

    q = linear(hidden_states, wq, bq) * scale
    k = linear(hidden_states, wk, bk)
    v = linear(hidden_states, wv, bv)

    def shp(x):
        return x.reshape(bsz, tgt_len, num_heads, head_dim).transpose(0, 2, 1, 3)

    q, k, v = shp(q), shp(k), shp(v)
    scores = jnp.einsum("bhqd,bhkd->bhqk", q, k)
    probs = jax.nn.softmax(scores, axis=-1)
    out = jnp.einsum("bhqk,bhkd->bhqd", probs, v)
    out = out.transpose(0, 2, 1, 3).reshape(bsz, tgt_len, embed_dim)
    out = linear(out, wo, bo)
    k_flat = k.reshape(bsz * num_heads, tgt_len, head_dim)
    v_flat = v.reshape(bsz * num_heads, tgt_len, head_dim)
    return out, k_flat, v_flat


if __name__ == "__main__":
    # Config: hidden_size=32, num_attention_heads=4, attention_dropout=0.0
    bsz, tgt_len, embed_dim, num_heads = 2, 8, 32, 4

    key = jax.random.PRNGKey(0)
    keys = jax.random.split(key, 10)

    def init_linear(kw, kb, fan_in):
        # Deterministic stand-in for nn.Linear init (uniform(-1/sqrt(fan_in), ..)).
        bound = 1.0 / (fan_in ** 0.5)
        w = jax.random.uniform(kw, (embed_dim, embed_dim), jnp.float32, -bound, bound)
        b = jax.random.uniform(kb, (embed_dim,), jnp.float32, -bound, bound)
        return w, b

    params = {
        "q_proj": init_linear(keys[0], keys[1], embed_dim),
        "k_proj": init_linear(keys[2], keys[3], embed_dim),
        "v_proj": init_linear(keys[4], keys[5], embed_dim),
        "out_proj": init_linear(keys[6], keys[7], embed_dim),
        "textual_kv_weight": jnp.float32(1.0),  # unused: textual_kv=None path
    }

    hidden_states = jax.random.normal(keys[8], (bsz, tgt_len, embed_dim), jnp.float32)

    attn_out, attn_w, k_states, v_states = clip_attention_forward(
        hidden_states, params, num_heads=num_heads, compute_dtype=jnp.bfloat16
    )
    attn_out = jax.block_until_ready(attn_out)
    k_states = jax.block_until_ready(k_states)
    v_states = jax.block_until_ready(v_states)

    # Sanity check against plain-JAX f32 reference (kernel matmuls run in bf16
    # with f32 accumulation, hence relaxed tolerances).
    ref_out, ref_k, ref_v = _reference_forward(hidden_states, params, num_heads=num_heads)
    assert attn_out.shape == (bsz, tgt_len, embed_dim)
    assert k_states.shape == (bsz * num_heads, tgt_len, embed_dim // num_heads)
    assert v_states.shape == (bsz * num_heads, tgt_len, embed_dim // num_heads)
    assert attn_w is None
    assert jnp.allclose(attn_out, ref_out, atol=3e-2, rtol=3e-2)
    assert jnp.allclose(k_states, ref_k, atol=3e-2, rtol=3e-2)
    assert jnp.allclose(v_states, ref_v, atol=3e-2, rtol=3e-2)

    print("KERNEL_OK")
</pallas_src>

<mosaic_0001>
module attributes {stable_mosaic.version = 11 : i64} {
  func.func @_clip_attention_kernel(%arg0: i32, %arg1: memref<1x128x32xbf16, #tpu.memory_space<vmem>>, %arg2: memref<32x32xbf16, #tpu.memory_space<vmem>>, %arg3: memref<1x32xf32, #tpu.memory_space<vmem>>, %arg4: memref<32x32xbf16, #tpu.memory_space<vmem>>, %arg5: memref<1x32xf32, #tpu.memory_space<vmem>>, %arg6: memref<32x32xbf16, #tpu.memory_space<vmem>>, %arg7: memref<1x32xf32, #tpu.memory_space<vmem>>, %arg8: memref<32x32xbf16, #tpu.memory_space<vmem>>, %arg9: memref<1x32xf32, #tpu.memory_space<vmem>>, %arg10: memref<1x128x32xf32, #tpu.memory_space<vmem>>, %arg11: memref<1x128x32xf32, #tpu.memory_space<vmem>>, %arg12: memref<1x128x32xf32, #tpu.memory_space<vmem>>, %arg13: memref<128x32xf32, #tpu.memory_space<vmem>>) attributes {dimension_semantics = [#tpu.dimension_semantics<parallel>], iteration_bounds = array<i64: 2>, scalar_prefetch = 0 : i64, scratch_operands = 1 : i64, tpu.core_type = #tpu.core_type<tc>, window_params = [{transform_indices = @transform_0, window_bounds = array<i64: 1, 128, 32>}, {pipeline_mode = #tpu.pipeline_mode<synchronous>, transform_indices = @transform_1, window_bounds = array<i64: 32, 32>}, {pipeline_mode = #tpu.pipeline_mode<synchronous>, transform_indices = @transform_2, window_bounds = array<i64: 1, 32>}, {pipeline_mode = #tpu.pipeline_mode<synchronous>, transform_indices = @transform_3, window_bounds = array<i64: 32, 32>}, {pipeline_mode = #tpu.pipeline_mode<synchronous>, transform_indices = @transform_4, window_bounds = array<i64: 1, 32>}, {pipeline_mode = #tpu.pipeline_mode<synchronous>, transform_indices = @transform_5, window_bounds = array<i64: 32, 32>}, {pipeline_mode = #tpu.pipeline_mode<synchronous>, transform_indices = @transform_6, window_bounds = array<i64: 1, 32>}, {pipeline_mode = #tpu.pipeline_mode<synchronous>, transform_indices = @transform_7, window_bounds = array<i64: 32, 32>}, {pipeline_mode = #tpu.pipeline_mode<synchronous>, transform_indices = @transform_8, window_bounds = array<i64: 1, 32>}, {transform_indices = @transform_9, window_bounds = array<i64: 1, 128, 32>}, {transform_indices = @transform_10, window_bounds = array<i64: 1, 128, 32>}, {transform_indices = @transform_11, window_bounds = array<i64: 1, 128, 32>}]} {
    %c0 = arith.constant 0 : index
    %c0_0 = arith.constant 0 : index
    %c0_1 = arith.constant 0 : index
    %0 = vector.load %arg1[%c0, %c0_0, %c0_1] : memref<1x128x32xbf16, #tpu.memory_space<vmem>>, vector<1x128x32xbf16>
    %1 = vector.shape_cast %0 : vector<1x128x32xbf16> to vector<128x32xbf16>
    %c0_2 = arith.constant 0 : index
    %c0_3 = arith.constant 0 : index
    %2 = vector.load %arg2[%c0_2, %c0_3] : memref<32x32xbf16, #tpu.memory_space<vmem>>, vector<32x32xbf16>
    %cst = arith.constant dense<0.000000e+00> : vector<128x32xf32>
    %3 = tpu.matmul %1, %2, %cst {dimension_numbers = #tpu.dot_dimension_numbers<[1], [1], [0], [0], [0, 0, 1, 0], [], []>} : vector<128x32xbf16>, vector<32x32xbf16>, vector<128x32xf32> -> vector<128x32xf32>
    %c0_4 = arith.constant 0 : index
    %c0_5 = arith.constant 0 : index
    %4 = vector.load %arg3[%c0_4, %c0_5] : memref<1x32xf32, #tpu.memory_space<vmem>>, vector<1x32xf32>
    %5 = vector.shape_cast %4 : vector<1x32xf32> to vector<32xf32>
    %6 = vector.shape_cast %5 : vector<32xf32> to vector<1x32xf32>
    %7 = vector.broadcast %6 : vector<1x32xf32> to vector<128x32xf32>
    %8 = arith.addf %3, %7 : vector<128x32xf32>
    %cst_6 = arith.constant 0.353553385 : f32
    %9 = vector.broadcast %cst_6 : f32 to vector<128x32xf32>
    %10 = arith.mulf %8, %9 : vector<128x32xf32>
    %c0_7 = arith.constant 0 : index
    %c0_8 = arith.constant 0 : index
    %11 = vector.load %arg4[%c0_7, %c0_8] : memref<32x32xbf16, #tpu.memory_space<vmem>>, vector<32x32xbf16>
    %cst_9 = arith.constant dense<0.000000e+00> : vector<128x32xf32>
    %12 = tpu.matmul %1, %11, %cst_9 {dimension_numbers = #tpu.dot_dimension_numbers<[1], [1], [0], [0], [0, 0, 1, 0], [], []>} : vector<128x32xbf16>, vector<32x32xbf16>, vector<128x32xf32> -> vector<128x32xf32>
    %c0_10 = arith.constant 0 : index
    %c0_11 = arith.constant 0 : index
    %13 = vector.load %arg5[%c0_10, %c0_11] : memref<1x32xf32, #tpu.memory_space<vmem>>, vector<1x32xf32>
    %14 = vector.shape_cast %13 : vector<1x32xf32> to vector<32xf32>
    %15 = vector.shape_cast %14 : vector<32xf32> to vector<1x32xf32>
    %16 = vector.broadcast %15 : vector<1x32xf32> to vector<128x32xf32>
    %17 = arith.addf %12, %16 : vector<128x32xf32>
    %c0_12 = arith.constant 0 : index
    %c0_13 = arith.constant 0 : index
    %18 = vector.load %arg6[%c0_12, %c0_13] : memref<32x32xbf16, #tpu.memory_space<vmem>>, vector<32x32xbf16>
    %cst_14 = arith.constant dense<0.000000e+00> : vector<128x32xf32>
    %19 = tpu.matmul %1, %18, %cst_14 {dimension_numbers = #tpu.dot_dimension_numbers<[1], [1], [0], [0], [0, 0, 1, 0], [], []>} : vector<128x32xbf16>, vector<32x32xbf16>, vector<128x32xf32> -> vector<128x32xf32>
    %c0_15 = arith.constant 0 : index
    %c0_16 = arith.constant 0 : index
    %20 = vector.load %arg7[%c0_15, %c0_16] : memref<1x32xf32, #tpu.memory_space<vmem>>, vector<1x32xf32>
    %21 = vector.shape_cast %20 : vector<1x32xf32> to vector<32xf32>
    %22 = vector.shape_cast %21 : vector<32xf32> to vector<1x32xf32>
    %23 = vector.broadcast %22 : vector<1x32xf32> to vector<128x32xf32>
    %24 = arith.addf %19, %23 : vector<128x32xf32>
    %c0_17 = arith.constant 0 : index
    %c0_18 = arith.constant 0 : index
    %c0_19 = arith.constant 0 : index
    %25 = vector.load %arg11[%c0_17, %c0_18, %c0_19] : memref<1x128x32xf32, #tpu.memory_space<vmem>>, vector<1x128x32xf32>
    %26 = vector.shape_cast %25 : vector<1x128x32xf32> to vector<128x32xf32>
    %27 = vector.shape_cast %17 : vector<128x32xf32> to vector<1x128x32xf32>
    tpu.vector_store %arg11[%c0_17, %c0_18, %c0_19], %27 {strides = array<i32>} : memref<1x128x32xf32, #tpu.memory_space<vmem>>, vector<1x128x32xf32>,
    %c0_20 = arith.constant 0 : index
    %c0_21 = arith.constant 0 : index
    %c0_22 = arith.constant 0 : index
    %28 = vector.load %arg12[%c0_20, %c0_21, %c0_22] : memref<1x128x32xf32, #tpu.memory_space<vmem>>, vector<1x128x32xf32>
    %29 = vector.shape_cast %28 : vector<1x128x32xf32> to vector<128x32xf32>
    %30 = vector.shape_cast %24 : vector<128x32xf32> to vector<1x128x32xf32>
    tpu.vector_store %arg12[%c0_20, %c0_21, %c0_22], %30 {strides = array<i32>} : memref<1x128x32xf32, #tpu.memory_space<vmem>>, vector<1x128x32xf32>,
    %31 = arith.truncf %10 : vector<128x32xf32> to vector<128x32xbf16>
    %32 = arith.truncf %17 : vector<128x32xf32> to vector<128x32xbf16>
    %33 = arith.truncf %24 : vector<128x32xf32> to vector<128x32xbf16>
    %34 = tpu.iota {dimensions = array<i32: 1>} : vector<1x128xi32>
    %c8_i32 = arith.constant 8 : i32
    %35 = vector.broadcast %c8_i32 : i32 to vector<1x128xi32>
    %36 = arith.cmpi slt, %34, %35 : vector<1x128xi32>
    %cst_23 = arith.constant 0.000000e+00 : f32
    %cst_24 = arith.constant -1.000000e+30 : f32
    %37 = vector.broadcast %cst_23 : f32 to vector<1x128xf32>
    %38 = vector.broadcast %cst_24 : f32 to vector<1x128xf32>
    %39 = arith.select %36, %37, %38 : vector<1x128xi1>, vector<1x128xf32>
    %40 = vector.extract_strided_slice %31 {offsets = [0, 0], sizes = [128, 8], strides = [1, 1]} : vector<128x32xbf16> to vector<128x8xbf16>
    %41 = vector.extract_strided_slice %32 {offsets = [0, 0], sizes = [128, 8], strides = [1, 1]} : vector<128x32xbf16> to vector<128x8xbf16>
    %42 = vector.extract_strided_slice %33 {offsets = [0, 0], sizes = [128, 8], strides = [1, 1]} : vector<128x32xbf16> to vector<128x8xbf16>
    %cst_25 = arith.constant dense<0.000000e+00> : vector<128x128xf32>
    %43 = tpu.matmul %40, %41, %cst_25 {dimension_numbers = #tpu.dot_dimension_numbers<[1], [1], [0], [0], [0, 0, 1, 0], [], []>} : vector<128x8xbf16>, vector<128x8xbf16>, vector<128x128xf32> -> vector<128x128xf32>
    %44 = vector.broadcast %39 : vector<1x128xf32> to vector<128x128xf32>
    %45 = arith.addf %43, %44 : vector<128x128xf32>
    %cst_26 = arith.constant dense<0xFF800000> : vector<128xf32>
    %46 = vector.multi_reduction <maximumf>, %45, %cst_26 [1] : vector<128x128xf32> to vector<128xf32>
    %47 = vector.shape_cast %46 : vector<128xf32> to vector<128x1xf32>
    %48 = vector.broadcast %47 : vector<128x1xf32> to vector<128x128xf32>
    %49 = arith.subf %45, %48 : vector<128x128xf32>
    %50 = math.exp %49 : vector<128x128xf32>
    %cst_27 = arith.constant dense<0.000000e+00> : vector<128xf32>
    %51 = vector.multi_reduction <add>, %50, %cst_27 [1] : vector<128x128xf32> to vector<128xf32>
    %52 = vector.shape_cast %51 : vector<128xf32> to vector<128x1xf32>
    %53 = tpu.reciprocal %52 {approx = true} : vector<128x1xf32> -> vector<128x1xf32>
    %54 = vector.broadcast %53 : vector<128x1xf32> to vector<128x128xf32>
    %55 = arith.mulf %50, %54 : vector<128x128xf32>
    %56 = arith.truncf %55 : vector<128x128xf32> to vector<128x128xbf16>
    %cst_28 = arith.constant dense<0.000000e+00> : vector<128x8xf32>
    %57 = tpu.matmul %56, %42, %cst_28 {dimension_numbers = #tpu.dot_dimension_numbers<[1], [0], [0], [1], [0, 0, 1, 1], [], []>} : vector<128x128xbf16>, vector<128x8xbf16>, vector<128x8xf32> -> vector<128x8xf32>
    %c0_29 = arith.constant 0 : index
    %c0_30 = arith.constant 0 : index
    %58 = vector.load %arg13[%c0_29, %c0_30] : memref<128x32xf32, #tpu.memory_space<vmem>>, vector<128x8xf32>
    tpu.vector_store %arg13[%c0_29, %c0_30], %57 {strides = array<i32>} : memref<128x32xf32, #tpu.memory_space<vmem>>, vector<128x8xf32>,
    %59 = vector.extract_strided_slice %31 {offsets = [0, 8], sizes = [128, 8], strides = [1, 1]} : vector<128x32xbf16> to vector<128x8xbf16>
    %60 = vector.extract_strided_slice %32 {offsets = [0, 8], sizes = [128, 8], strides = [1, 1]} : vector<128x32xbf16> to vector<128x8xbf16>
    %61 = vector.extract_strided_slice %33 {offsets = [0, 8], sizes = [128, 8], strides = [1, 1]} : vector<128x32xbf16> to vector<128x8xbf16>
    %cst_31 = arith.constant dense<0.000000e+00> : vector<128x128xf32>
    %62 = tpu.matmul %59, %60, %cst_31 {dimension_numbers = #tpu.dot_dimension_numbers<[1], [1], [0], [0], [0, 0, 1, 0], [], []>} : vector<128x8xbf16>, vector<128x8xbf16>, vector<128x128xf32> -> vector<128x128xf32>
    %63 = vector.broadcast %39 : vector<1x128xf32> to vector<128x128xf32>
    %64 = arith.addf %62, %63 : vector<128x128xf32>
    %cst_32 = arith.constant dense<0xFF800000> : vector<128xf32>
    %65 = vector.multi_reduction <maximumf>, %64, %cst_32 [1] : vector<128x128xf32> to vector<128xf32>
    %66 = vector.shape_cast %65 : vector<128xf32> to vector<128x1xf32>
    %67 = vector.broadcast %66 : vector<128x1xf32> to vector<128x128xf32>
    %68 = arith.subf %64, %67 : vector<128x128xf32>
    %69 = math.exp %68 : vector<128x128xf32>
    %cst_33 = arith.constant dense<0.000000e+00> : vector<128xf32>
    %70 = vector.multi_reduction <add>, %69, %cst_33 [1] : vector<128x128xf32> to vector<128xf32>
    %71 = vector.shape_cast %70 : vector<128xf32> to vector<128x1xf32>
    %72 = tpu.reciprocal %71 {approx = true} : vector<128x1xf32> -> vector<128x1xf32>
    %73 = vector.broadcast %72 : vector<128x1xf32> to vector<128x128xf32>
    %74 = arith.mulf %69, %73 : vector<128x128xf32>
    %75 = arith.truncf %74 : vector<128x128xf32> to vector<128x128xbf16>
    %cst_34 = arith.constant dense<0.000000e+00> : vector<128x8xf32>
    %76 = tpu.matmul %75, %61, %cst_34 {dimension_numbers = #tpu.dot_dimension_numbers<[1], [0], [0], [1], [0, 0, 1, 1], [], []>} : vector<128x128xbf16>, vector<128x8xbf16>, vector<128x8xf32> -> vector<128x8xf32>
    %c0_35 = arith.constant 0 : index
    %c8 = arith.constant 8 : index
    %77 = vector.load %arg13[%c0_35, %c8] : memref<128x32xf32, #tpu.memory_space<vmem>>, vector<128x8xf32>
    tpu.vector_store %arg13[%c0_35, %c8], %76 {strides = array<i32>} : memref<128x32xf32, #tpu.memory_space<vmem>>, vector<128x8xf32>,
    %78 = vector.extract_strided_slice %31 {offsets = [0, 16], sizes = [128, 8], strides = [1, 1]} : vector<128x32xbf16> to vector<128x8xbf16>
    %79 = vector.extract_strided_slice %32 {offsets = [0, 16], sizes = [128, 8], strides = [1, 1]} : vector<128x32xbf16> to vector<128x8xbf16>
    %80 = vector.extract_strided_slice %33 {offsets = [0, 16], sizes = [128, 8], strides = [1, 1]} : vector<128x32xbf16> to vector<128x8xbf16>
    %cst_36 = arith.constant dense<0.000000e+00> : vector<128x128xf32>
    %81 = tpu.matmul %78, %79, %cst_36 {dimension_numbers = #tpu.dot_dimension_numbers<[1], [1], [0], [0], [0, 0, 1, 0], [], []>} : vector<128x8xbf16>, vector<128x8xbf16>, vector<128x128xf32> -> vector<128x128xf32>
    %82 = vector.broadcast %39 : vector<1x128xf32> to vector<128x128xf32>
    %83 = arith.addf %81, %82 : vector<128x128xf32>
    %cst_37 = arith.constant dense<0xFF800000> : vector<128xf32>
    %84 = vector.multi_reduction <maximumf>, %83, %cst_37 [1] : vector<128x128xf32> to vector<128xf32>
    %85 = vector.shape_cast %84 : vector<128xf32> to vector<128x1xf32>
    %86 = vector.broadcast %85 : vector<128x1xf32> to vector<128x128xf32>
    %87 = arith.subf %83, %86 : vector<128x128xf32>
    %88 = math.exp %87 : vector<128x128xf32>
    %cst_38 = arith.constant dense<0.000000e+00> : vector<128xf32>
    %89 = vector.multi_reduction <add>, %88, %cst_38 [1] : vector<128x128xf32> to vector<128xf32>
    %90 = vector.shape_cast %89 : vector<128xf32> to vector<128x1xf32>
    %91 = tpu.reciprocal %90 {approx = true} : vector<128x1xf32> -> vector<128x1xf32>
    %92 = vector.broadcast %91 : vector<128x1xf32> to vector<128x128xf32>
    %93 = arith.mulf %88, %92 : vector<128x128xf32>
    %94 = arith.truncf %93 : vector<128x128xf32> to vector<128x128xbf16>
    %cst_39 = arith.constant dense<0.000000e+00> : vector<128x8xf32>
    %95 = tpu.matmul %94, %80, %cst_39 {dimension_numbers = #tpu.dot_dimension_numbers<[1], [0], [0], [1], [0, 0, 1, 1], [], []>} : vector<128x128xbf16>, vector<128x8xbf16>, vector<128x8xf32> -> vector<128x8xf32>
    %c0_40 = arith.constant 0 : index
    %c16 = arith.constant 16 : index
    %96 = vector.load %arg13[%c0_40, %c16] : memref<128x32xf32, #tpu.memory_space<vmem>>, vector<128x8xf32>
    tpu.vector_store %arg13[%c0_40, %c16], %95 {strides = array<i32>} : memref<128x32xf32, #tpu.memory_space<vmem>>, vector<128x8xf32>,
    %97 = vector.extract_strided_slice %31 {offsets = [0, 24], sizes = [128, 8], strides = [1, 1]} : vector<128x32xbf16> to vector<128x8xbf16>
    %98 = vector.extract_strided_slice %32 {offsets = [0, 24], sizes = [128, 8], strides = [1, 1]} : vector<128x32xbf16> to vector<128x8xbf16>
    %99 = vector.extract_strided_slice %33 {offsets = [0, 24], sizes = [128, 8], strides = [1, 1]} : vector<128x32xbf16> to vector<128x8xbf16>
    %cst_41 = arith.constant dense<0.000000e+00> : vector<128x128xf32>
    %100 = tpu.matmul %97, %98, %cst_41 {dimension_numbers = #tpu.dot_dimension_numbers<[1], [1], [0], [0], [0, 0, 1, 0], [], []>} : vector<128x8xbf16>, vector<128x8xbf16>, vector<128x128xf32> -> vector<128x128xf32>
    %101 = vector.broadcast %39 : vector<1x128xf32> to vector<128x128xf32>
    %102 = arith.addf %100, %101 : vector<128x128xf32>
    %cst_42 = arith.constant dense<0xFF800000> : vector<128xf32>
    %103 = vector.multi_reduction <maximumf>, %102, %cst_42 [1] : vector<128x128xf32> to vector<128xf32>
    %104 = vector.shape_cast %103 : vector<128xf32> to vector<128x1xf32>
    %105 = vector.broadcast %104 : vector<128x1xf32> to vector<128x128xf32>
    %106 = arith.subf %102, %105 : vector<128x128xf32>
    %107 = math.exp %106 : vector<128x128xf32>
    %cst_43 = arith.constant dense<0.000000e+00> : vector<128xf32>
    %108 = vector.multi_reduction <add>, %107, %cst_43 [1] : vector<128x128xf32> to vector<128xf32>
    %109 = vector.shape_cast %108 : vector<128xf32> to vector<128x1xf32>
    %110 = tpu.reciprocal %109 {approx = true} : vector<128x1xf32> -> vector<128x1xf32>
    %111 = vector.broadcast %110 : vector<128x1xf32> to vector<128x128xf32>
    %112 = arith.mulf %107, %111 : vector<128x128xf32>
    %113 = arith.truncf %112 : vector<128x128xf32> to vector<128x128xbf16>
    %cst_44 = arith.constant dense<0.000000e+00> : vector<128x8xf32>
    %114 = tpu.matmul %113, %99, %cst_44 {dimension_numbers = #tpu.dot_dimension_numbers<[1], [0], [0], [1], [0, 0, 1, 1], [], []>} : vector<128x128xbf16>, vector<128x8xbf16>, vector<128x8xf32> -> vector<128x8xf32>
    %c0_45 = arith.constant 0 : index
    %c24 = arith.constant 24 : index
    %115 = vector.load %arg13[%c0_45, %c24] : memref<128x32xf32, #tpu.memory_space<vmem>>, vector<128x8xf32>
    tpu.vector_store %arg13[%c0_45, %c24], %114 {strides = array<i32>} : memref<128x32xf32, #tpu.memory_space<vmem>>, vector<128x8xf32>,
    %c0_46 = arith.constant 0 : index
    %c0_47 = arith.constant 0 : index
    %116 = vector.load %arg13[%c0_46, %c0_47] : memref<128x32xf32, #tpu.memory_space<vmem>>, vector<128x32xf32>
    %117 = arith.truncf %116 : vector<128x32xf32> to vector<128x32xbf16>
    %c0_48 = arith.constant 0 : index
    %c0_49 = arith.constant 0 : index
    %118 = vector.load %arg8[%c0_48, %c0_49] : memref<32x32xbf16, #tpu.memory_space<vmem>>, vector<32x32xbf16>
    %cst_50 = arith.constant dense<0.000000e+00> : vector<128x32xf32>
    %119 = tpu.matmul %117, %118, %cst_50 {dimension_numbers = #tpu.dot_dimension_numbers<[1], [1], [0], [0], [0, 0, 1, 0], [], []>} : vector<128x32xbf16>, vector<32x32xbf16>, vector<128x32xf32> -> vector<128x32xf32>
    %c0_51 = arith.constant 0 : index
    %c0_52 = arith.constant 0 : index
    %120 = vector.load %arg9[%c0_51, %c0_52] : memref<1x32xf32, #tpu.memory_space<vmem>>, vector<1x32xf32>
    %121 = vector.shape_cast %120 : vector<1x32xf32> to vector<32xf32>
    %122 = vector.shape_cast %121 : vector<32xf32> to vector<1x32xf32>
    %123 = vector.broadcast %122 : vector<1x32xf32> to vector<128x32xf32>
    %124 = arith.addf %119, %123 : vector<128x32xf32>
    %c0_53 = arith.constant 0 : index
    %c0_54 = arith.constant 0 : index
    %c0_55 = arith.constant 0 : index
    %125 = vector.load %arg10[%c0_53, %c0_54, %c0_55] : memref<1x128x32xf32, #tpu.memory_space<vmem>>, vector<1x128x32xf32>
    %126 = vector.shape_cast %125 : vector<1x128x32xf32> to vector<128x32xf32>
    %127 = vector.shape_cast %124 : vector<128x32xf32> to vector<1x128x32xf32>
    tpu.vector_store %arg10[%c0_53, %c0_54, %c0_55], %127 {strides = array<i32>} : memref<1x128x32xf32, #tpu.memory_space<vmem>>, vector<1x128x32xf32>,
    return
  }
  func.func @transform_0(%arg0: i32) -> (i32, i32, i32) {
    %c0_i32 = arith.constant 0 : i32
    %c0_i32_0 = arith.constant 0 : i32
    %c0_i32_1 = arith.constant 0 : i32
    return %arg0, %c0_i32, %c0_i32_0 : i32, i32, i32
  }
  func.func @transform_1(%arg0: i32) -> (i32, i32) {
    %c0_i32 = arith.constant 0 : i32
    %c0_i32_0 = arith.constant 0 : i32
    %c0_i32_1 = arith.constant 0 : i32
    return %c0_i32, %c0_i32_0 : i32, i32
  }
  func.func @transform_2(%arg0: i32) -> (i32, i32) {
    %c0_i32 = arith.constant 0 : i32
    %c0_i32_0 = arith.constant 0 : i32
    %c0_i32_1 = arith.constant 0 : i32
    return %c0_i32, %c0_i32_0 : i32, i32
  }
  func.func @transform_3(%arg0: i32) -> (i32, i32) {
    %c0_i32 = arith.constant 0 : i32
    %c0_i32_0 = arith.constant 0 : i32
    %c0_i32_1 = arith.constant 0 : i32
    return %c0_i32, %c0_i32_0 : i32, i32
  }
  func.func @transform_4(%arg0: i32) -> (i32, i32) {
    %c0_i32 = arith.constant 0 : i32
    %c0_i32_0 = arith.constant 0 : i32
    %c0_i32_1 = arith.constant 0 : i32
    return %c0_i32, %c0_i32_0 : i32, i32
  }
  func.func @transform_5(%arg0: i32) -> (i32, i32) {
    %c0_i32 = arith.constant 0 : i32
    %c0_i32_0 = arith.constant 0 : i32
    %c0_i32_1 = arith.constant 0 : i32
    return %c0_i32, %c0_i32_0 : i32, i32
  }
  func.func @transform_6(%arg0: i32) -> (i32, i32) {
    %c0_i32 = arith.constant 0 : i32
    %c0_i32_0 = arith.constant 0 : i32
    %c0_i32_1 = arith.constant 0 : i32
    return %c0_i32, %c0_i32_0 : i32, i32
  }
  func.func @transform_7(%arg0: i32) -> (i32, i32) {
    %c0_i32 = arith.constant 0 : i32
    %c0_i32_0 = arith.constant 0 : i32
    %c0_i32_1 = arith.constant 0 : i32
    return %c0_i32, %c0_i32_0 : i32, i32
  }
  func.func @transform_8(%arg0: i32) -> (i32, i32) {
    %c0_i32 = arith.constant 0 : i32
    %c0_i32_0 = arith.constant 0 : i32
    %c0_i32_1 = arith.constant 0 : i32
    return %c0_i32, %c0_i32_0 : i32, i32
  }
  func.func @transform_9(%arg0: i32) -> (i32, i32, i32) {
    %c0_i32 = arith.constant 0 : i32
    %c0_i32_0 = arith.constant 0 : i32
    %c0_i32_1 = arith.constant 0 : i32
    return %arg0, %c0_i32, %c0_i32_0 : i32, i32, i32
  }
  func.func @transform_10(%arg0: i32) -> (i32, i32, i32) {
    %c0_i32 = arith.constant 0 : i32
    %c0_i32_0 = arith.constant 0 : i32
    %c0_i32_1 = arith.constant 0 : i32
    return %arg0, %c0_i32, %c0_i32_0 : i32, i32, i32
  }
  func.func @transform_11(%arg0: i32) -> (i32, i32, i32) {
    %c0_i32 = arith.constant 0 : i32
    %c0_i32_0 = arith.constant 0 : i32
    %c0_i32_1 = arith.constant 0 : i32
    return %arg0, %c0_i32, %c0_i32_0 : i32, i32, i32
  }
}

</mosaic_0001>

<bundles_post_ra>
// kernel: tpu_custom_call.1
= control target key start
LH: loop header
LB: loop body
LE: loop exit
PB: predicated region body
PF: predicated region fallthrough
CT: control target
= control target key end

     0   :  { %s4288_s17 = smov 0   ;;  %s5646_s0 = inlined_call_operand.vmem [shape: bf16[2,128,32], index: 0, kind: input, shape index: {}]   ;;  %s5647_s1 = inlined_call_operand.vmem [shape: bf16[32,32], index: 1, kind: input, shape index: {}]   ;;  %s5648_s2 = inlined_call_operand.vmem [shape: f32[1,32], index: 2, kind: input, shape index: {}]   ;;  %s5649_s3 = inlined_call_operand.vmem [shape: bf16[32,32], index: 3, kind: input, shape index: {}]   ;;  %s5650_s4 = inlined_call_operand.vmem [shape: f32[1,32], index: 4, kind: input, shape index: {}]   ;;  %s5651_s5 = inlined_call_operand.vmem [shape: bf16[32,32], index: 5, kind: input, shape index: {}]   ;;  %s5652_s6 = inlined_call_operand.vmem [shape: f32[1,32], index: 6, kind: input, shape index: {}]   ;;  %s5653_s7 = inlined_call_operand.vmem [shape: bf16[32,32], index: 7, kind: input, shape index: {}]   ;;  %s5654_s8 = inlined_call_operand.vmem [shape: f32[1,32], index: 8, kind: input, shape index: {}]   ;;  %s5655_s9 = inlined_call_operand.vmem [shape: f32[2,128,32], index: 9, kind: output, shape index: {0}]   ;;  %s5656_s10 = inlined_call_operand.vmem [shape: f32[2,128,32], index: 10, kind: output, shape index: {1}]   ;;  %s5657_s11 = inlined_call_operand.vmem [shape: f32[2,128,32], index: 11, kind: output, shape index: {2}]  }
   0x1 LB: > { %s3279_s18 = sadd.s32 4294967295, %s4219_s17   ;;  %p3283_p0 = scmp.ge.s32.totalorder %s4219_s17, 1  ;;  %s4219_s17 = sphi %s4288_s17, %s22_s17  }
   0x2   : > { %p342_p1 = scmp.lt.s32.totalorder %s4219_s17, 3 }
   0x4   : > { %p343_p2 = pnand %p3283_p0, %p342_p1 }
   0x6   : > { %346 = sbr.rel (%p343_p2) target bundleno = 3362 (0xd22), region = 56 }
   0xd   : > { %vm490_vm0 = vcmask 261120   ;;  %v3941_v0 = vld [vmem:[%s5649_s3] sm:$0xff]   ;;  %v3942_v1 = vld [vmem:[%s5649_s3 + $0x8] sm:$0xff]   ;;  %p392_p3 = scmp.lt.s32.totalorder %s3279_s18, 1  ;;  %vm942_vm1 = vcmask 64512   ;;  %s4223_s12 = smov 112  }
   0xe   : > { %3888 = vmatprep.subr.msk.bf16.mxu1 %vm490_vm0, %v3941_v0  ;;  %v656_v2 = vsel %vm490_vm0, %v3941_v0, 0  ;;  %v3949_v3 = vld [vmem:[%s5647_s1] sm:$0xff]   ;;  %v3951_v5 = vld [vmem:[%s5647_s1 + $0x8] sm:$0xff]   ;;  %v659_v7 = vsel %vm490_vm0, %v3942_v1, 0  ;;  %s4224_s13 = smov 104   ;;  %s4225_s14 = smov 8  }
   0xf   : > { %3571 = vmatpush3.bf16.xpose.msra.mxu1 %v656_v2  ;;  %s5673_s18 = smov (!%p392_p3, %s3279_s18), 1  ;;  %3886 = vmatprep.subr.msk.bf16.mxu0 %vm490_vm0, %v3949_v3  ;;  %v516_v4 = vsel %vm490_vm0, %v3949_v3, 0  ;;  %v519_v8 = vsel %vm490_vm0, %v3951_v5, 0  ;;  %v3953_v9 = vld [vmem:[%s5651_s5] sm:$0xff]   ;;  %v3954_v13 = vld [vmem:[%s5651_s5 + $0x8] sm:$0xff]   ;;  %s4226_s15 = smov 16  }
  0x10   : > { %3889 = vmatprep.subr.msk.bf16.mxu1 %vm490_vm0, %v3942_v1  ;;  %s3378_s27 = sshll.u32 %s5673_s18, 6  ;;  %3551 = vmatpush3.bf16.xpose.msra.mxu0 %v516_v4  ;;  %v780_v12 = vsel %vm490_vm0, %v3953_v9, 0  ;;  %v783_v16 = vsel %vm490_vm0, %v3954_v13, 0  ;;  %s4367_s16 = sshll.u32 %s5673_s18, 7  ;;  %v4372_v20 = vld [vmem:[%s5650_s4] ss:$0 sm:$0xff] }
  0x11   : > { %s4319_s30 = scalar_lea.vmem %s5646_s0, %s3378_s27  ;;  %3887 = vmatprep.subr.msk.bf16.mxu0 %vm490_vm0, %v3951_v5  ;;  %s4378_s23 = scalar_lea.vmem %s5656_s10, %s4367_s16  ;;  %v4383_v22 = vld [vmem:[%s5648_s2] ss:$0 sm:$0xff]  ;;  %vm1891_vm3 = vcmask 130112   ;;  %vm2422_vm4 = vcmask 195712   ;;  %vm2953_vm5 = vcmask 261312  }
  0x12   : > { %v3943_v6 = vld [vmem:[%s4319_s30] sm:$0xff]   ;;  %v3944_v10 = vld [vmem:[%s4319_s30 + $0x8] sm:$0xff]   ;;  %v3945_v11 = vld [vmem:[%s4319_s30 + $0x10] sm:$0xff]   ;;  %s4221_s18 = smov 120   ;;  %s5609_s27 = scalar_lea.vmem %s5655_s9, %s4367_s16 }
  0x13   : > { %3574 = vmatprep.mubr.msk.bf16.mxu1 %vm490_vm0, %v3943_v6  ;;  %3554 = vmatprep.mubr.msk.bf16.mxu0 %vm490_vm0, %v3943_v6  ;;  %v3946_v14 = vld [vmem:[%s4319_s30 + $0x18] sm:$0xff]   ;;  %v3947_v15 = vld [vmem:[%s4319_s30 + $0x20] sm:$0xff]   ;;  %v3948_v17 = vld [vmem:[%s4319_s30 + $0x28] sm:$0xff]  }
  0x14   : > { %v3950_v18 = vld [vmem:[%s4319_s30 + $0x30] sm:$0xff]   ;;  %v3952_v19 = vld [vmem:[%s4319_s30 + $0x38] sm:$0xff]   ;;  %s4514_s30 = scalar_lea.vmem %s5657_s11, %s4367_s16 }
  0x17   : > { %3573 = vmatpush3.bf16.xpose.msra.mxu1 %v659_v7 }
  0x18   : > { %3553 = vmatpush3.bf16.xpose.msra.mxu0 %v519_v8 }
  0x19   : > { %3890 = vmatprep.subr.msk.bf16.mxu0 %vm490_vm0, %v3953_v9 }
  0x1e   : > { %3575 = vmatmul.mubr.msk.bf16.vlgmr.msra.gmra.mrb[0].mxu1 %vm490_vm0, %v3944_v10 }
  0x1f   : > { %3578 = vmatprep.mubr.msk.bf16.mxu1 %vm490_vm0, %v3945_v11  ;;  %3555 = vmatmul.mubr.msk.bf16.vlgmr.msra.gmra.mrb[0].mxu0 %vm490_vm0, %v3944_v10 }
  0x20   : > { %3558 = vmatprep.mubr.msk.bf16.mxu0 %vm490_vm0, %v3945_v11  ;;  %3591 = vmatpush3.bf16.xpose.msra.mxu0 %v780_v12 }
  0x21   : > { %3891 = vmatprep.subr.msk.bf16.mxu0 %vm490_vm0, %v3954_v13 }
  0x26   : > { %3579 = vmatmul.mubr.msk.bf16.gmra.mrb[4].mxu1 %vm490_vm0, %v3946_v14 }
  0x27   : > { %3582 = vmatprep.mubr.msk.bf16.mxu1 %vm490_vm0, %v3947_v15  ;;  %3559 = vmatmul.mubr.msk.bf16.gmra.mrb[4].mxu0 %vm490_vm0, %v3946_v14 }
  0x28   : > { %3562 = vmatprep.mubr.msk.bf16.mxu0 %vm490_vm0, %v3947_v15  ;;  %3593 = vmatpush3.bf16.xpose.msra.mxu0 %v783_v16 }
  0x2e   : > { %3583 = vmatmul.mubr.msk.bf16.gmra.mrb[8].mxu1 %vm490_vm0, %v3948_v17 }
  0x2f   : > { %3586 = vmatprep.mubr.msk.bf16.mxu1 %vm490_vm0, %v3950_v18  ;;  %3563 = vmatmul.mubr.msk.bf16.gmra.mrb[8].mxu0 %vm490_vm0, %v3948_v17 }
  0x30   : > { %3566 = vmatprep.mubr.msk.bf16.mxu0 %vm490_vm0, %v3950_v18 }
  0x36   : > { %3587 = vmatmul.mubr.msk.bf16.gmra.mrb[12].mxu1 %vm490_vm0, %v3952_v19 }
  0x37   : > { %3567 = vmatmul.mubr.msk.bf16.gmra.mrb[12].mxu0 %vm490_vm0, %v3952_v19 }
  0x38   : > { %3594 = vmatprep.mubr.msk.bf16.mxu0 %vm490_vm0, %v3943_v6 }
  0x3f   : > { %3595 = vmatmul.mubr.msk.bf16.vlgmr.msra.gmra.mrb[16].mxu0 %vm490_vm0, %v3944_v10 }
  0x40   : > { %3598 = vmatprep.mubr.msk.bf16.mxu0 %vm490_vm0, %v3945_v11 }
  0x47   : > { %3599 = vmatmul.mubr.msk.bf16.gmra.mrb[20].mxu0 %vm490_vm0, %v3946_v14 }
  0x48   : > { %3602 = vmatprep.mubr.msk.bf16.mxu0 %vm490_vm0, %v3947_v15 }
  0x4f   : > { %3603 = vmatmul.mubr.msk.bf16.gmra.mrb[24].mxu0 %vm490_vm0, %v3948_v17 }
  0x50   : > { %3606 = vmatprep.mubr.msk.bf16.mxu0 %vm490_vm0, %v3950_v18 }
  0x57   : > { %3607 = vmatmul.mubr.msk.bf16.gmra.mrb[28].mxu0 %vm490_vm0, %v3952_v19 }
  0xf1   : > { %v3576_v21 = vpop.f32.mrb[0].mxu1 }
  0xf2   : > { %v704_v23 = vadd.f32 %v3576_v21, %v4372_v20  ;;  %v695_v24 = vpop.f32.mrb[1].mxu1  ;;  %v3556_v27 = vpop.f32.mrb[0].mxu0 }
  0xf3   : > { %v696_v25 = vadd.f32 %v4372_v20, %v695_v24  ;;  %v3577_v26 = vpop.f32.mrb[2].mxu1  ;;  %v564_v30 = vadd.f32 %v3556_v27, %v4383_v22  ;;  %v555_v31 = vpop.f32.mrb[1].mxu0 }
  0xf4   : > { %884 = vst.msk [vmem:[%s4378_s23 + $0x10] sm:$0xff] %vm490_vm0, %v704_v23  ;;  %v707_v28 = vadd.f32 %v3577_v26, %v4372_v20  ;;  %v698_v29 = vpop.f32.mrb[3].mxu1  ;;  %v556_v33 = vadd.f32 %v4383_v22, %v555_v31  ;;  %v3557_v34 = vpop.f32.mrb[2].mxu0 }
  0xf5   : > { %882 = vst.msk [vmem:[%s4378_s23] sm:$0xff] %vm490_vm0, %v696_v25  ;;  %v699_v32 = vadd.f32 %v4372_v20, %v698_v29  ;;  %v620_v36 = vmul.f32 0.35355338, %v564_v30  ;;  %v567_v37 = vadd.f32 %v3557_v34, %v4383_v22  ;;  %v558_v38 = vpop.f32.mrb[3].mxu0 }
  0xf6   : > { %885 = vst.msk [vmem:[%s4378_s23 + $0x18] sm:$0xff] %vm490_vm0, %v707_v28  ;;  %v4397_v35 = vpack.c.bf16 %v707_v28, %v704_v23  ;;  %v618_v40 = vmul.f32 0.35355338, %v556_v33  ;;  %v559_v41 = vadd.f32 %v4383_v22, %v558_v38 }
  0xf7   : > { %883 = vst.msk [vmem:[%s4378_s23 + $0x8] sm:$0xff] %vm490_vm0, %v699_v32  ;;  %v4402_v39 = vpack.c.bf16 %v699_v32, %v696_v25  ;;  %v621_v42 = vmul.f32 0.35355338, %v567_v37 }
  0xf8   : > { %1387 = vrot.lane.b32.xlu1 %v4397_v35, %s4221_s18  ;;  %v619_v45 = vmul.f32 0.35355338, %v559_v41  ;;  %v971_v4 = vsel %vm942_vm1, %v4397_v35, 0 }
  0xf9   : > { %1385 = vrot.lane.b32.xlu0 %v4402_v39, %s4221_s18  ;;  %3892 = vmatprep.subr.msk.bf16.mxu1 %vm942_vm1, %v4402_v39  ;;  %v968_v43 = vsel %vm942_vm1, %v4402_v39, 0  ;;  %v3580_v44 = vpop.f32.mrb[4].mxu1  ;;  %v4414_v48 = vpack.c.bf16 %v621_v42, %v620_v36 }
  0xfa   : > { %3611 = vmatpush3.bf16.xpose.msra.mxu1 %v968_v43  ;;  %v720_v46 = vadd.f32 %v3580_v44, %v4372_v20  ;;  %v711_v47 = vpop.f32.mrb[5].mxu1  ;;  %v4419_v51 = vpack.c.bf16 %v619_v45, %v618_v40  ;;  %v3560_v52 = vpop.f32.mrb[4].mxu0 }
  0xfb   : > { %3893 = vmatprep.subr.msk.bf16.mxu1 %vm942_vm1, %v4397_v35  ;;  %v712_v49 = vadd.f32 %v4372_v20, %v711_v47  ;;  %v3581_v50 = vpop.f32.mrb[6].mxu1  ;;  %v580_v55 = vadd.f32 %v3560_v52, %v4383_v22  ;;  %v571_v56 = vpop.f32.mrb[5].mxu0 }
  0xfc   : > { %888 = vst.msk [vmem:[%s4378_s23 + $0x30] sm:$0xff] %vm490_vm0, %v720_v46  ;;  %v723_v53 = vadd.f32 %v3581_v50, %v4372_v20  ;;  %v714_v54 = vpop.f32.mrb[7].mxu1  ;;  %3626 = vmatprep.mubr.msk.bf16.mxu1 %vm942_vm1, %v4419_v51  ;;  %v572_v58 = vadd.f32 %v4383_v22, %v571_v56  ;;  %v3561_v59 = vpop.f32.mrb[6].mxu0 }
  0xfd   : > { %886 = vst.msk [vmem:[%s4378_s23 + $0x20] sm:$0xff] %vm490_vm0, %v712_v49  ;;  %v715_v57 = vadd.f32 %v4372_v20, %v714_v54  ;;  %v624_v61 = vmul.f32 0.35355338, %v580_v55  ;;  %v583_v62 = vadd.f32 %v3561_v59, %v4383_v22  ;;  %v574_v63 = vpop.f32.mrb[7].mxu0 }
  0xfe   : > { %889 = vst.msk [vmem:[%s4378_s23 + $0x38] sm:$0xff] %vm490_vm0, %v723_v53  ;;  %v4433_v60 = vpack.c.bf16 %v723_v53, %v720_v46  ;;  %v622_v1 = vmul.f32 0.35355338, %v572_v58  ;;  %v575_v2 = vadd.f32 %v4383_v22, %v574_v63  ;;  %v4504_v63 = vld [vmem:[%s5652_s6] ss:$0 sm:$0xff] }
  0xff   : > { %887 = vst.msk [vmem:[%s4378_s23 + $0x28] sm:$0xff] %vm490_vm0, %v715_v57  ;;  %v4438_v0 = vpack.c.bf16 %v715_v57, %v712_v49  ;;  %v625_v3 = vmul.f32 0.35355338, %v583_v62 }
 0x100   : > { %v623_v6 = vmul.f32 0.35355338, %v575_v2  ;;  %v977_v59 = vsel %vm942_vm1, %v4433_v60, 0 }
 0x101   : > { %v3584_v5 = vpop.f32.mrb[8].mxu1  ;;  %v4444_v9 = vpack.c.bf16 %v625_v3, %v624_v61  ;;  %v974_v31 = vsel %vm942_vm1, %v4438_v0, 0 }
 0x102   : > { %3613 = vmatpush3.bf16.xpose.msra.mxu1 %v971_v4  ;;  %v736_v7 = vadd.f32 %v3584_v5, %v4372_v20  ;;  %v727_v8 = vpop.f32.mrb[9].mxu1  ;;  %v4449_v12 = vpack.c.bf16 %v623_v6, %v622_v1  ;;  %v3564_v13 = vpop.f32.mrb[8].mxu0 }
 0x103   : > { %3894 = vmatprep.subr.msk.bf16.mxu1 %vm942_vm1, %v4438_v0  ;;  %v728_v10 = vadd.f32 %v4372_v20, %v727_v8  ;;  %v3585_v11 = vpop.f32.mrb[10].mxu1  ;;  %v596_v16 = vadd.f32 %v3564_v13, %v4383_v22  ;;  %v587_v17 = vpop.f32.mrb[9].mxu0 }
 0x104   : > { %892 = vst.msk [vmem:[%s4378_s23 + $0x50] sm:$0xff] %vm490_vm0, %v736_v7  ;;  %v739_v14 = vadd.f32 %v3585_v11, %v4372_v20  ;;  %v730_v15 = vpop.f32.mrb[11].mxu1  ;;  %v588_v19 = vadd.f32 %v4383_v22, %v587_v17  ;;  %v3565_v21 = vpop.f32.mrb[10].mxu0 }
 0x105   : > { %890 = vst.msk [vmem:[%s4378_s23 + $0x40] sm:$0xff] %vm490_vm0, %v728_v10  ;;  %v731_v18 = vadd.f32 %v4372_v20, %v730_v15  ;;  %v628_v24 = vmul.f32 0.35355338, %v596_v16  ;;  %v599_v25 = vadd.f32 %v3565_v21, %v4383_v22  ;;  %v590_v26 = vpop.f32.mrb[11].mxu0 }
 0x106   : > { %893 = vst.msk [vmem:[%s4378_s23 + $0x58] sm:$0xff] %vm490_vm0, %v739_v14  ;;  %v4461_v23 = vpack.c.bf16 %v739_v14, %v736_v7  ;;  %v626_v28 = vmul.f32 0.35355338, %v588_v19  ;;  %v591_v29 = vadd.f32 %v4383_v22, %v590_v26 }
 0x107   : > { %891 = vst.msk [vmem:[%s4378_s23 + $0x48] sm:$0xff] %vm490_vm0, %v731_v18  ;;  %v4466_v27 = vpack.c.bf16 %v731_v18, %v728_v10  ;;  %v629_v30 = vmul.f32 0.35355338, %v599_v25 }
 0x108   : > { %v627_v33 = vmul.f32 0.35355338, %v591_v29  ;;  %v983_v26 = vsel %vm942_vm1, %v4461_v23, 0 }
 0x109   : > { %v3588_v32 = vpop.f32.mrb[12].mxu1  ;;  %v4472_v37 = vpack.c.bf16 %v629_v30, %v628_v24  ;;  %v980_v11 = vsel %vm942_vm1, %v4466_v27, 0 }
 0x10a   : > { %3615 = vmatpush3.bf16.xpose.msra.mxu1 %v974_v31  ;;  %v752_v34 = vadd.f32 %v3588_v32, %v4372_v20  ;;  %v743_v36 = vpop.f32.mrb[13].mxu1  ;;  %v4477_v41 = vpack.c.bf16 %v627_v33, %v626_v28  ;;  %v3568_v42 = vpop.f32.mrb[12].mxu0 }
 0x10b   : > { %3895 = vmatprep.subr.msk.bf16.mxu1 %vm942_vm1, %v4433_v60  ;;  %v744_v38 = vadd.f32 %v4372_v20, %v743_v36  ;;  %v3589_v40 = vpop.f32.mrb[14].mxu1  ;;  %v612_v45 = vadd.f32 %v3568_v42, %v4383_v22  ;;  %v603_v46 = vpop.f32.mrb[13].mxu0 }
 0x10c   : > { %896 = vst.msk [vmem:[%s4378_s23 + $0x70] sm:$0xff] %vm490_vm0, %v752_v34  ;;  %v755_v43 = vadd.f32 %v3589_v40, %v4372_v20  ;;  %v746_v44 = vpop.f32.mrb[15].mxu1  ;;  %v604_v49 = vadd.f32 %v4383_v22, %v603_v46  ;;  %v3569_v50 = vpop.f32.mrb[14].mxu0 }
 0x10d   : > { %894 = vst.msk [vmem:[%s4378_s23 + $0x60] sm:$0xff] %vm490_vm0, %v744_v38  ;;  %v747_v47 = vadd.f32 %v4372_v20, %v746_v44  ;;  %v632_v53 = vmul.f32 0.35355338, %v612_v45  ;;  %v615_v54 = vadd.f32 %v3569_v50, %v4383_v22  ;;  %v606_v55 = vpop.f32.mrb[15].mxu0 }
 0x10e   : > { %897 = vst.msk [vmem:[%s4378_s23 + $0x78] sm:$0xff] %vm490_vm0, %v755_v43  ;;  %v4489_v52 = vpack.c.bf16 %v755_v43, %v752_v34  ;;  %v630_v57 = vmul.f32 0.35355338, %v604_v49  ;;  %v607_v58 = vadd.f32 %v4383_v22, %v606_v55 }
 0x10f   : > { %895 = vst.msk [vmem:[%s4378_s23 + $0x68] sm:$0xff] %vm490_vm0, %v747_v47  ;;  %v4494_v56 = vpack.c.bf16 %v747_v47, %v744_v38  ;;  %v633_v20 = vmul.f32 0.35355338, %v615_v54  ;;  %s4227_s23 = smov 24  }
 0x110   : > { %v631_v61 = vmul.f32 0.35355338, %v607_v58 }
 0x111   : > { %v4499_v62 = vpack.c.bf16 %v633_v20, %v632_v53  ;;  %v986_v42 = vsel %vm942_vm1, %v4494_v56, 0 }
 0x112   : > { %3617 = vmatpush3.bf16.xpose.msra.mxu1 %v977_v59  ;;  %v4508_v1 = vpack.c.bf16 %v631_v61, %v630_v57  ;;  %v3596_v22 = vpop.f32.mrb[16].mxu0  ;;  %v989_v57 = vsel %vm942_vm1, %v4489_v52, 0  ;;  %v938_v59 = vlaneseq }
 0x113   : > { %3896 = vmatprep.subr.msk.bf16.mxu1 %vm942_vm1, %v4466_v27  ;;  %v828_v2 = vadd.f32 %v3596_v22, %v4504_v63  ;;  %v819_v3 = vpop.f32.mrb[17].mxu0 }
 0x114   : > { %v820_v4 = vadd.f32 %v4504_v63, %v819_v3  ;;  %v3597_v5 = vpop.f32.mrb[18].mxu0  ;;  %v939_v61 = vand.u32 127, %v938_v59 }
 0x115   : > { %900 = vst.msk [vmem:[%s4514_s30 + $0x10] sm:$0xff] %vm490_vm0, %v828_v2  ;;  %v831_v6 = vadd.f32 %v3597_v5, %v4504_v63  ;;  %v822_v7 = vpop.f32.mrb[19].mxu0 }
 0x116   : > { %898 = vst.msk [vmem:[%s4514_s30] sm:$0xff] %vm490_vm0, %v820_v4  ;;  %v823_v8 = vadd.f32 %v4504_v63, %v822_v7  ;;  %vm940_vm2 = vcmp.lt.s32.totalorder %v939_v61, 8 }
 0x117   : > { %901 = vst.msk [vmem:[%s4514_s30 + $0x18] sm:$0xff] %vm490_vm0, %v831_v6  ;;  %v4526_v10 = vpack.c.bf16 %v831_v6, %v828_v2 }
 0x118   : > { %899 = vst.msk [vmem:[%s4514_s30 + $0x8] sm:$0xff] %vm490_vm0, %v823_v8  ;;  %v4532_v13 = vpack.c.bf16 %v823_v8, %v820_v4 }
 0x11a   : > { %3619 = vmatpush3.bf16.xpose.msra.mxu1 %v980_v11  ;;  %v3600_v14 = vpop.f32.mrb[20].mxu0  ;;  %3642 = vmatprep.subr.bf16.mxu0 %v4532_v13 }
 0x11b   : > { %3897 = vmatprep.subr.msk.bf16.mxu1 %vm942_vm1, %v4461_v23  ;;  %v844_v15 = vadd.f32 %v3600_v14, %v4504_v63  ;;  %v835_v16 = vpop.f32.mrb[21].mxu0  ;;  %3643 = vmatpush3.bf16.msra.mxu0 %v4532_v13 }
 0x11c   : > { %v836_v17 = vadd.f32 %v4504_v63, %v835_v16  ;;  %v3601_v18 = vpop.f32.mrb[22].mxu0  ;;  %3644 = vmatprep.subr.bf16.mxu0 %v4526_v10 }
 0x11d   : > { %904 = vst.msk [vmem:[%s4514_s30 + $0x30] sm:$0xff] %vm490_vm0, %v844_v15  ;;  %v847_v19 = vadd.f32 %v3601_v18, %v4504_v63  ;;  %v838_v21 = vpop.f32.mrb[23].mxu0 }
 0x11e   : > { %902 = vst.msk [vmem:[%s4514_s30 + $0x20] sm:$0xff] %vm490_vm0, %v836_v17  ;;  %v839_v24 = vadd.f32 %v4504_v63, %v838_v21 }
 0x11f   : > { %905 = vst.msk [vmem:[%s4514_s30 + $0x38] sm:$0xff] %vm490_vm0, %v847_v19  ;;  %v4549_v25 = vpack.c.bf16 %v847_v19, %v844_v15  ;;  %3645 = vmatpush3.bf16.msra.mxu0 %v4526_v10 }
 0x120   : > { %903 = vst.msk [vmem:[%s4514_s30 + $0x28] sm:$0xff] %vm490_vm0, %v839_v24  ;;  %v4556_v28 = vpack.c.bf16 %v839_v24, %v836_v17 }
 0x122   : > { %3621 = vmatpush3.bf16.xpose.msra.mxu1 %v983_v26  ;;  %v3604_v29 = vpop.f32.mrb[24].mxu0  ;;  %3646 = vmatprep.subr.bf16.mxu0 %v4556_v28 }
 0x123   : > { %3898 = vmatprep.subr.msk.bf16.mxu1 %vm942_vm1, %v4494_v56  ;;  %v860_v30 = vadd.f32 %v3604_v29, %v4504_v63  ;;  %v851_v31 = vpop.f32.mrb[25].mxu0  ;;  %3647 = vmatpush3.bf16.msra.mxu0 %v4556_v28 }
 0x124   : > { %v852_v32 = vadd.f32 %v4504_v63, %v851_v31  ;;  %v3605_v33 = vpop.f32.mrb[26].mxu0  ;;  %3648 = vmatprep.subr.bf16.mxu0 %v4549_v25 }
 0x125   : > { %908 = vst.msk [vmem:[%s4514_s30 + $0x50] sm:$0xff] %vm490_vm0, %v860_v30  ;;  %v863_v34 = vadd.f32 %v3605_v33, %v4504_v63  ;;  %v854_v36 = vpop.f32.mrb[27].mxu0 }
 0x126   : > { %906 = vst.msk [vmem:[%s4514_s30 + $0x40] sm:$0xff] %vm490_vm0, %v852_v32  ;;  %v855_v38 = vadd.f32 %v4504_v63, %v854_v36 }
 0x127   : > { %909 = vst.msk [vmem:[%s4514_s30 + $0x58] sm:$0xff] %vm490_vm0, %v863_v34  ;;  %v4573_v40 = vpack.c.bf16 %v863_v34, %v860_v30  ;;  %3649 = vmatpush3.bf16.msra.mxu0 %v4549_v25 }
 0x128   : > { %907 = vst.msk [vmem:[%s4514_s30 + $0x48] sm:$0xff] %vm490_vm0, %v855_v38  ;;  %v4580_v43 = vpack.c.bf16 %v855_v38, %v852_v32 }
 0x12a   : > { %3623 = vmatpush3.bf16.xpose.msra.mxu1 %v986_v42  ;;  %v3608_v44 = vpop.f32.mrb[28].mxu0  ;;  %3650 = vmatprep.subr.bf16.mxu0 %v4580_v43 }
 0x12b   : > { %3899 = vmatprep.subr.msk.bf16.mxu1 %vm942_vm1, %v4489_v52  ;;  %v876_v45 = vadd.f32 %v3608_v44, %v4504_v63  ;;  %v867_v46 = vpop.f32.mrb[29].mxu0  ;;  %3651 = vmatpush3.bf16.msra.mxu0 %v4580_v43 }
 0x12c   : > { %v868_v47 = vadd.f32 %v4504_v63, %v867_v46  ;;  %v3609_v49 = vpop.f32.mrb[30].mxu0  ;;  %3652 = vmatprep.subr.bf16.mxu0 %v4573_v40 }
 0x12d   : > { %912 = vst.msk [vmem:[%s4514_s30 + $0x70] sm:$0xff] %vm490_vm0, %v876_v45  ;;  %v879_v50 = vadd.f32 %v3609_v49, %v4504_v63  ;;  %v870_v53 = vpop.f32.mrb[31].mxu0 }
 0x12e   : > { %910 = vst.msk [vmem:[%s4514_s30 + $0x60] sm:$0xff] %vm490_vm0, %v868_v47  ;;  %v871_v54 = vadd.f32 %v4504_v63, %v870_v53  ;;  %v4222_v63 = vmov -1e+30  }
 0x12f   : > { %913 = vst.msk [vmem:[%s4514_s30 + $0x78] sm:$0xff] %vm490_vm0, %v879_v50  ;;  %v4597_v55 = vpack.c.bf16 %v879_v50, %v876_v45  ;;  %3653 = vmatpush3.bf16.msra.mxu0 %v4573_v40  ;;  %v4628_v22 = vsel %vm940_vm2, 0.0, %v4222_v63 }
 0x130   : > { %911 = vst.msk [vmem:[%s4514_s30 + $0x68] sm:$0xff] %vm490_vm0, %v871_v54  ;;  %v4604_v58 = vpack.c.bf16 %v871_v54, %v868_v47 }
 0x132   : > { %3625 = vmatpush3.bf16.xpose.msra.mxu1 %v989_v57  ;;  %3654 = vmatprep.subr.bf16.mxu0 %v4604_v58 }
 0x133   : > { %3655 = vmatpush3.bf16.msra.mxu0 %v4604_v58 }
 0x134   : > { %3656 = vmatprep.subr.bf16.mxu0 %v4597_v55 }
 0x137   : > { %3657 = vmatpush3.bf16.msra.mxu0 %v4597_v55 }
 0x139   : > { %3627 = vmatmul.mubr.msk.bf16.vlgmr.msra.gmra.mrb[16].mxu1 %vm942_vm1, %v4414_v48 }
 0x13a   : > { %3630 = vmatprep.mubr.msk.bf16.mxu1 %vm942_vm1, %v4449_v12 }
 0x141   : > { %3631 = vmatmul.mubr.msk.bf16.gmra.mrb[20].mxu1 %vm942_vm1, %v4444_v9 }
 0x142   : > { %3634 = vmatprep.mubr.msk.bf16.mxu1 %vm942_vm1, %v4477_v41 }
 0x149   : > { %3635 = vmatmul.mubr.msk.bf16.gmra.mrb[24].mxu1 %vm942_vm1, %v4472_v37 }
 0x14a   : > { %3638 = vmatprep.mubr.msk.bf16.mxu1 %vm942_vm1, %v4508_v1 }
 0x151   : > { %3639 = vmatmul.mubr.msk.bf16.gmra.mrb[28].mxu1 %vm942_vm1, %v4499_v62 }
 0x16a   : > { %v4686_v53 = vpop.permute.xlu1 %1387 }
 0x16b   : > { %v4624_v20 = vpop.permute.xlu0 %1385 }
 0x16c   : > { %3900 = vmatprep.subr.msk.bf16.mxu0 %vm942_vm1, %v4624_v20 }
 0x20c   : > { %v3628_v2 = vpop.f32.mrb[16].mxu1 }
 0x20d   : > { %v1034_v3 = vadd.f32 %v3628_v2, %v4628_v22  ;;  %v1025_v4 = vpop.f32.mrb[17].mxu1 }
 0x20e   : > { %v1026_v5 = vadd.f32 %v1025_v4, %v4628_v22  ;;  %v3629_v6 = vpop.f32.mrb[18].mxu1 }
 0x20f   : > { %1092 = vmax.xlane.f32.xlu1 %v1034_v3  ;;  %v1028_v7 = vpop.f32.mrb[19].mxu1  ;;  %v1037_v8 = vadd.f32 %v3629_v6, %v4628_v22 }
 0x210   : > { %1088 = vmax.xlane.f32.xlu0 %v1026_v5  ;;  %v1029_v11 = vadd.f32 %v1028_v7, %v4628_v22 }
 0x213   : > { %1094 = vmax.xlane.f32.xlu1 %v1037_v8 }
 0x214   : > { %v3632_v14 = vpop.f32.mrb[20].mxu1  ;;  %1090 = vmax.xlane.f32.xlu0 %v1029_v11 }
 0x215   : > { %v4635_v15 = vadd.f32 %v3632_v14, %v4628_v22  ;;  %v1041_v16 = vpop.f32.mrb[21].mxu1 }
 0x216   : > { %v3633_v17 = vpop.f32.mrb[22].mxu1  ;;  %v4641_v21 = vadd.f32 %v1041_v16, %v4628_v22 }
 0x217   : > { %v4638_v18 = vadd.f32 %v3633_v17, %v4628_v22  ;;  %v1044_v19 = vpop.f32.mrb[23].mxu1 }
 0x218   : > { %1100 = vmax.xlane.f32.xlu0 %v4635_v15  ;;  %v4646_v24 = vadd.f32 %v1044_v19, %v4628_v22 }
 0x219   : > { %1102 = vmax.xlane.f32.xlu1 %v4638_v18 }
 0x21c   : > { %v3636_v26 = vpop.f32.mrb[24].mxu1  ;;  %1096 = vmax.xlane.f32.xlu0 %v4641_v21 }
 0x21d   : > { %v4650_v29 = vadd.f32 %v3636_v26, %v4628_v22  ;;  %v1057_v30 = vpop.f32.mrb[25].mxu1  ;;  %1098 = vmax.xlane.f32.xlu1 %v4646_v24 }
 0x21e   : > { %v3637_v31 = vpop.f32.mrb[26].mxu1  ;;  %v4657_v34 = vadd.f32 %v1057_v30, %v4628_v22 }
 0x21f   : > { %v4654_v32 = vadd.f32 %v3637_v31, %v4628_v22  ;;  %v1060_v33 = vpop.f32.mrb[27].mxu1 }
 0x220   : > { %1108 = vmax.xlane.f32.xlu0 %v4650_v29  ;;  %v4662_v36 = vadd.f32 %v1060_v33, %v4628_v22 }
 0x221   : > { %1110 = vmax.xlane.f32.xlu1 %v4654_v32 }
 0x224   : > { %1104 = vmax.xlane.f32.xlu0 %v4657_v34  ;;  %v3640_v38 = vpop.f32.mrb[28].mxu1 }
 0x225   : > { %v4666_v42 = vadd.f32 %v3640_v38, %v4628_v22  ;;  %1106 = vmax.xlane.f32.xlu1 %v4662_v36  ;;  %v1073_v44 = vpop.f32.mrb[29].mxu1 }
 0x226   : > { %v3641_v45 = vpop.f32.mrb[30].mxu1  ;;  %v4671_v47 = vadd.f32 %v1073_v44, %v4628_v22 }
 0x227   : > { %v1076_v46 = vpop.f32.mrb[31].mxu1  ;;  %v4679_v49 = vadd.f32 %v3641_v45, %v4628_v22 }
 0x228   : > { %1116 = vmax.xlane.f32.xlu0 %v4666_v42  ;;  %v4682_v50 = vadd.f32 %v1076_v46, %v4628_v22 }
 0x22c   : > { %1112 = vmax.xlane.f32.xlu0 %v4671_v47 }
 0x236   : > { %1391 = vrot.lane.b32.xlu1 %v4433_v60, %s4221_s18 }
 0x242   : > { %1389 = vrot.lane.b32.xlu0 %v4438_v0, %s4221_s18 }
 0x25a   : > { %1118 = vmax.xlane.f32.xlu1 %v4679_v49 }
 0x25e   : > { %1114 = vmax.xlane.f32.xlu1 %v4682_v50 }
 0x29c   : > { %v1093_v54 = vpop.xlane.xlu1 %1092 }
 0x29d   : > { %v1122_v57 = vsub.f32 %v1034_v3, %v1093_v54  ;;  %v1089_v59 = vpop.xlane.xlu0 %1088 }
 0x29e   : > { %v1120_v61 = vsub.f32 %v1026_v5, %v1089_v59 }
 0x29f   : > { %v1140_v63 = vmul.f32 1.442695, %v1122_v57 }
 0x2a0   : > { %v1136_v2 = vmul.f32 1.442695, %v1120_v61  ;;  %v1095_v4 = vpop.xlane.xlu1 %1094 }
 0x2a1   : > { %3957 = vpow2.f32 %v1140_v63  ;;  %v1123_v6 = vsub.f32 %v1037_v8, %v1095_v4  ;;  %v1091_v7 = vpop.xlane.xlu0 %1090 }
 0x2a2   : > { %v1121_v14 = vsub.f32 %v1029_v11, %v1091_v7  ;;  %3959 = vpow2.f32 %v1136_v2 }
 0x2a3   : > { %v1142_v16 = vmul.f32 1.442695, %v1123_v6 }
 0x2a4   : > { %v1138_v17 = vmul.f32 1.442695, %v1121_v14 }
 0x2a5   : > { %3961 = vpow2.f32 %v1142_v16  ;;  %v1101_v8 = vpop.xlane.xlu0 %1100 }
 0x2a6   : > { %3963 = vpow2.f32 %v1138_v17  ;;  %v1103_v31 = vpop.xlane.xlu1 %1102  ;;  %v1126_v44 = vsub.f32 %v4635_v15, %v1101_v8 }
 0x2a7   : > { %v1127_v61 = vsub.f32 %v4638_v18, %v1103_v31 }
 0x2a8   : > { %v1148_v54 = vmul.f32 1.442695, %v1126_v44 }
 0x2a9   : > { %v1097_v11 = vpop.xlane.xlu0 %1096  ;;  %v1150_v7 = vmul.f32 1.442695, %v1127_v61 }
 0x2aa   : > { %v1099_v38 = vpop.xlane.xlu1 %1098  ;;  %v1124_v45 = vsub.f32 %v4641_v21, %v1097_v11  ;;  %3965 = vpow2.f32 %v1148_v54 }
 0x2ab   : > { %v4688_v19 = vpop.eup %3957  ;;  %v1125_v57 = vsub.f32 %v4646_v24, %v1099_v38 }
 0x2ac   : > { %1172 = vadd.xlane.f32.xlu0 %v4688_v19  ;;  %v4691_v26 = vpop.eup %3959  ;;  %v1144_v63 = vmul.f32 1.442695, %v1124_v45 }
 0x2ad   : > { %v1109_v30 = vpop.xlane.xlu0 %1108  ;;  %v1146_v2 = vmul.f32 1.442695, %v1125_v57 }
 0x2ae   : > { %v1111_v59 = vpop.xlane.xlu1 %1110  ;;  %3967 = vpow2.f32 %v1144_v63  ;;  %v1130_v14 = vsub.f32 %v4650_v29, %v1109_v30 }
 0x2af   : > { %v4693_v3 = vpop.eup %3961  ;;  %3969 = vpow2.f32 %v1146_v2  ;;  %v1131_v29 = vsub.f32 %v4654_v32, %v1111_v59 }
 0x2b0   : > { %1174 = vadd.xlane.f32.xlu1 %v4693_v3  ;;  %1168 = vadd.xlane.f32.xlu0 %v4691_v26  ;;  %v4697_v5 = vpop.eup %3963  ;;  %3971 = vpow2.f32 %v1150_v7  ;;  %v1156_v24 = vmul.f32 1.442695, %v1130_v14 }
 0x2b1   : > { %v1105_v33 = vpop.xlane.xlu0 %1104 }
 0x2b2   : > { %v1107_v15 = vpop.xlane.xlu1 %1106  ;;  %v1128_v17 = vsub.f32 %v4657_v34, %v1105_v33  ;;  %v1158_v33 = vmul.f32 1.442695, %v1131_v29 }
 0x2b3   : > { %v1129_v38 = vsub.f32 %v4662_v36, %v1107_v15 }
 0x2b4   : > { %1170 = vadd.xlane.f32.xlu1 %v4697_v5  ;;  %v4714_v11 = vpop.eup %3965 }
 0x2b5   : > { %v1117_v46 = vpop.xlane.xlu0 %1116 }
 0x2b6   : > { %v1134_v4 = vsub.f32 %v4666_v42, %v1117_v46  ;;  %v4712_v8 = vpop.permute.xlu1 %1391  ;;  %v1152_v42 = vmul.f32 1.442695, %v1128_v17 }
 0x2b8   : > { %v1164_v21 = vmul.f32 1.442695, %v1134_v4  ;;  %v4718_v30 = vpop.eup %3967 }
 0x2b9   : > { %v1113_v6 = vpop.xlane.xlu0 %1112  ;;  %v4720_v31 = vpop.eup %3969 }
 0x2ba   : > { %v1132_v16 = vsub.f32 %v4671_v47, %v1113_v6  ;;  %3973 = vpow2.f32 %v1164_v21  ;;  %v4726_v45 = vpop.eup %3971 }
 0x2bb   : > { %3975 = vpow2.f32 %v1156_v24 }
 0x2bc   : > { %v1160_v18 = vmul.f32 1.442695, %v1132_v16 }
 0x2bd   : > { %v1390_v6 = vpop.permute.xlu0 %1389 }
 0x2be   : > { %3977 = vpow2.f32 %v1160_v18 }
 0x2bf   : > { %3979 = vpow2.f32 %v1152_v42 }
 0x2c4   : > { %v4728_v46 = vpop.eup %3973 }
 0x2c5   : > { %1395 = vrot.lane.b32.xlu1 %v4461_v23, %s4221_s18  ;;  %v4733_v57 = vpop.eup %3975 }
 0x2c6   : > { %1393 = vrot.lane.b32.xlu0 %v4466_v27, %s4221_s18 }
 0x2c8   : > { %v4735_v59 = vpop.eup %3977 }
 0x2c9   : > { %v4739_v61 = vpop.eup %3979 }
 0x2e5   : > { %1180 = vadd.xlane.f32.xlu0 %v4714_v11 }
 0x2e7   : > { %v1119_v47 = vpop.xlane.xlu1 %1118 }
 0x2e8   : > { %v1135_v34 = vsub.f32 %v4679_v49, %v1119_v47  ;;  %v1154_v49 = vmul.f32 1.442695, %v1129_v38 }
 0x2e9   : > { %1178 = vadd.xlane.f32.xlu0 %v4720_v31  ;;  %1176 = vadd.xlane.f32.xlu1 %v4718_v30 }
 0x2ea   : > { %v1166_v44 = vmul.f32 1.442695, %v1135_v34 }
 0x2eb   : > { %v1115_v32 = vpop.xlane.xlu1 %1114 }
 0x2ec   : > { %3981 = vpow2.f32 %v1166_v44  ;;  %v1133_v54 = vsub.f32 %v4682_v50, %v1115_v32  ;;  %v1426_v44 = vsel %vm942_vm1, %v4624_v20, 0 }
 0x2ed   : > { %1182 = vadd.xlane.f32.xlu1 %v4726_v45  ;;  %1196 = vadd.xlane.f32.xlu0 %v4728_v46  ;;  %3983 = vpow2.f32 %v1158_v33 }
 0x2ee   : > { %3985 = vpow2.f32 %v1154_v49  ;;  %v1162_v36 = vmul.f32 1.442695, %v1133_v54 }
 0x2f0   : > { %3987 = vpow2.f32 %v1162_v36 }
 0x2f1   : > { %1188 = vadd.xlane.f32.xlu1 %v4733_v57  ;;  %1192 = vadd.xlane.f32.xlu0 %v4735_v59 }
 0x2f5   : > { %1184 = vadd.xlane.f32.xlu1 %v4739_v61 }
 0x2f6   : > { %v4742_v63 = vpop.eup %3981 }
 0x2f7   : > { %1198 = vadd.xlane.f32.xlu0 %v4742_v63  ;;  %v4745_v50 = vpop.eup %3983 }
 0x2f8   : > { %v4748_v2 = vpop.eup %3985 }
 0x2f9   : > { %1190 = vadd.xlane.f32.xlu1 %v4745_v50 }
 0x2fa   : > { %v4751_v4 = vpop.eup %3987 }
 0x2fd   : > { %1186 = vadd.xlane.f32.xlu1 %v4748_v2 }
 0x301   : > { %1194 = vadd.xlane.f32.xlu1 %v4751_v4 }
 0x30d   : > { %1397 = vrot.lane.b32.xlu0 %v4494_v56, %s4221_s18 }
 0x311   : > { %1361 = vrot.lane.b32.xlu0 %v4419_v51, %s4221_s18 }
 0x312   : > { %1399 = vrot.lane.b32.xlu1 %v4489_v52, %s4221_s18 }
 0x315   : > { %1365 = vrot.lane.b32.xlu0 %v4449_v12, %s4221_s18 }
 0x316   : > { %1363 = vrot.lane.b32.xlu1 %v4414_v48, %s4221_s18 }
 0x319   : > { %1369 = vrot.lane.b32.xlu0 %v4477_v41, %s4221_s18 }
 0x31a   : > { %1367 = vrot.lane.b32.xlu1 %v4444_v9, %s4221_s18 }
 0x31d   : > { %1373 = vrot.lane.b32.xlu0 %v4508_v1, %s4221_s18 }
 0x31e   : > { %1371 = vrot.lane.b32.xlu1 %v4472_v37, %s4221_s18 }
 0x321   : > { %1706 = vrot.lane.b32.xlu0 %v4532_v13, %s4221_s18 }
 0x322   : > { %1375 = vrot.lane.b32.xlu1 %v4499_v62, %s4221_s18 }
 0x325   : > { %1710 = vrot.lane.b32.xlu0 %v4556_v28, %s4221_s18 }
 0x326   : > { %1708 = vrot.lane.b32.xlu1 %v4526_v10, %s4221_s18 }
 0x329   : > { %1714 = vrot.lane.b32.xlu0 %v4580_v43, %s4221_s18 }
 0x32a   : > { %1712 = vrot.lane.b32.xlu1 %v4549_v25, %s4221_s18 }
 0x32d   : > { %1718 = vrot.lane.b32.xlu0 %v4604_v58, %s4221_s18 }
 0x32e   : > { %1716 = vrot.lane.b32.xlu1 %v4573_v40, %s4221_s18 }
 0x331   : > { %1924 = vrot.lane.b32.xlu0 %v4402_v39, %s4223_s12 }
 0x332   : > { %1720 = vrot.lane.b32.xlu1 %v4597_v55, %s4221_s18 }
 0x336   : > { %1926 = vrot.lane.b32.xlu1 %v4397_v35, %s4223_s12 }
 0x339   : > { %v1173_v7 = vpop.xlane.xlu0 %1172 }
 0x33d   : > { %v1175_v14 = vpop.xlane.xlu1 %1174  ;;  %v1169_v15 = vpop.xlane.xlu0 %1168 }
 0x33e   : > { %3989 = vrcp.f32 %v1175_v14 }
 0x33f   : > { %3991 = vrcp.f32 %v1169_v15 }
 0x340   : > { %3993 = vrcp.f32 %v1173_v7 }
 0x341   : > { %v1171_v21 = vpop.xlane.xlu1 %1170  ;;  %v1394_v20 = vpop.permute.xlu0 %1393 }
 0x342   : > { %3995 = vrcp.f32 %v1171_v21  ;;  %v1438_v32 = vsel %vm942_vm1, %v1394_v20, 0 }
 0x348   : > { %v3990_v16 = vpop.eup %3989 }
 0x349   : > { %v3992_v24 = vpop.eup %3991  ;;  %v1219_v29 = vmul.f32 %v3990_v16, %v4693_v3  ;;  %v1429_v3 = vsel %vm942_vm1, %v4686_v53, 0 }
 0x34a   : > { %v3994_v17 = vpop.eup %3993  ;;  %v1216_v42 = vmul.f32 %v3992_v24, %v4691_v26  ;;  %v1432_v26 = vsel %vm942_vm1, %v1390_v6, 0 }
 0x34b   : > { %v1218_v34 = vmul.f32 %v3994_v17, %v4688_v19  ;;  %v1435_v19 = vsel %vm942_vm1, %v4712_v8, 0 }
 0x34c   : > { %v3996_v18 = vpop.eup %3995 }
 0x34d   : > { %v1217_v47 = vmul.f32 %v3996_v18, %v4697_v5  ;;  %v1233_v38 = vpack.c.bf16 %v1219_v29, %v1218_v34  ;;  %v1396_v5 = vpop.permute.xlu1 %1395 }
 0x34f   : > { %v1232_v33 = vpack.c.bf16 %v1217_v47, %v1216_v42 }
 0x351   : > { %3658 = vmatprep.mubr.bf16.mxu0 %v1232_v33 }
 0x352   : > { %3659 = vmatmul.mubr.bf16.vlgmr.msra.gmra.mrb[32].mxu0 %v1233_v38 }
 0x353   : > { %3675 = vmatpush3.bf16.xpose.msra.mxu0 %v1426_v44 }
 0x354   : > { %3901 = vmatprep.subr.msk.bf16.mxu0 %vm942_vm1, %v4686_v53 }
 0x35b   : > { %3677 = vmatpush3.bf16.xpose.msra.mxu0 %v1429_v3 }
 0x35c   : > { %3902 = vmatprep.subr.msk.bf16.mxu0 %vm942_vm1, %v1390_v6  ;;  %v1441_v6 = vsel %vm942_vm1, %v1396_v5, 0 }
 0x363   : > { %3679 = vmatpush3.bf16.xpose.msra.mxu0 %v1432_v26 }
 0x364   : > { %3903 = vmatprep.subr.msk.bf16.mxu0 %vm942_vm1, %v4712_v8 }
 0x36b   : > { %3681 = vmatpush3.bf16.xpose.msra.mxu0 %v1435_v19 }
 0x36c   : > { %3904 = vmatprep.subr.msk.bf16.mxu0 %vm942_vm1, %v1394_v20 }
 0x372   : > { %v1181_v53 = vpop.xlane.xlu0 %1180 }
 0x373   : > { %3683 = vmatpush3.bf16.xpose.msra.mxu0 %v1438_v32 }
 0x374   : > { %3905 = vmatprep.subr.msk.bf16.mxu0 %vm942_vm1, %v1396_v5 }
 0x376   : > { %v1177_v49 = vpop.xlane.xlu1 %1176  ;;  %v1179_v54 = vpop.xlane.xlu0 %1178 }
 0x377   : > { %3997 = vrcp.f32 %v1177_v49 }
 0x378   : > { %3999 = vrcp.f32 %v1179_v54 }
 0x379   : > { %4001 = vrcp.f32 %v1181_v53 }
 0x37a   : > { %v1183_v36 = vpop.xlane.xlu1 %1182  ;;  %v1197_v8 = vpop.xlane.xlu0 %1196 }
 0x37b   : > { %4003 = vrcp.f32 %v1183_v36  ;;  %3685 = vmatpush3.bf16.xpose.msra.mxu0 %v1441_v6 }
 0x37e   : > { %v1189_v7 = vpop.xlane.xlu1 %1188  ;;  %v1193_v14 = vpop.xlane.xlu0 %1192 }
 0x381   : > { %v3998_v15 = vpop.eup %3997 }
 0x382   : > { %v4000_v21 = vpop.eup %3999  ;;  %v1185_v16 = vpop.xlane.xlu1 %1184  ;;  %v1220_v24 = vmul.f32 %v3998_v15, %v4718_v30 }
 0x383   : > { %v4002_v17 = vpop.eup %4001  ;;  %v1221_v18 = vmul.f32 %v4000_v21, %v4720_v31 }
 0x384   : > { %v1199_v29 = vpop.xlane.xlu0 %1198  ;;  %v1222_v33 = vmul.f32 %v4002_v17, %v4714_v11 }
 0x385   : > { %v4004_v42 = vpop.eup %4003  ;;  %v1234_v47 = vpack.c.bf16 %v1221_v18, %v1220_v24 }
 0x386   : > { %v1191_v34 = vpop.xlane.xlu1 %1190  ;;  %v1223_v38 = vmul.f32 %v4004_v42, %v4726_v45 }
 0x387   : > { %3662 = vmatprep.mubr.bf16.mxu0 %v1234_v47  ;;  %4005 = vrcp.f32 %v1191_v34 }
 0x388   : > { %v1398_v44 = vpop.permute.xlu0 %1397  ;;  %v1235_v3 = vpack.c.bf16 %v1223_v38, %v1222_v33  ;;  %4007 = vrcp.f32 %v1185_v16 }
 0x389   : > { %3906 = vmatprep.subr.msk.bf16.mxu0 %vm942_vm1, %v1398_v44  ;;  %v1444_v30 = vsel %vm942_vm1, %v1398_v44, 0  ;;  %4009 = vrcp.f32 %v1189_v7 }
 0x38a   : > { %v1187_v26 = vpop.xlane.xlu1 %1186  ;;  %3663 = vmatmul.mubr.bf16.gmra.mrb[36].mxu0 %v1235_v3 }
 0x38b   : > { %4011 = vrcp.f32 %v1187_v26  ;;  %3687 = vmatpush3.bf16.xpose.msra.mxu0 %v1444_v30 }
 0x38c   : > { %v1362_v31 = vpop.permute.xlu0 %1361  ;;  %4013 = vrcp.f32 %v1193_v14 }
 0x38e   : > { %v1195_v19 = vpop.xlane.xlu1 %1194 }
 0x38f   : > { %4015 = vrcp.f32 %v1195_v19 }
 0x390   : > { %4017 = vrcp.f32 %v1199_v29  ;;  %v1366_v11 = vpop.permute.xlu0 %1365 }
 0x391   : > { %v4006_v45 = vpop.eup %4005  ;;  %4019 = vrcp.f32 %v1197_v8 }
 0x392   : > { %v1400_v20 = vpop.permute.xlu1 %1399  ;;  %v4008_v5 = vpop.eup %4007  ;;  %v1227_v36 = vmul.f32 %v4006_v45, %v4745_v50 }
 0x393   : > { %3907 = vmatprep.subr.msk.bf16.mxu0 %vm942_vm1, %v1400_v20  ;;  %v1447_v32 = vsel %vm942_vm1, %v1400_v20, 0  ;;  %v4010_v53 = vpop.eup %4009  ;;  %v1224_v7 = vmul.f32 %v4008_v5, %v4739_v61 }
 0x394   : > { %3689 = vmatpush3.bf16.xpose.msra.mxu0 %v1447_v32  ;;  %v1370_v49 = vpop.permute.xlu0 %1369  ;;  %v1226_v8 = vmul.f32 %v4010_v53, %v4733_v57 }
 0x395   : > { %v4012_v54 = vpop.eup %4011 }
 0x396   : > { %v1364_v6 = vpop.permute.xlu1 %1363  ;;  %v1225_v14 = vmul.f32 %v4012_v54, %v4748_v2  ;;  %v4014_v15 = vpop.eup %4013  ;;  %v1237_v17 = vpack.c.bf16 %v1227_v36, %v1226_v8 }
 0x397   : > { %v1228_v42 = vmul.f32 %v4014_v15, %v4735_v59 }
 0x398   : > { %v1374_v21 = vpop.permute.xlu0 %1373  ;;  %v1236_v16 = vpack.c.bf16 %v1225_v14, %v1224_v7 }
 0x399   : > { %v4016_v24 = vpop.eup %4015 }
 0x39a   : > { %v4018_v18 = vpop.eup %4017  ;;  %v1368_v29 = vpop.permute.xlu1 %1367  ;;  %3666 = vmatprep.mubr.bf16.mxu0 %v1236_v16  ;;  %v1229_v47 = vmul.f32 %v4016_v24, %v4751_v4 }
 0x39b   : > { %3667 = vmatmul.mubr.bf16.gmra.mrb[40].mxu0 %v1237_v17  ;;  %v4020_v50 = vpop.eup %4019  ;;  %v1231_v2 = vmul.f32 %v4018_v18, %v4742_v63 }
 0x39c   : > { %v1707_v34 = vpop.permute.xlu0 %1706  ;;  %v1238_v61 = vpack.c.bf16 %v1229_v47, %v1228_v42  ;;  %v1230_v57 = vmul.f32 %v4020_v50, %v4728_v46 }
 0x39d   : > { %3706 = vmatprep.subr.bf16.mxu1 %v1707_v34 }
 0x39e   : > { %v1372_v33 = vpop.permute.xlu1 %1371  ;;  %3670 = vmatprep.mubr.bf16.mxu0 %v1238_v61  ;;  %3707 = vmatpush3.bf16.msra.mxu1 %v1707_v34  ;;  %v1239_v38 = vpack.c.bf16 %v1231_v2, %v1230_v57 }
 0x3a0   : > { %v1711_v4 = vpop.permute.xlu0 %1710 }
 0x3a2   : > { %v1376_v44 = vpop.permute.xlu1 %1375 }
 0x3a3   : > { %3671 = vmatmul.mubr.bf16.gmra.mrb[44].mxu0 %v1239_v38 }
 0x3a4   : > { %3690 = vmatprep.mubr.msk.bf16.mxu0 %vm942_vm1, %v1362_v31  ;;  %v1715_v63 = vpop.permute.xlu0 %1714 }
 0x3a6   : > { %v1709_v59 = vpop.permute.xlu1 %1708 }
 0x3a7   : > { %3708 = vmatprep.subr.bf16.mxu1 %v1709_v59 }
 0x3a8   : > { %3709 = vmatpush3.bf16.msra.mxu1 %v1709_v59  ;;  %v1719_v30 = vpop.permute.xlu0 %1718 }
 0x3a9   : > { %3710 = vmatprep.subr.bf16.mxu1 %v1711_v4 }
 0x3aa   : > { %v1713_v3 = vpop.permute.xlu1 %1712 }
 0x3ab   : > { %3691 = vmatmul.mubr.msk.bf16.vlgmr.msra.gmra.mrb[48].mxu0 %vm942_vm1, %v1364_v6 }
 0x3ac   : > { %3694 = vmatprep.mubr.msk.bf16.mxu0 %vm942_vm1, %v1366_v11  ;;  %3711 = vmatpush3.bf16.msra.mxu1 %v1711_v4  ;;  %v4837_v31 = vpop.permute.xlu0 %1924 }
 0x3ad   : > { %3712 = vmatprep.subr.bf16.mxu1 %v1713_v3 }
 0x3ae   : > { %v1717_v46 = vpop.permute.xlu1 %1716 }
 0x3b0   : > { %3713 = vmatpush3.bf16.msra.mxu1 %v1713_v3 }
 0x3b1   : > { %3714 = vmatprep.subr.bf16.mxu1 %v1715_v63 }
 0x3b2   : > { %v1721_v26 = vpop.permute.xlu1 %1720 }
 0x3b3   : > { %3695 = vmatmul.mubr.msk.bf16.gmra.mrb[52].mxu0 %vm942_vm1, %v1368_v29 }
 0x3b4   : > { %3698 = vmatprep.mubr.msk.bf16.mxu0 %vm942_vm1, %v1370_v49  ;;  %3715 = vmatpush3.bf16.msra.mxu1 %v1715_v63 }
 0x3b5   : > { %3716 = vmatprep.subr.bf16.mxu1 %v1717_v46 }
 0x3b8   : > { %3717 = vmatpush3.bf16.msra.mxu1 %v1717_v46 }
 0x3b9   : > { %3718 = vmatprep.subr.bf16.mxu1 %v1719_v30 }
 0x3bb   : > { %3699 = vmatmul.mubr.msk.bf16.gmra.mrb[56].mxu0 %vm942_vm1, %v1372_v33 }
 0x3bc   : > { %3702 = vmatprep.mubr.msk.bf16.mxu0 %vm942_vm1, %v1374_v21  ;;  %3719 = vmatpush3.bf16.msra.mxu1 %v1719_v30 }
 0x3bd   : > { %3720 = vmatprep.subr.bf16.mxu1 %v1721_v26 }
 0x3c0   : > { %3721 = vmatpush3.bf16.msra.mxu1 %v1721_v26 }
 0x3c1   : > { %3908 = vmatprep.subr.msk.bf16.mxu1 %vm942_vm1, %v4837_v31 }
 0x3c3   : > { %3703 = vmatmul.mubr.msk.bf16.gmra.mrb[60].mxu0 %vm942_vm1, %v1376_v44 }
 0x425   : > { %v3660_v19 = vpop.f32.mrb[32].mxu0 }
 0x426   : > { %1339 = vst.msk [vmem:[#allocation2 + $0x10] sm:$0xff] %vm942_vm1, %v3660_v19  ;;  %v1274_v11 = vpop.f32.mrb[33].mxu0 }
 0x427   : > { %1337 = vst.msk [vmem:[#allocation2] sm:$0xff] %vm942_vm1, %v1274_v11  ;;  %v3661_v45 = vpop.f32.mrb[34].mxu0 }
 0x428   : > { %1340 = vst.msk [vmem:[#allocation2 + $0x18] sm:$0xff] %vm942_vm1, %v3661_v45  ;;  %v1277_v20 = vpop.f32.mrb[35].mxu0 }
 0x429   : > { %1338 = vst.msk [vmem:[#allocation2 + $0x8] sm:$0xff] %vm942_vm1, %v1277_v20 }
 0x45d   : > { %v3664_v5 = vpop.f32.mrb[36].mxu0 }
 0x45e   : > { %1343 = vst.msk [vmem:[#allocation2 + $0x30] sm:$0xff] %vm942_vm1, %v3664_v5  ;;  %v1290_v32 = vpop.f32.mrb[37].mxu0 }
 0x45f   : > { %1341 = vst.msk [vmem:[#allocation2 + $0x20] sm:$0xff] %vm942_vm1, %v1290_v32  ;;  %v3665_v53 = vpop.f32.mrb[38].mxu0 }
 0x460   : > { %1344 = vst.msk [vmem:[#allocation2 + $0x38] sm:$0xff] %vm942_vm1, %v3665_v53  ;;  %v1293_v49 = vpop.f32.mrb[39].mxu0 }
 0x461   : > { %1342 = vst.msk [vmem:[#allocation2 + $0x28] sm:$0xff] %vm942_vm1, %v1293_v49 }
 0x46e   : > { %v3668_v54 = vpop.f32.mrb[40].mxu0 }
 0x46f   : > { %1347 = vst.msk [vmem:[#allocation2 + $0x50] sm:$0xff] %vm942_vm1, %v3668_v54  ;;  %v1306_v36 = vpop.f32.mrb[41].mxu0 }
 0x470   : > { %1345 = vst.msk [vmem:[#allocation2 + $0x40] sm:$0xff] %vm942_vm1, %v1306_v36  ;;  %v3669_v6 = vpop.f32.mrb[42].mxu0 }
 0x471   : > { %1348 = vst.msk [vmem:[#allocation2 + $0x58] sm:$0xff] %vm942_vm1, %v3669_v6  ;;  %v1309_v7 = vpop.f32.mrb[43].mxu0  ;;  %v4914_v6 = vpop.permute.xlu1 %1926 }
 0x472   : > { %1346 = vst.msk [vmem:[#allocation2 + $0x48] sm:$0xff] %vm942_vm1, %v1309_v7 }
 0x476   : > { %v3672_v14 = vpop.f32.mrb[44].mxu0 }
 0x477   : > { %1351 = vst.msk [vmem:[#allocation2 + $0x70] sm:$0xff] %vm942_vm1, %v3672_v14  ;;  %v1322_v15 = vpop.f32.mrb[45].mxu0 }
 0x478   : > { %1349 = vst.msk [vmem:[#allocation2 + $0x60] sm:$0xff] %vm942_vm1, %v1322_v15  ;;  %v3673_v8 = vpop.f32.mrb[46].mxu0 }
 0x479   : > { %1352 = vst.msk [vmem:[#allocation2 + $0x78] sm:$0xff] %vm942_vm1, %v3673_v8  ;;  %v1325_v21 = vpop.f32.mrb[47].mxu0 }
 0x47a   : > { %1350 = vst.msk [vmem:[#allocation2 + $0x68] sm:$0xff] %vm942_vm1, %v1325_v21 }
 0x47e   : > { %v3692_v16 = vpop.f32.mrb[48].mxu0 }
 0x47f   : > { %v1492_v24 = vadd.f32 %v3692_v16, %v4628_v22  ;;  %v1483_v17 = vpop.f32.mrb[49].mxu0 }
 0x480   : > { %v3693_v18 = vpop.f32.mrb[50].mxu0  ;;  %v1484_v47 = vadd.f32 %v1483_v17, %v4628_v22 }
 0x481   : > { %1550 = vmax.xlane.f32.xlu0 %v1492_v24  ;;  %v1486_v29 = vpop.f32.mrb[51].mxu0  ;;  %v1495_v34 = vadd.f32 %v3693_v18, %v4628_v22 }
 0x482   : > { %v1487_v42 = vadd.f32 %v1486_v29, %v4628_v22 }
 0x484   : > { %1548 = vmax.xlane.f32.xlu1 %v1487_v42 }
 0x485   : > { %1546 = vmax.xlane.f32.xlu0 %v1484_v47 }
 0x486   : > { %v3696_v50 = vpop.f32.mrb[52].mxu0 }
 0x487   : > { %v1499_v61 = vpop.f32.mrb[53].mxu0  ;;  %v4866_v38 = vadd.f32 %v3696_v50, %v4628_v22 }
 0x488   : > { %v3697_v2 = vpop.f32.mrb[54].mxu0  ;;  %v4874_v4 = vadd.f32 %v1499_v61, %v4628_v22 }
 0x489   : > { %v4863_v33 = vadd.f32 %v3697_v2, %v4628_v22  ;;  %1552 = vmax.xlane.f32.xlu0 %v1495_v34  ;;  %v1502_v57 = vpop.f32.mrb[55].mxu0 }
 0x48a   : > { %v4870_v44 = vadd.f32 %v1502_v57, %v4628_v22 }
 0x48b   : > { %1560 = vmax.xlane.f32.xlu1 %v4863_v33 }
 0x48d   : > { %1558 = vmax.xlane.f32.xlu0 %v4866_v38 }
 0x48e   : > { %v3700_v59 = vpop.f32.mrb[56].mxu0 }
 0x48f   : > { %1556 = vmax.xlane.f32.xlu1 %v4870_v44  ;;  %v1515_v3 = vpop.f32.mrb[57].mxu0  ;;  %v4882_v26 = vadd.f32 %v3700_v59, %v4628_v22 }
 0x490   : > { %v3701_v63 = vpop.f32.mrb[58].mxu0  ;;  %v4890_v45 = vadd.f32 %v1515_v3, %v4628_v22 }
 0x491   : > { %v4878_v46 = vadd.f32 %v3701_v63, %v4628_v22  ;;  %1554 = vmax.xlane.f32.xlu0 %v4874_v4  ;;  %v1518_v30 = vpop.f32.mrb[59].mxu0 }
 0x492   : > { %v4886_v19 = vadd.f32 %v1518_v30, %v4628_v22 }
 0x493   : > { %1568 = vmax.xlane.f32.xlu1 %v4878_v46 }
 0x495   : > { %1566 = vmax.xlane.f32.xlu0 %v4882_v26 }
 0x496   : > { %v3704_v11 = vpop.f32.mrb[60].mxu0 }
 0x497   : > { %1564 = vmax.xlane.f32.xlu1 %v4886_v19  ;;  %v1531_v20 = vpop.f32.mrb[61].mxu0  ;;  %v4895_v53 = vadd.f32 %v3704_v11, %v4628_v22 }
 0x498   : > { %v3705_v5 = vpop.f32.mrb[62].mxu0  ;;  %v4899_v49 = vadd.f32 %v1531_v20, %v4628_v22 }
 0x499   : > { %1562 = vmax.xlane.f32.xlu0 %v4890_v45  ;;  %v1534_v32 = vpop.f32.mrb[63].mxu0  ;;  %v4907_v54 = vadd.f32 %v3705_v5, %v4628_v22 }
 0x49a   : > { %v4911_v36 = vadd.f32 %v1534_v32, %v4628_v22 }
 0x49d   : > { %1574 = vmax.xlane.f32.xlu0 %v4895_v53 }
 0x4a1   : > { %1570 = vmax.xlane.f32.xlu0 %v4899_v49 }
 0x4a8   : > { %1930 = vrot.lane.b32.xlu1 %v4433_v60, %s4223_s12 }
 0x4b7   : > { %1928 = vrot.lane.b32.xlu0 %v4438_v0, %s4223_s12 }
 0x4cc   : > { %1576 = vmax.xlane.f32.xlu1 %v4907_v54 }
 0x4d0   : > { %1572 = vmax.xlane.f32.xlu1 %v4911_v36 }
 0x50e   : > { %v1551_v7 = vpop.xlane.xlu0 %1550 }
 0x50f   : > { %v1580_v14 = vsub.f32 %v1492_v24, %v1551_v7 }
 0x511   : > { %v1598_v15 = vmul.f32 1.442695, %v1580_v14  ;;  %v1549_v8 = vpop.xlane.xlu1 %1548 }
 0x512   : > { %v1579_v21 = vsub.f32 %v1487_v42, %v1549_v8  ;;  %v1547_v16 = vpop.xlane.xlu0 %1546 }
 0x513   : > { %4021 = vpow2.f32 %v1598_v15  ;;  %v1578_v17 = vsub.f32 %v1484_v47, %v1547_v16 }
 0x514   : > { %v1596_v18 = vmul.f32 1.442695, %v1579_v21 }
 0x515   : > { %v1594_v29 = vmul.f32 1.442695, %v1578_v17 }
 0x516   : > { %4023 = vpow2.f32 %v1596_v18  ;;  %v1553_v50 = vpop.xlane.xlu0 %1552 }
 0x517   : > { %4025 = vpow2.f32 %v1594_v29  ;;  %v1581_v61 = vsub.f32 %v1495_v34, %v1553_v50 }
 0x518   : > { %v1561_v3 = vpop.xlane.xlu1 %1560 }
 0x519   : > { %v1600_v2 = vmul.f32 1.442695, %v1581_v61  ;;  %v1585_v8 = vsub.f32 %v4863_v33, %v1561_v3 }
 0x51a   : > { %v1559_v47 = vpop.xlane.xlu0 %1558 }
 0x51b   : > { %4027 = vpow2.f32 %v1600_v2  ;;  %v1584_v30 = vsub.f32 %v4866_v38, %v1559_v47  ;;  %v1608_v18 = vmul.f32 1.442695, %v1585_v8 }
 0x51c   : > { %v1557_v11 = vpop.xlane.xlu1 %1556 }
 0x51d   : > { %v4916_v57 = vpop.eup %4021  ;;  %v1606_v5 = vmul.f32 1.442695, %v1584_v30  ;;  %v1583_v7 = vsub.f32 %v4870_v44, %v1557_v11 }
 0x51e   : > { %1630 = vadd.xlane.f32.xlu1 %v4916_v57  ;;  %v1555_v34 = vpop.xlane.xlu0 %1554 }
 0x51f   : > { %v1582_v32 = vsub.f32 %v4874_v4, %v1555_v34  ;;  %4029 = vpow2.f32 %v1606_v5  ;;  %v1604_v16 = vmul.f32 1.442695, %v1583_v7 }
 0x520   : > { %v4919_v59 = vpop.eup %4023  ;;  %v1569_v14 = vpop.xlane.xlu1 %1568 }
 0x521   : > { %v4921_v24 = vpop.eup %4025  ;;  %1628 = vadd.xlane.f32.xlu0 %v4919_v59  ;;  %v1602_v21 = vmul.f32 1.442695, %v1582_v32  ;;  %v1589_v33 = vsub.f32 %v4878_v46, %v1569_v14 }
 0x522   : > { %1626 = vadd.xlane.f32.xlu1 %v4921_v24  ;;  %v1567_v63 = vpop.xlane.xlu0 %1566 }
 0x523   : > { %v1588_v17 = vsub.f32 %v4882_v26, %v1567_v63  ;;  %4031 = vpow2.f32 %v1602_v21  ;;  %v1616_v3 = vmul.f32 1.442695, %v1589_v33 }
 0x524   : > { %v1565_v29 = vpop.xlane.xlu1 %1564  ;;  %4033 = vpow2.f32 %v1604_v16 }
 0x525   : > { %v4925_v42 = vpop.eup %4027  ;;  %v1614_v50 = vmul.f32 1.442695, %v1588_v17  ;;  %4035 = vpow2.f32 %v1608_v18 }
 0x526   : > { %1632 = vadd.xlane.f32.xlu1 %v4925_v42  ;;  %v1563_v20 = vpop.xlane.xlu0 %1562 }
 0x527   : > { %v1586_v4 = vsub.f32 %v4890_v45, %v1563_v20  ;;  %4037 = vpow2.f32 %v1614_v50  ;;  %v1587_v45 = vsub.f32 %v4886_v19, %v1565_v29 }
 0x528   : > { %v4943_v26 = vpop.permute.xlu1 %1930 }
 0x529   : > { %v1610_v47 = vmul.f32 1.442695, %v1586_v4  ;;  %v4941_v34 = vpop.eup %4029  ;;  %v1612_v11 = vmul.f32 1.442695, %v1587_v45 }
 0x52a   : > { %v1575_v15 = vpop.xlane.xlu0 %1574 }
 0x52b   : > { %v1592_v38 = vsub.f32 %v4895_v53, %v1575_v15 }
 0x52d   : > { %v1622_v44 = vmul.f32 1.442695, %v1592_v38  ;;  %v4947_v63 = vpop.eup %4031 }
 0x52e   : > { %v1571_v61 = vpop.xlane.xlu0 %1570 }
 0x52f   : > { %v1590_v2 = vsub.f32 %v4899_v49, %v1571_v61  ;;  %4039 = vpow2.f32 %v1622_v44  ;;  %v4949_v49 = vpop.eup %4033 }
 0x530   : > { %4041 = vpow2.f32 %v1610_v47  ;;  %v4954_v5 = vpop.eup %4035 }
 0x531   : > { %v1618_v53 = vmul.f32 1.442695, %v1590_v2  ;;  %v4956_v19 = vpop.eup %4037 }
 0x532   : > { %v1929_v18 = vpop.permute.xlu0 %1928 }
 0x533   : > { %4043 = vpow2.f32 %v1618_v53 }
 0x534   : > { %4045 = vpow2.f32 %v1616_v3 }
 0x537   : > { %1932 = vrot.lane.b32.xlu0 %v4466_v27, %s4223_s12  ;;  %1934 = vrot.lane.b32.xlu1 %v4461_v23, %s4223_s12 }
 0x539   : > { %v4961_v14 = vpop.eup %4039 }
 0x53a   : > { %v4963_v15 = vpop.eup %4041 }
 0x53d   : > { %v4967_v8 = vpop.eup %4043 }
 0x53e   : > { %v4969_v21 = vpop.eup %4045 }
 0x556   : > { %1638 = vadd.xlane.f32.xlu0 %v4941_v34 }
 0x559   : > { %v1577_v30 = vpop.xlane.xlu1 %1576 }
 0x55a   : > { %v1593_v46 = vsub.f32 %v4907_v54, %v1577_v30  ;;  %1634 = vadd.xlane.f32.xlu0 %v4947_v63  ;;  %v1965_v30 = vsel %vm942_vm1, %v4837_v31, 0 }
 0x55b   : > { %1636 = vadd.xlane.f32.xlu1 %v4949_v49 }
 0x55c   : > { %v1624_v20 = vmul.f32 1.442695, %v1593_v46 }
 0x55d   : > { %v1573_v32 = vpop.xlane.xlu1 %1572 }
 0x55e   : > { %4047 = vpow2.f32 %v1624_v20  ;;  %v1591_v7 = vsub.f32 %v4911_v36, %v1573_v32  ;;  %1640 = vadd.xlane.f32.xlu0 %v4954_v5 }
 0x55f   : > { %1646 = vadd.xlane.f32.xlu1 %v4956_v19  ;;  %4049 = vpow2.f32 %v1612_v11 }
 0x560   : > { %v1620_v54 = vmul.f32 1.442695, %v1591_v7 }
 0x562   : > { %1654 = vadd.xlane.f32.xlu0 %v4961_v14  ;;  %4051 = vpow2.f32 %v1620_v54 }
 0x563   : > { %1642 = vadd.xlane.f32.xlu1 %v4963_v15 }
 0x566   : > { %1650 = vadd.xlane.f32.xlu0 %v4967_v8 }
 0x567   : > { %1648 = vadd.xlane.f32.xlu1 %v4969_v21 }
 0x568   : > { %v4973_v36 = vpop.eup %4047 }
 0x569   : > { %v4975_v16 = vpop.eup %4049 }
 0x56a   : > { %1656 = vadd.xlane.f32.xlu0 %v4973_v36 }
 0x56b   : > { %1644 = vadd.xlane.f32.xlu1 %v4975_v16 }
 0x56c   : > { %v4979_v17 = vpop.eup %4051 }
 0x56f   : > { %1652 = vadd.xlane.f32.xlu1 %v4979_v17 }
 0x580   : > { %1938 = vrot.lane.b32.xlu1 %v4489_v52, %s4223_s12  ;;  %1936 = vrot.lane.b32.xlu0 %v4494_v56, %s4223_s12 }
 0x584   : > { %1910 = vrot.lane.b32.xlu1 %v4414_v48, %s4223_s12  ;;  %1908 = vrot.lane.b32.xlu0 %v4419_v51, %s4223_s12 }
 0x588   : > { %1914 = vrot.lane.b32.xlu1 %v4444_v9, %s4223_s12  ;;  %1912 = vrot.lane.b32.xlu0 %v4449_v12, %s4223_s12 }
 0x58c   : > { %1918 = vrot.lane.b32.xlu1 %v4472_v37, %s4223_s12  ;;  %1916 = vrot.lane.b32.xlu0 %v4477_v41, %s4223_s12 }
 0x590   : > { %1922 = vrot.lane.b32.xlu1 %v4499_v62, %s4223_s12  ;;  %1920 = vrot.lane.b32.xlu0 %v4508_v1, %s4223_s12 }
 0x594   : > { %2239 = vrot.lane.b32.xlu1 %v4526_v10, %s4223_s12  ;;  %2237 = vrot.lane.b32.xlu0 %v4532_v13, %s4223_s12 }
 0x598   : > { %2243 = vrot.lane.b32.xlu1 %v4549_v25, %s4223_s12  ;;  %2241 = vrot.lane.b32.xlu0 %v4556_v28, %s4223_s12 }
 0x59c   : > { %2247 = vrot.lane.b32.xlu1 %v4573_v40, %s4223_s12  ;;  %2245 = vrot.lane.b32.xlu0 %v4580_v43, %s4223_s12 }
 0x5a0   : > { %2251 = vrot.lane.b32.xlu1 %v4597_v55, %s4223_s12  ;;  %2249 = vrot.lane.b32.xlu0 %v4604_v58, %s4223_s12 }
 0x5a4   : > { %2457 = vrot.lane.b32.xlu1 %v4397_v35, %s4224_s13  ;;  %2455 = vrot.lane.b32.xlu0 %v4402_v39, %s4224_s13 }
 0x5ab   : > { %v1631_v29 = vpop.xlane.xlu1 %1630 }
 0x5ae   : > { %v1629_v38 = vpop.xlane.xlu0 %1628 }
 0x5af   : > { %4053 = vrcp.f32 %v1629_v38  ;;  %v1627_v50 = vpop.xlane.xlu1 %1626 }
 0x5b0   : > { %4055 = vrcp.f32 %v1627_v50 }
 0x5b1   : > { %4057 = vrcp.f32 %v1631_v29 }
 0x5b2   : > { %v1933_v31 = vpop.permute.xlu0 %1932 }
 0x5b3   : > { %v1633_v4 = vpop.xlane.xlu1 %1632 }
 0x5b4   : > { %4059 = vrcp.f32 %v1633_v4 }
 0x5b9   : > { %v4054_v61 = vpop.eup %4053 }
 0x5ba   : > { %v4056_v44 = vpop.eup %4055  ;;  %v1675_v2 = vmul.f32 %v4054_v61, %v4919_v59  ;;  %v1968_v59 = vsel %vm942_vm1, %v4914_v6, 0 }
 0x5bb   : > { %v1674_v33 = vmul.f32 %v4056_v44, %v4921_v24  ;;  %v4058_v47 = vpop.eup %4057  ;;  %v1974_v24 = vsel %vm942_vm1, %v4943_v26, 0 }
 0x5bc   : > { %v1676_v39 = vmul.f32 %v4058_v47, %v4916_v57  ;;  %v1971_v57 = vsel %vm942_vm1, %v1929_v18, 0 }
 0x5bd   : > { %v1690_v35 = vpack.c.bf16 %v1675_v2, %v1674_v33 }
 0x5be   : > { %v4060_v53 = vpop.eup %4059 }
 0x5bf   : > { %v1677_v3 = vmul.f32 %v4060_v53, %v4925_v42  ;;  %3722 = vmatprep.mubr.bf16.mxu1 %v1690_v35  ;;  %v1977_v42 = vsel %vm942_vm1, %v1933_v31, 0 }
 0x5c1   : > { %v1691_v45 = vpack.c.bf16 %v1677_v3, %v1676_v39 }
 0x5c3   : > { %3723 = vmatmul.mubr.bf16.vlgmr.msra.gmra.mrb[32].mxu1 %v1691_v45 }
 0x5c4   : > { %3739 = vmatpush3.bf16.xpose.msra.mxu1 %v1965_v30 }
 0x5c5   : > { %3909 = vmatprep.subr.msk.bf16.mxu1 %vm942_vm1, %v4914_v6  ;;  %v1935_v6 = vpop.permute.xlu1 %1934 }
 0x5c6   : > { %v1980_v32 = vsel %vm942_vm1, %v1935_v6, 0 }
 0x5cc   : > { %3741 = vmatpush3.bf16.xpose.msra.mxu1 %v1968_v59 }
 0x5cd   : > { %3910 = vmatprep.subr.msk.bf16.mxu1 %vm942_vm1, %v1929_v18 }
 0x5d4   : > { %3743 = vmatpush3.bf16.xpose.msra.mxu1 %v1971_v57 }
 0x5d5   : > { %3911 = vmatprep.subr.msk.bf16.mxu1 %vm942_vm1, %v4943_v26 }
 0x5dc   : > { %3745 = vmatpush3.bf16.xpose.msra.mxu1 %v1974_v24 }
 0x5dd   : > { %3912 = vmatprep.subr.msk.bf16.mxu1 %vm942_vm1, %v1933_v31 }
 0x5e3   : > { %v1639_v46 = vpop.xlane.xlu0 %1638 }
 0x5e4   : > { %3747 = vmatpush3.bf16.xpose.msra.mxu1 %v1977_v42 }
 0x5e5   : > { %3913 = vmatprep.subr.msk.bf16.mxu1 %vm942_vm1, %v1935_v6 }
 0x5e7   : > { %v1635_v11 = vpop.xlane.xlu0 %1634 }
 0x5e8   : > { %4061 = vrcp.f32 %v1635_v11  ;;  %v1637_v20 = vpop.xlane.xlu1 %1636 }
 0x5e9   : > { %4063 = vrcp.f32 %v1637_v20 }
 0x5ea   : > { %4065 = vrcp.f32 %v1639_v46 }
 0x5eb   : > { %v1641_v7 = vpop.xlane.xlu0 %1640 }
 0x5ec   : > { %3749 = vmatpush3.bf16.xpose.msra.mxu1 %v1980_v32  ;;  %4067 = vrcp.f32 %v1641_v7  ;;  %v1647_v26 = vpop.xlane.xlu1 %1646 }
 0x5ef   : > { %v1655_v54 = vpop.xlane.xlu0 %1654 }
 0x5f0   : > { %v1643_v18 = vpop.xlane.xlu1 %1642 }
 0x5f2   : > { %v4062_v29 = vpop.eup %4061 }
 0x5f3   : > { %v4064_v38 = vpop.eup %4063  ;;  %v1651_v50 = vpop.xlane.xlu0 %1650  ;;  %v1678_v4 = vmul.f32 %v4062_v29, %v4947_v63 }
 0x5f4   : > { %v4066_v61 = vpop.eup %4065  ;;  %v1649_v44 = vpop.xlane.xlu1 %1648  ;;  %v1679_v2 = vmul.f32 %v4064_v38, %v4949_v49 }
 0x5f5   : > { %4069 = vrcp.f32 %v1649_v44  ;;  %v1680_v53 = vmul.f32 %v4066_v61, %v4941_v34 }
 0x5f6   : > { %v4068_v33 = vpop.eup %4067  ;;  %v1692_v47 = vpack.c.bf16 %v1679_v2, %v1678_v4  ;;  %4071 = vrcp.f32 %v1643_v18 }
 0x5f7   : > { %v1657_v35 = vpop.xlane.xlu0 %1656  ;;  %v1681_v39 = vmul.f32 %v4068_v33, %v4954_v5  ;;  %4073 = vrcp.f32 %v1647_v26 }
 0x5f8   : > { %v1645_v3 = vpop.xlane.xlu1 %1644  ;;  %3726 = vmatprep.mubr.bf16.mxu1 %v1692_v47 }
 0x5f9   : > { %4075 = vrcp.f32 %v1645_v3  ;;  %v1693_v45 = vpack.c.bf16 %v1681_v39, %v1680_v53 }
 0x5fa   : > { %4077 = vrcp.f32 %v1651_v50 }
 0x5fb   : > { %3727 = vmatmul.mubr.bf16.gmra.mrb[36].mxu1 %v1693_v45  ;;  %v1937_v63 = vpop.permute.xlu0 %1936 }
 0x5fc   : > { %v1653_v30 = vpop.xlane.xlu1 %1652  ;;  %3914 = vmatprep.subr.msk.bf16.mxu1 %vm942_vm1, %v1937_v63  ;;  %v1983_v49 = vsel %vm942_vm1, %v1937_v63, 0 }
 0x5fd   : > { %4079 = vrcp.f32 %v1653_v30  ;;  %3751 = vmatpush3.bf16.xpose.msra.mxu1 %v1983_v49 }
 0x5fe   : > { %4081 = vrcp.f32 %v1657_v35 }
 0x5ff   : > { %v1909_v59 = vpop.permute.xlu0 %1908  ;;  %v4070_v34 = vpop.eup %4069  ;;  %4083 = vrcp.f32 %v1655_v54 }
 0x600   : > { %v1939_v5 = vpop.permute.xlu1 %1938  ;;  %v4072_v57 = vpop.eup %4071  ;;  %v1685_v46 = vmul.f32 %v4070_v34, %v4969_v21 }
 0x601   : > { %3915 = vmatprep.subr.msk.bf16.mxu1 %vm942_vm1, %v1939_v5  ;;  %v4074_v24 = vpop.eup %4073  ;;  %v1986_v11 = vsel %vm942_vm1, %v1939_v5, 0  ;;  %v1682_v20 = vmul.f32 %v4072_v57, %v4963_v15 }
 0x602   : > { %v1684_v26 = vmul.f32 %v4074_v24, %v4956_v19 }
 0x603   : > { %v4076_v31 = vpop.eup %4075  ;;  %v1913_v42 = vpop.permute.xlu0 %1912 }
 0x604   : > { %v1911_v6 = vpop.permute.xlu1 %1910  ;;  %v1683_v32 = vmul.f32 %v4076_v31, %v4975_v16  ;;  %v4078_v7 = vpop.eup %4077  ;;  %v1695_v38 = vpack.c.bf16 %v1685_v46, %v1684_v26 }
 0x605   : > { %3753 = vmatpush3.bf16.xpose.msra.mxu1 %v1986_v11  ;;  %v1686_v21 = vmul.f32 %v4078_v7, %v4967_v8 }
 0x606   : > { %v1694_v54 = vpack.c.bf16 %v1683_v32, %v1682_v20 }
 0x607   : > { %v4080_v18 = vpop.eup %4079  ;;  %v1917_v29 = vpop.permute.xlu0 %1916 }
 0x608   : > { %v4082_v50 = vpop.eup %4081  ;;  %v1915_v4 = vpop.permute.xlu1 %1914  ;;  %3730 = vmatprep.mubr.bf16.mxu1 %v1694_v54  ;;  %v1687_v61 = vmul.f32 %v4080_v18, %v4979_v17 }
 0x609   : > { %3731 = vmatmul.mubr.bf16.gmra.mrb[40].mxu1 %v1695_v38  ;;  %v4084_v44 = vpop.eup %4083  ;;  %v1689_v16 = vmul.f32 %v4082_v50, %v4973_v36 }
 0x60a   : > { %v1696_v15 = vpack.c.bf16 %v1687_v61, %v1686_v21  ;;  %v1688_v19 = vmul.f32 %v4084_v44, %v4961_v14 }
 0x60b   : > { %v1921_v2 = vpop.permute.xlu0 %1920 }
 0x60c   : > { %v1919_v33 = vpop.permute.xlu1 %1918  ;;  %3734 = vmatprep.mubr.bf16.mxu1 %v1696_v15  ;;  %v1697_v35 = vpack.c.bf16 %v1689_v16, %v1688_v19 }
 0x60f   : > { %v2238_v47 = vpop.permute.xlu0 %2237 }
 0x610   : > { %v1923_v53 = vpop.permute.xlu1 %1922  ;;  %3770 = vmatprep.subr.bf16.mxu0 %v2238_v47 }
 0x611   : > { %3735 = vmatmul.mubr.bf16.gmra.mrb[44].mxu1 %v1697_v35  ;;  %3771 = vmatpush3.bf16.msra.mxu0 %v2238_v47 }
 0x612   : > { %3754 = vmatprep.mubr.msk.bf16.mxu1 %vm942_vm1, %v1909_v59 }
 0x613   : > { %v2242_v17 = vpop.permute.xlu0 %2241 }
 0x614   : > { %v2240_v8 = vpop.permute.xlu1 %2239 }
 0x615   : > { %3772 = vmatprep.subr.bf16.mxu0 %v2240_v8 }
 0x616   : > { %3773 = vmatpush3.bf16.msra.mxu0 %v2240_v8 }
 0x617   : > { %3774 = vmatprep.subr.bf16.mxu0 %v2242_v17  ;;  %v2246_v14 = vpop.permute.xlu0 %2245 }
 0x618   : > { %v2244_v36 = vpop.permute.xlu1 %2243 }
 0x619   : > { %3755 = vmatmul.mubr.msk.bf16.vlgmr.msra.gmra.mrb[48].mxu1 %vm942_vm1, %v1911_v6 }
 0x61a   : > { %3758 = vmatprep.mubr.msk.bf16.mxu1 %vm942_vm1, %v1913_v42  ;;  %3775 = vmatpush3.bf16.msra.mxu0 %v2242_v17 }
 0x61b   : > { %3776 = vmatprep.subr.bf16.mxu0 %v2244_v36  ;;  %v2250_v3 = vpop.permute.xlu0 %2249 }
 0x61c   : > { %v2248_v39 = vpop.permute.xlu1 %2247 }
 0x61e   : > { %3777 = vmatpush3.bf16.msra.mxu0 %v2244_v36 }
 0x61f   : > { %3778 = vmatprep.subr.bf16.mxu0 %v2246_v14  ;;  %v5065_v63 = vpop.permute.xlu0 %2455 }
 0x620   : > { %v2252_v45 = vpop.permute.xlu1 %2251 }
 0x621   : > { %3759 = vmatmul.mubr.msk.bf16.gmra.mrb[52].mxu1 %vm942_vm1, %v1915_v4 }
 0x622   : > { %3762 = vmatprep.mubr.msk.bf16.mxu1 %vm942_vm1, %v1917_v29  ;;  %3779 = vmatpush3.bf16.msra.mxu0 %v2246_v14 }
 0x623   : > { %3780 = vmatprep.subr.bf16.mxu0 %v2248_v39 }
 0x626   : > { %3781 = vmatpush3.bf16.msra.mxu0 %v2248_v39 }
 0x627   : > { %3782 = vmatprep.subr.bf16.mxu0 %v2250_v3 }
 0x629   : > { %3763 = vmatmul.mubr.msk.bf16.gmra.mrb[56].mxu1 %vm942_vm1, %v1919_v33 }
 0x62a   : > { %3766 = vmatprep.mubr.msk.bf16.mxu1 %vm942_vm1, %v1921_v2  ;;  %3783 = vmatpush3.bf16.msra.mxu0 %v2250_v3 }
 0x62b   : > { %3784 = vmatprep.subr.bf16.mxu0 %v2252_v45 }
 0x62e   : > { %3785 = vmatpush3.bf16.msra.mxu0 %v2252_v45 }
 0x62f   : > { %3916 = vmatprep.subr.msk.bf16.mxu0 %vm942_vm1, %v5065_v63 }
 0x631   : > { %3767 = vmatmul.mubr.msk.bf16.gmra.mrb[60].mxu1 %vm942_vm1, %v1923_v53 }
 0x696   : > { %v5070_v30 = vpop.f32.mrb[32].mxu1 }
 0x697   : > { %v5072_v49 = vpop.f32.mrb[33].mxu1 }
 0x698   : > { %5658 = vst [vmem:[#allocation3_spill] sm:$0xff] %v5072_v49  ;;  %v5074_v59 = vpop.f32.mrb[34].mxu1 }
 0x699   : > { %v5076_v34 = vpop.f32.mrb[35].mxu1 }
 0x6ce   : > { %v5078_v5 = vpop.f32.mrb[36].mxu1 }
 0x6cf   : > { %5659 = vst [vmem:[#allocation4_spill] sm:$0xff] %v5078_v5  ;;  %v5080_v57 = vpop.f32.mrb[37].mxu1 }
 0x6d0   : > { %5660 = vst [vmem:[#allocation5_spill] sm:$0xff] %v5080_v57  ;;  %v5082_v24 = vpop.f32.mrb[38].mxu1 }
 0x6d1   : > { %v5084_v31 = vpop.f32.mrb[39].mxu1 }
 0x6dc   : > { %v5086_v42 = vpop.f32.mrb[40].mxu1 }
 0x6dd   : > { %5661 = vst [vmem:[#allocation6_spill] sm:$0xff] %v5086_v42  ;;  %v5088_v46 = vpop.f32.mrb[41].mxu1 }
 0x6de   : > { %5662 = vst [vmem:[#allocation7_spill] sm:$0xff] %v5088_v46  ;;  %v5090_v6 = vpop.f32.mrb[42].mxu1 }
 0x6df   : > { %v5092_v11 = vpop.f32.mrb[43].mxu1 }
 0x6e4   : > { %v5094_v20 = vpop.f32.mrb[44].mxu1 }
 0x6e5   : > { %5663 = vst [vmem:[#allocation8_spill] sm:$0xff] %v5094_v20  ;;  %v5096_v32 = vpop.f32.mrb[45].mxu1 }
 0x6e6   : > { %5664 = vst [vmem:[#allocation9_spill] sm:$0xff] %v5096_v32  ;;  %v5098_v7 = vpop.f32.mrb[46].mxu1 }
 0x6e7   : > { %v5100_v26 = vpop.f32.mrb[47].mxu1 }
 0x6ec   : > { %v3756_v54 = vpop.f32.mrb[48].mxu1 }
 0x6ed   : > { %v2031_v18 = vadd.f32 %v3756_v54, %v4628_v22  ;;  %v2022_v29 = vpop.f32.mrb[49].mxu1 }
 0x6ee   : > { %v3757_v38 = vpop.f32.mrb[50].mxu1  ;;  %v2023_v21 = vadd.f32 %v2022_v29, %v4628_v22 }
 0x6ef   : > { %2089 = vmax.xlane.f32.xlu0 %v2031_v18  ;;  %v2025_v50 = vpop.f32.mrb[51].mxu1  ;;  %v2034_v44 = vadd.f32 %v3757_v38, %v4628_v22 }
 0x6f0   : > { %v2026_v4 = vadd.f32 %v2025_v50, %v4628_v22 }
 0x6f2   : > { %2087 = vmax.xlane.f32.xlu1 %v2026_v4 }
 0x6f3   : > { %2085 = vmax.xlane.f32.xlu0 %v2023_v21 }
 0x6f4   : > { %v3760_v61 = vpop.f32.mrb[52].mxu1 }
 0x6f5   : > { %v2038_v15 = vpop.f32.mrb[53].mxu1  ;;  %v5110_v19 = vadd.f32 %v3760_v61, %v4628_v22 }
 0x6f6   : > { %v3761_v2 = vpop.f32.mrb[54].mxu1  ;;  %v5118_v53 = vadd.f32 %v2038_v15, %v4628_v22 }
 0x6f7   : > { %v5107_v16 = vadd.f32 %v3761_v2, %v4628_v22  ;;  %2091 = vmax.xlane.f32.xlu0 %v2034_v44  ;;  %v2041_v33 = vpop.f32.mrb[55].mxu1 }
 0x6f8   : > { %v5114_v47 = vadd.f32 %v2041_v33, %v4628_v22 }
 0x6f9   : > { %2099 = vmax.xlane.f32.xlu1 %v5107_v16 }
 0x6fb   : > { %2097 = vmax.xlane.f32.xlu0 %v5110_v19 }
 0x6fc   : > { %v3764_v35 = vpop.f32.mrb[56].mxu1 }
 0x6fd   : > { %2095 = vmax.xlane.f32.xlu1 %v5114_v47  ;;  %v2054_v8 = vpop.f32.mrb[57].mxu1  ;;  %v5126_v39 = vadd.f32 %v3764_v35, %v4628_v22  ;;  %v5158_v35 = vpop.permute.xlu1 %2457 }
 0x6fe   : > { %v3765_v17 = vpop.f32.mrb[58].mxu1  ;;  %v5134_v54 = vadd.f32 %v2054_v8, %v4628_v22 }
 0x6ff   : > { %v5122_v36 = vadd.f32 %v3765_v17, %v4628_v22  ;;  %2093 = vmax.xlane.f32.xlu0 %v5118_v53  ;;  %v2057_v14 = vpop.f32.mrb[59].mxu1 }
 0x700   : > { %v5130_v3 = vadd.f32 %v2057_v14, %v4628_v22 }
 0x701   : > { %2107 = vmax.xlane.f32.xlu1 %v5122_v36 }
 0x703   : > { %2105 = vmax.xlane.f32.xlu0 %v5126_v39 }
 0x704   : > { %v3768_v45 = vpop.f32.mrb[60].mxu1 }
 0x705   : > { %2103 = vmax.xlane.f32.xlu1 %v5130_v3  ;;  %v2070_v29 = vpop.f32.mrb[61].mxu1  ;;  %v5139_v61 = vadd.f32 %v3768_v45, %v4628_v22 }
 0x706   : > { %v3769_v38 = vpop.f32.mrb[62].mxu1  ;;  %v5143_v15 = vadd.f32 %v2070_v29, %v4628_v22 }
 0x707   : > { %2101 = vmax.xlane.f32.xlu0 %v5134_v54  ;;  %v2073_v50 = vpop.f32.mrb[63].mxu1  ;;  %v5151_v2 = vadd.f32 %v3769_v38, %v4628_v22 }
 0x708   : > { %v5155_v33 = vadd.f32 %v2073_v50, %v4628_v22 }
 0x70b   : > { %2113 = vmax.xlane.f32.xlu0 %v5139_v61 }
 0x70f   : > { %2109 = vmax.xlane.f32.xlu0 %v5143_v15 }
 0x716   : > { %2461 = vrot.lane.b32.xlu1 %v4433_v60, %s4224_s13 }
 0x725   : > { %2459 = vrot.lane.b32.xlu0 %v4438_v0, %s4224_s13 }
 0x73a   : > { %2115 = vmax.xlane.f32.xlu1 %v5151_v2 }
 0x73e   : > { %2111 = vmax.xlane.f32.xlu1 %v5155_v33 }
 0x77c   : > { %v2090_v8 = vpop.xlane.xlu0 %2089 }
 0x77d   : > { %v2119_v17 = vsub.f32 %v2031_v18, %v2090_v8 }
 0x77f   : > { %v2137_v14 = vmul.f32 1.442695, %v2119_v17  ;;  %v2088_v45 = vpop.xlane.xlu1 %2087 }
 0x780   : > { %v2118_v60 = vsub.f32 %v2026_v4, %v2088_v45  ;;  %v2086_v29 = vpop.xlane.xlu0 %2085 }
 0x781   : > { %4085 = vpow2.f32 %v2137_v14  ;;  %v2117_v0 = vsub.f32 %v2023_v21, %v2086_v29 }
 0x782   : > { %v2135_v20 = vmul.f32 1.442695, %v2118_v60 }
 0x783   : > { %v2133_v38 = vmul.f32 1.442695, %v2117_v0 }
 0x784   : > { %4087 = vpow2.f32 %v2135_v20  ;;  %v2092_v32 = vpop.xlane.xlu0 %2091 }
 0x785   : > { %4089 = vpow2.f32 %v2133_v38  ;;  %v2120_v42 = vsub.f32 %v2034_v44, %v2092_v32 }
 0x786   : > { %v2100_v32 = vpop.xlane.xlu1 %2099 }
 0x787   : > { %v2139_v50 = vmul.f32 1.442695, %v2120_v42  ;;  %v2124_v38 = vsub.f32 %v5107_v16, %v2100_v32 }
 0x788   : > { %v2098_v20 = vpop.xlane.xlu0 %2097 }
 0x789   : > { %4091 = vpow2.f32 %v2139_v50  ;;  %v2123_v44 = vsub.f32 %v5110_v19, %v2098_v20  ;;  %v2147_v57 = vmul.f32 1.442695, %v2124_v38 }
 0x78a   : > { %v2096_v8 = vpop.xlane.xlu1 %2095 }
 0x78b   : > { %v5160_v46 = vpop.eup %4085  ;;  %v2145_v14 = vmul.f32 1.442695, %v2123_v44  ;;  %v2122_v60 = vsub.f32 %v5114_v47, %v2096_v8 }
 0x78c   : > { %2169 = vadd.xlane.f32.xlu1 %v5160_v46  ;;  %v2094_v42 = vpop.xlane.xlu0 %2093 }
 0x78d   : > { %v2121_v45 = vsub.f32 %v5118_v53, %v2094_v42  ;;  %4093 = vpow2.f32 %v2145_v14  ;;  %v2143_v50 = vmul.f32 1.442695, %v2122_v60 }
 0x78e   : > { %v5163_v5 = vpop.eup %4087  ;;  %v2108_v29 = vpop.xlane.xlu1 %2107 }
 0x78f   : > { %v5165_v18 = vpop.eup %4089  ;;  %2167 = vadd.xlane.f32.xlu0 %v5163_v5  ;;  %v2128_v16 = vsub.f32 %v5122_v36, %v2108_v29 }
 0x790   : > { %2165 = vadd.xlane.f32.xlu1 %v5165_v18  ;;  %v2106_v21 = vpop.xlane.xlu0 %2105 }
 0x792   : > { %v2104_v49 = vpop.xlane.xlu1 %2103 }
 0x793   : > { %v5169_v4 = vpop.eup %4091 }
 0x794   : > { %2171 = vadd.xlane.f32.xlu1 %v5169_v4  ;;  %v2102_v17 = vpop.xlane.xlu0 %2101 }
 0x795   : > { %v2125_v53 = vsub.f32 %v5134_v54, %v2102_v17  ;;  %v2126_v54 = vsub.f32 %v5130_v3, %v2104_v49 }
 0x797   : > { %v2149_v32 = vmul.f32 1.442695, %v2125_v53  ;;  %v5185_v8 = vpop.eup %4093  ;;  %v2151_v14 = vmul.f32 1.442695, %v2126_v54 }
 0x798   : > { %v2114_v0 = vpop.xlane.xlu0 %2113 }
 0x799   : > { %v2131_v19 = vsub.f32 %v5139_v61, %v2114_v0 }
 0x79b   : > { %v2161_v47 = vmul.f32 1.442695, %v2131_v19 }
 0x79c   : > { %v2110_v42 = vpop.xlane.xlu0 %2109 }
 0x79d   : > { %v2129_v44 = vsub.f32 %v5143_v15, %v2110_v42  ;;  %v2496_v42 = vsel %vm942_vm1, %v5065_v63, 0 }
 0x79f   : > { %v2157_v61 = vmul.f32 1.442695, %v2129_v44 }
 0x7a5   : > { %2463 = vrot.lane.b32.xlu0 %v4466_v27, %s4224_s13  ;;  %2465 = vrot.lane.b32.xlu1 %v4461_v23, %s4224_s13  ;;  %v2141_v27 = vmul.f32 1.442695, %v2121_v45  ;;  %v2127_v23 = vsub.f32 %v5126_v39, %v2106_v21  ;;  %v5187_v39 = vpop.permute.xlu1 %2461  ;;  %v2155_v21 = vmul.f32 1.442695, %v2128_v16 }
 0x7a7   : > { %4095 = vpow2.f32 %v2141_v27  ;;  %v2153_v20 = vmul.f32 1.442695, %v2127_v23 }
 0x7a8   : > { %4097 = vpow2.f32 %v2143_v50 }
 0x7a9   : > { %4099 = vpow2.f32 %v2147_v57 }
 0x7aa   : > { %4101 = vpow2.f32 %v2153_v20 }
 0x7ab   : > { %4103 = vpow2.f32 %v2161_v47 }
 0x7ac   : > { %4105 = vpow2.f32 %v2149_v32 }
 0x7ad   : > { %4107 = vpow2.f32 %v2157_v61 }
 0x7ae   : > { %4109 = vpow2.f32 %v2155_v21 }
 0x7b1   : > { %v5191_v57 = vpop.eup %4095 }
 0x7b2   : > { %v5193_v15 = vpop.eup %4097 }
 0x7b3   : > { %v5198_v60 = vpop.eup %4099 }
 0x7b4   : > { %v5200_v49 = vpop.eup %4101 }
 0x7b5   : > { %v5205_v0 = vpop.eup %4103 }
 0x7b6   : > { %v5207_v38 = vpop.eup %4105 }
 0x7b7   : > { %v5211_v27 = vpop.eup %4107 }
 0x7b8   : > { %v5213_v50 = vpop.eup %4109 }
 0x7c4   : > { %2177 = vadd.xlane.f32.xlu0 %v5185_v8 }
 0x7c7   : > { %v2116_v17 = vpop.xlane.xlu1 %2115 }
 0x7c8   : > { %v2132_v36 = vsub.f32 %v5151_v2, %v2116_v17  ;;  %2173 = vadd.xlane.f32.xlu0 %v5191_v57 }
 0x7c9   : > { %2175 = vadd.xlane.f32.xlu1 %v5193_v15 }
 0x7ca   : > { %v2163_v45 = vmul.f32 1.442695, %v2132_v36 }
 0x7cb   : > { %v2112_v29 = vpop.xlane.xlu1 %2111 }
 0x7cc   : > { %4111 = vpow2.f32 %v2163_v45  ;;  %v2130_v3 = vsub.f32 %v5155_v33, %v2112_v29  ;;  %2179 = vadd.xlane.f32.xlu0 %v5198_v60 }
 0x7cd   : > { %2185 = vadd.xlane.f32.xlu1 %v5200_v49  ;;  %4113 = vpow2.f32 %v2151_v14 }
 0x7ce   : > { %v2159_v2 = vmul.f32 1.442695, %v2130_v3 }
 0x7d0   : > { %2193 = vadd.xlane.f32.xlu0 %v5205_v0  ;;  %4115 = vpow2.f32 %v2159_v2 }
 0x7d1   : > { %2181 = vadd.xlane.f32.xlu1 %v5207_v38 }
 0x7d4   : > { %2189 = vadd.xlane.f32.xlu0 %v5211_v27 }
 0x7d5   : > { %2187 = vadd.xlane.f32.xlu1 %v5213_v50 }
 0x7d6   : > { %v5217_v33 = vpop.eup %4111 }
 0x7d7   : > { %v5219_v23 = vpop.eup %4113 }
 0x7d8   : > { %2195 = vadd.xlane.f32.xlu0 %v5217_v33 }
 0x7d9   : > { %2183 = vadd.xlane.f32.xlu1 %v5219_v23 }
 0x7da   : > { %v5223_v19 = vpop.eup %4115 }
 0x7dd   : > { %2191 = vadd.xlane.f32.xlu1 %v5223_v19 }
 0x7ee   : > { %2469 = vrot.lane.b32.xlu1 %v4489_v52, %s4224_s13  ;;  %2467 = vrot.lane.b32.xlu0 %v4494_v56, %s4224_s13 }
 0x7f2   : > { %2441 = vrot.lane.b32.xlu1 %v4414_v48, %s4224_s13  ;;  %2439 = vrot.lane.b32.xlu0 %v4419_v51, %s4224_s13  ;;  %v2460_v48 = vpop.permute.xlu0 %2459 }
 0x7f6   : > { %2445 = vrot.lane.b32.xlu1 %v4444_v9, %s4224_s13  ;;  %2443 = vrot.lane.b32.xlu0 %v4449_v12, %s4224_s13 }
 0x7fa   : > { %2449 = vrot.lane.b32.xlu1 %v4472_v37, %s4224_s13  ;;  %2447 = vrot.lane.b32.xlu0 %v4477_v41, %s4224_s13 }
 0x7fe   : > { %2453 = vrot.lane.b32.xlu1 %v4499_v62, %s4224_s13  ;;  %2451 = vrot.lane.b32.xlu0 %v4508_v1, %s4224_s13 }
 0x802   : > { %2770 = vrot.lane.b32.xlu1 %v4526_v10, %s4224_s13  ;;  %2768 = vrot.lane.b32.xlu0 %v4532_v13, %s4224_s13 }
 0x806   : > { %2772 = vrot.lane.b32.xlu0 %v4556_v28, %s4224_s13 }
 0x819   : > { %v2170_v51 = vpop.xlane.xlu1 %2169 }
 0x81c   : > { %v2168_v9 = vpop.xlane.xlu0 %2167 }
 0x81d   : > { %4117 = vrcp.f32 %v2168_v9  ;;  %v2166_v12 = vpop.xlane.xlu1 %2165 }
 0x81e   : > { %4119 = vrcp.f32 %v2166_v12 }
 0x81f   : > { %4121 = vrcp.f32 %v2170_v51 }
 0x820   : > { %v2464_v63 = vpop.permute.xlu0 %2463 }
 0x821   : > { %v2172_v37 = vpop.xlane.xlu1 %2171 }
 0x822   : > { %4123 = vrcp.f32 %v2172_v37 }
 0x827   : > { %v4118_v41 = vpop.eup %4117 }
 0x828   : > { %v4120_v52 = vpop.eup %4119  ;;  %v2214_v56 = vmul.f32 %v4118_v41, %v5163_v5  ;;  %v2499_v5 = vsel %vm942_vm1, %v5158_v35, 0 }
 0x829   : > { %v2213_v62 = vmul.f32 %v4120_v52, %v5165_v18  ;;  %v4122_v1 = vpop.eup %4121  ;;  %v2505_v18 = vsel %vm942_vm1, %v5187_v39, 0 }
 0x82a   : > { %v2215_v28 = vmul.f32 %v4122_v1, %v5160_v46  ;;  %v2502_v46 = vsel %vm942_vm1, %v2460_v48, 0 }
 0x82b   : > { %v2229_v10 = vpack.c.bf16 %v2214_v56, %v2213_v62 }
 0x82c   : > { %v4124_v13 = vpop.eup %4123 }
 0x82d   : > { %v2216_v20 = vmul.f32 %v4124_v13, %v5169_v4  ;;  %3786 = vmatprep.mubr.bf16.mxu0 %v2229_v10  ;;  %v2508_v4 = vsel %vm942_vm1, %v2464_v63, 0 }
 0x82f   : > { %v2230_v53 = vpack.c.bf16 %v2216_v20, %v2215_v28 }
 0x831   : > { %3787 = vmatmul.mubr.bf16.vlgmr.msra.gmra.mrb[64].mxu0 %v2230_v53 }
 0x832   : > { %3803 = vmatpush3.bf16.xpose.msra.mxu0 %v2496_v42 }
 0x833   : > { %3917 = vmatprep.subr.msk.bf16.mxu0 %vm942_vm1, %v5158_v35  ;;  %v2466_v35 = vpop.permute.xlu1 %2465 }
 0x834   : > { %v2511_v32 = vsel %vm942_vm1, %v2466_v35, 0 }
 0x83a   : > { %3805 = vmatpush3.bf16.xpose.msra.mxu0 %v2499_v5 }
 0x83b   : > { %3918 = vmatprep.subr.msk.bf16.mxu0 %vm942_vm1, %v2460_v48 }
 0x842   : > { %3807 = vmatpush3.bf16.xpose.msra.mxu0 %v2502_v46 }
 0x843   : > { %3919 = vmatprep.subr.msk.bf16.mxu0 %vm942_vm1, %v5187_v39 }
 0x84a   : > { %3809 = vmatpush3.bf16.xpose.msra.mxu0 %v2505_v18 }
 0x84b   : > { %3920 = vmatprep.subr.msk.bf16.mxu0 %vm942_vm1, %v2464_v63 }
 0x851   : > { %v2178_v47 = vpop.xlane.xlu0 %2177 }
 0x852   : > { %3811 = vmatpush3.bf16.xpose.msra.mxu0 %v2508_v4 }
 0x853   : > { %3921 = vmatprep.subr.msk.bf16.mxu0 %vm942_vm1, %v2466_v35 }
 0x855   : > { %v2174_v44 = vpop.xlane.xlu0 %2173 }
 0x856   : > { %4125 = vrcp.f32 %v2174_v44  ;;  %v2176_v16 = vpop.xlane.xlu1 %2175 }
 0x857   : > { %4127 = vrcp.f32 %v2176_v16 }
 0x858   : > { %4129 = vrcp.f32 %v2178_v47 }
 0x859   : > { %v2180_v61 = vpop.xlane.xlu0 %2179 }
 0x85a   : > { %3813 = vmatpush3.bf16.xpose.msra.mxu0 %v2511_v32  ;;  %4131 = vrcp.f32 %v2180_v61  ;;  %v2186_v39 = vpop.xlane.xlu1 %2185 }
 0x85d   : > { %v2194_v21 = vpop.xlane.xlu0 %2193 }
 0x85e   : > { %v2182_v54 = vpop.xlane.xlu1 %2181 }
 0x860   : > { %v4126_v17 = vpop.eup %4125 }
 0x861   : > { %v4128_v36 = vpop.eup %4127  ;;  %v2190_v14 = vpop.xlane.xlu0 %2189  ;;  %v2217_v45 = vmul.f32 %v4126_v17, %v5191_v57 }
 0x862   : > { %v4130_v29 = vpop.eup %4129  ;;  %v2188_v3 = vpop.xlane.xlu1 %2187  ;;  %v2218_v2 = vmul.f32 %v4128_v36, %v5193_v15 }
 0x863   : > { %4133 = vrcp.f32 %v2188_v3  ;;  %v2219_v12 = vmul.f32 %v4130_v29, %v5185_v8 }
 0x864   : > { %v4132_v48 = vpop.eup %4131  ;;  %v2231_v51 = vpack.c.bf16 %v2218_v2, %v2217_v45  ;;  %4135 = vrcp.f32 %v2182_v54 }
 0x865   : > { %v2196_v9 = vpop.xlane.xlu0 %2195  ;;  %v2220_v37 = vmul.f32 %v4132_v48, %v5198_v60  ;;  %4137 = vrcp.f32 %v2186_v39 }
 0x866   : > { %v2184_v41 = vpop.xlane.xlu1 %2183  ;;  %3790 = vmatprep.mubr.bf16.mxu0 %v2231_v51 }
 0x867   : > { %4139 = vrcp.f32 %v2184_v41  ;;  %v2232_v52 = vpack.c.bf16 %v2220_v37, %v2219_v12 }
 0x868   : > { %4141 = vrcp.f32 %v2190_v14 }
 0x869   : > { %3791 = vmatmul.mubr.bf16.gmra.mrb[68].mxu0 %v2232_v52  ;;  %v2468_v57 = vpop.permute.xlu0 %2467 }
 0x86a   : > { %v2514_v56 = vsel %vm942_vm1, %v2468_v57, 0  ;;  %v2192_v15 = vpop.xlane.xlu1 %2191  ;;  %3922 = vmatprep.subr.msk.bf16.mxu0 %vm942_vm1, %v2468_v57 }
 0x86b   : > { %4143 = vrcp.f32 %v2192_v15  ;;  %3815 = vmatpush3.bf16.xpose.msra.mxu0 %v2514_v56 }
 0x86c   : > { %4145 = vrcp.f32 %v2196_v9 }
 0x86d   : > { %v2440_v62 = vpop.permute.xlu0 %2439  ;;  %v4134_v8 = vpop.eup %4133  ;;  %4147 = vrcp.f32 %v2194_v21 }
 0x86e   : > { %v2470_v60 = vpop.permute.xlu1 %2469  ;;  %v4136_v1 = vpop.eup %4135  ;;  %v2224_v20 = vmul.f32 %v4134_v8, %v5213_v50 }
 0x86f   : > { %3923 = vmatprep.subr.msk.bf16.mxu0 %vm942_vm1, %v2470_v60  ;;  %v4138_v10 = vpop.eup %4137  ;;  %v2517_v53 = vsel %vm942_vm1, %v2470_v60, 0  ;;  %v2221_v5 = vmul.f32 %v4136_v1, %v5207_v38 }
 0x870   : > { %v2223_v63 = vmul.f32 %v4138_v10, %v5200_v49 }
 0x871   : > { %v4140_v13 = vpop.eup %4139  ;;  %v2444_v28 = vpop.permute.xlu0 %2443 }
 0x872   : > { %v2442_v42 = vpop.permute.xlu1 %2441  ;;  %v2222_v46 = vmul.f32 %v4140_v13, %v5219_v23  ;;  %v4142_v18 = vpop.eup %4141  ;;  %v2234_v44 = vpack.c.bf16 %v2224_v20, %v2223_v63 }
 0x873   : > { %3817 = vmatpush3.bf16.xpose.msra.mxu0 %v2517_v53  ;;  %v2225_v50 = vmul.f32 %v4142_v18, %v5211_v27 }
 0x874   : > { %v2233_v4 = vpack.c.bf16 %v2222_v46, %v2221_v5 }
 0x875   : > { %v4144_v47 = vpop.eup %4143  ;;  %v2448_v35 = vpop.permute.xlu0 %2447 }
 0x876   : > { %v4146_v16 = vpop.eup %4145  ;;  %v2446_v32 = vpop.permute.xlu1 %2445  ;;  %3794 = vmatprep.mubr.bf16.mxu0 %v2233_v4  ;;  %v2226_v61 = vmul.f32 %v4144_v47, %v5223_v19 }
 0x877   : > { %3795 = vmatmul.mubr.bf16.gmra.mrb[72].mxu0 %v2234_v44  ;;  %v4148_v39 = vpop.eup %4147  ;;  %v2228_v23 = vmul.f32 %v4146_v16, %v5217_v33 }
 0x878   : > { %v2235_v38 = vpack.c.bf16 %v2226_v61, %v2225_v50  ;;  %v2227_v49 = vmul.f32 %v4148_v39, %v5205_v0 }
 0x879   : > { %v2452_v21 = vpop.permute.xlu0 %2451 }
 0x87a   : > { %v2450_v54 = vpop.permute.xlu1 %2449  ;;  %3798 = vmatprep.mubr.bf16.mxu0 %v2235_v38  ;;  %v2236_v36 = vpack.c.bf16 %v2228_v23, %v2227_v49 }
 0x87d   : > { %v2769_v17 = vpop.permute.xlu0 %2768 }
 0x87e   : > { %v2454_v14 = vpop.permute.xlu1 %2453  ;;  %3834 = vmatprep.subr.bf16.mxu1 %v2769_v17 }
 0x87f   : > { %3799 = vmatmul.mubr.bf16.gmra.mrb[76].mxu0 %v2236_v36  ;;  %3835 = vmatpush3.bf16.msra.mxu1 %v2769_v17 }
 0x880   : > { %3818 = vmatprep.mubr.msk.bf16.mxu0 %vm942_vm1, %v2440_v62 }
 0x881   : > { %v2773_v19 = vpop.permute.xlu0 %2772 }
 0x882   : > { %v2771_v27 = vpop.permute.xlu1 %2770 }
 0x883   : > { %3836 = vmatprep.subr.bf16.mxu1 %v2771_v27 }
 0x884   : > { %3837 = vmatpush3.bf16.msra.mxu1 %v2771_v27 }
 0x885   : > { %3838 = vmatprep.subr.bf16.mxu1 %v2773_v19 }
 0x887   : > { %3819 = vmatmul.mubr.msk.bf16.vlgmr.msra.gmra.mrb[80].mxu0 %vm942_vm1, %v2442_v42 }
 0x888   : > { %3822 = vmatprep.mubr.msk.bf16.mxu0 %vm942_vm1, %v2444_v28  ;;  %3839 = vmatpush3.bf16.msra.mxu1 %v2773_v19 }
 0x88f   : > { %3823 = vmatmul.mubr.msk.bf16.gmra.mrb[84].mxu0 %vm942_vm1, %v2446_v32 }
 0x890   : > { %3826 = vmatprep.mubr.msk.bf16.mxu0 %vm942_vm1, %v2448_v35 }
 0x897   : > { %3827 = vmatmul.mubr.msk.bf16.gmra.mrb[88].mxu0 %vm942_vm1, %v2450_v54 }
 0x898   : > { %3830 = vmatprep.mubr.msk.bf16.mxu0 %vm942_vm1, %v2452_v21 }
 0x89f   : > { %3831 = vmatmul.mubr.msk.bf16.gmra.mrb[92].mxu0 %vm942_vm1, %v2454_v14 }
 0x904   : > { %v5296_v0 = vpop.f32.mrb[64].mxu0 }
 0x905   : > { %v5298_v33 = vpop.f32.mrb[65].mxu0 }
 0x906   : > { %v5300_v45 = vpop.f32.mrb[66].mxu0 }
 0x907   : > { %v5302_v29 = vpop.f32.mrb[67].mxu0 }
 0x93c   : > { %v5304_v3 = vpop.f32.mrb[68].mxu0 }
 0x93d   : > { %v5306_v2 = vpop.f32.mrb[69].mxu0 }
 0x93e   : > { %v5308_v48 = vpop.f32.mrb[70].mxu0 }
 0x93f   : > { %v5310_v51 = vpop.f32.mrb[71].mxu0 }
 0x94a   : > { %v5312_v9 = vpop.f32.mrb[72].mxu0 }
 0x94b   : > { %v5314_v12 = vpop.f32.mrb[73].mxu0 }
 0x94c   : > { %v5316_v37 = vpop.f32.mrb[74].mxu0 }
 0x94d   : > { %v5318_v41 = vpop.f32.mrb[75].mxu0 }
 0x952   : > { %v5320_v52 = vpop.f32.mrb[76].mxu0 }
 0x953   : > { %v5322_v57 = vpop.f32.mrb[77].mxu0 }
 0x954   : > { %v5324_v56 = vpop.f32.mrb[78].mxu0 }
 0x955   : > { %v5326_v15 = vpop.f32.mrb[79].mxu0 }
 0x95a   : > { %v3820_v62 = vpop.f32.mrb[80].mxu0 }
 0x95b   : > { %v2562_v8 = vadd.f32 %v3820_v62, %v4628_v22  ;;  %v2553_v60 = vpop.f32.mrb[81].mxu0 }
 0x95c   : > { %v3821_v1 = vpop.f32.mrb[82].mxu0  ;;  %v2554_v28 = vadd.f32 %v2553_v60, %v4628_v22 }
 0x95d   : > { %2620 = vmax.xlane.f32.xlu0 %v2562_v8  ;;  %v2556_v10 = vpop.f32.mrb[83].mxu0  ;;  %v2565_v53 = vadd.f32 %v3821_v1, %v4628_v22 }
 0x95e   : > { %v2557_v13 = vadd.f32 %v2556_v10, %v4628_v22 }
 0x960   : > { %2618 = vmax.xlane.f32.xlu1 %v2557_v13 }
 0x961   : > { %2616 = vmax.xlane.f32.xlu0 %v2554_v28 }
 0x962   : > { %v3824_v20 = vpop.f32.mrb[84].mxu0 }
 0x963   : > { %v2569_v42 = vpop.f32.mrb[85].mxu0  ;;  %v2578_v63 = vadd.f32 %v3824_v20, %v4628_v22 }
 0x964   : > { %v3825_v5 = vpop.f32.mrb[86].mxu0  ;;  %v2570_v35 = vadd.f32 %v2569_v42, %v4628_v22 }
 0x965   : > { %v5333_v46 = vadd.f32 %v3825_v5, %v4628_v22  ;;  %2622 = vmax.xlane.f32.xlu0 %v2565_v53  ;;  %v2572_v18 = vpop.f32.mrb[87].mxu0 }
 0x966   : > { %v2573_v4 = vadd.f32 %v2572_v18, %v4628_v22 }
 0x967   : > { %2630 = vmax.xlane.f32.xlu1 %v5333_v46 }
 0x969   : > { %2628 = vmax.xlane.f32.xlu0 %v2578_v63 }
 0x96a   : > { %v3828_v47 = vpop.f32.mrb[88].mxu0 }
 0x96b   : > { %2626 = vmax.xlane.f32.xlu1 %v2573_v4  ;;  %v2585_v44 = vpop.f32.mrb[89].mxu0  ;;  %v2594_v61 = vadd.f32 %v3828_v47, %v4628_v22 }
 0x96c   : > { %v3829_v16 = vpop.f32.mrb[90].mxu0  ;;  %v5348_v21 = vadd.f32 %v2585_v44, %v4628_v22 }
 0x96d   : > { %v5340_v32 = vadd.f32 %v3829_v16, %v4628_v22  ;;  %2624 = vmax.xlane.f32.xlu0 %v2570_v35  ;;  %v2588_v50 = vpop.f32.mrb[91].mxu0 }
 0x96e   : > { %v5345_v39 = vadd.f32 %v2588_v50, %v4628_v22 }
 0x96f   : > { %2638 = vmax.xlane.f32.xlu1 %v5340_v32 }
 0x971   : > { %2636 = vmax.xlane.f32.xlu0 %v2594_v61 }
 0x972   : > { %v3832_v38 = vpop.f32.mrb[92].mxu0 }
 0x973   : > { %2634 = vmax.xlane.f32.xlu1 %v5345_v39  ;;  %v2601_v23 = vpop.f32.mrb[93].mxu0  ;;  %v5353_v17 = vadd.f32 %v3832_v38, %v4628_v22 }
 0x974   : > { %v3833_v54 = vpop.f32.mrb[94].mxu0  ;;  %v5357_v36 = vadd.f32 %v2601_v23, %v4628_v22 }
 0x975   : > { %2632 = vmax.xlane.f32.xlu0 %v5348_v21  ;;  %v2604_v49 = vpop.f32.mrb[95].mxu0  ;;  %v5365_v14 = vadd.f32 %v3833_v54, %v4628_v22 }
 0x976   : > { %v5369_v27 = vadd.f32 %v2604_v49, %v4628_v22 }
 0x979   : > { %2644 = vmax.xlane.f32.xlu0 %v5353_v17 }
 0x97d   : > { %2640 = vmax.xlane.f32.xlu0 %v5357_v36 }
 0x984   : > { %2776 = vrot.lane.b32.xlu1 %v4580_v43, %s4224_s13 }
 0x993   : > { %2774 = vrot.lane.b32.xlu0 %v4549_v25, %s4224_s13 }
 0x9a8   : > { %2646 = vmax.xlane.f32.xlu1 %v5365_v14 }
 0x9ac   : > { %2642 = vmax.xlane.f32.xlu1 %v5369_v27 }
 0x9bd   : > { %2778 = vrot.lane.b32.xlu1 %v4573_v40, %s4224_s13 }
 0x9ea   : > { %v2621_v19 = vpop.xlane.xlu0 %2620 }
 0x9eb   : > { %v2650_v62 = vsub.f32 %v2562_v8, %v2621_v19 }
 0x9ed   : > { %v2668_v60 = vmul.f32 1.442695, %v2650_v62  ;;  %v2619_v1 = vpop.xlane.xlu1 %2618 }
 0x9ee   : > { %v2617_v43 = vpop.xlane.xlu0 %2616  ;;  %v2649_v20 = vsub.f32 %v2557_v13, %v2619_v1 }
 0x9ef   : > { %4149 = vpow2.f32 %v2668_v60  ;;  %v2648_v25 = vsub.f32 %v2554_v28, %v2617_v43 }
 0x9f0   : > { %v2666_v47 = vmul.f32 1.442695, %v2649_v20 }
 0x9f1   : > { %v2664_v10 = vmul.f32 1.442695, %v2648_v25 }
 0x9f2   : > { %v2623_v42 = vpop.xlane.xlu0 %2622 }
 0x9f3   : > { %4151 = vpow2.f32 %v2664_v10  ;;  %v2651_v5 = vsub.f32 %v2565_v53, %v2623_v42 }
 0x9f4   : > { %v2631_v18 = vpop.xlane.xlu1 %2630 }
 0x9f5   : > { %v2670_v22 = vmul.f32 1.442695, %v2651_v5  ;;  %v2655_v13 = vsub.f32 %v5333_v46, %v2631_v18 }
 0x9f6   : > { %v2629_v44 = vpop.xlane.xlu0 %2628 }
 0x9f7   : > { %4153 = vpow2.f32 %v2670_v22  ;;  %v2654_v16 = vsub.f32 %v2578_v63, %v2629_v44  ;;  %v2678_v62 = vmul.f32 1.442695, %v2655_v13 }
 0x9f8   : > { %v2627_v50 = vpop.xlane.xlu1 %2626  ;;  %4155 = vpow2.f32 %v2666_v47 }
 0x9f9   : > { %v5374_v40 = vpop.eup %4149  ;;  %v2676_v8 = vmul.f32 1.442695, %v2654_v16  ;;  %v2653_v38 = vsub.f32 %v2573_v4, %v2627_v50 }
 0x9fa   : > { %2700 = vadd.xlane.f32.xlu1 %v5374_v40  ;;  %v2625_v28 = vpop.xlane.xlu0 %2624 }
 0x9fb   : > { %4157 = vpow2.f32 %v2676_v8  ;;  %v2674_v23 = vmul.f32 1.442695, %v2653_v38  ;;  %v2652_v53 = vsub.f32 %v2570_v35, %v2625_v28 }
 0x9fc   : > { %v2639_v19 = vpop.xlane.xlu1 %2638 }
 0x9fd   : > { %v5378_v54 = vpop.eup %4151  ;;  %v2672_v49 = vmul.f32 1.442695, %v2652_v53  ;;  %4159 = vpow2.f32 %v2674_v23  ;;  %v2659_v43 = vsub.f32 %v5340_v32, %v2639_v19 }
 0x9fe   : > { %2696 = vadd.xlane.f32.xlu1 %v5378_v54  ;;  %v2637_v63 = vpop.xlane.xlu0 %2636 }
 0x9ff   : > { %4161 = vpow2.f32 %v2672_v49  ;;  %v2658_v4 = vsub.f32 %v2594_v61, %v2637_v63  ;;  %v2686_v5 = vmul.f32 1.442695, %v2659_v43 }
 0xa00   : > { %4163 = vpow2.f32 %v2678_v62  ;;  %v2635_v35 = vpop.xlane.xlu1 %2634 }
 0xa01   : > { %v5381_v60 = vpop.eup %4153  ;;  %v2684_v1 = vmul.f32 1.442695, %v2658_v4  ;;  %v2657_v61 = vsub.f32 %v5345_v39, %v2635_v35 }
 0xa02   : > { %2702 = vadd.xlane.f32.xlu1 %v5381_v60  ;;  %v2633_v46 = vpop.xlane.xlu0 %2632  ;;  %v5386_v10 = vpop.eup %4155 }
 0xa03   : > { %v2656_v25 = vsub.f32 %v5348_v21, %v2633_v46  ;;  %4165 = vpow2.f32 %v2684_v1  ;;  %v2682_v44 = vmul.f32 1.442695, %v2657_v61 }
 0xa04   : > { %v2777_v28 = vpop.permute.xlu1 %2776 }
 0xa05   : > { %v5388_v20 = vpop.eup %4157  ;;  %v2680_v42 = vmul.f32 1.442695, %v2656_v25 }
 0xa06   : > { %2698 = vadd.xlane.f32.xlu1 %v5386_v10  ;;  %2708 = vadd.xlane.f32.xlu0 %v5388_v20  ;;  %v2645_v32 = vpop.xlane.xlu0 %2644 }
 0xa07   : > { %4167 = vpow2.f32 %v2680_v42  ;;  %v2662_v18 = vsub.f32 %v5353_v17, %v2645_v32  ;;  %v5394_v22 = vpop.eup %4159 }
 0xa08   : > { %4169 = vpow2.f32 %v2686_v5 }
 0xa09   : > { %v5396_v21 = vpop.eup %4161  ;;  %v2692_v47 = vmul.f32 1.442695, %v2662_v18 }
 0xa0a   : > { %2706 = vadd.xlane.f32.xlu1 %v5394_v22  ;;  %2704 = vadd.xlane.f32.xlu0 %v5396_v21  ;;  %v2641_v39 = vpop.xlane.xlu0 %2640  ;;  %v5401_v50 = vpop.eup %4163 }
 0xa0b   : > { %4171 = vpow2.f32 %v2692_v47  ;;  %v2660_v16 = vsub.f32 %v5357_v36, %v2641_v39 }
 0xa0c   : > { %4173 = vpow2.f32 %v2682_v44 }
 0xa0d   : > { %v2688_v8 = vmul.f32 1.442695, %v2660_v16  ;;  %v5404_v38 = vpop.eup %4165 }
 0xa0e   : > { %2710 = vadd.xlane.f32.xlu0 %v5401_v50  ;;  %v2775_v17 = vpop.permute.xlu0 %2774 }
 0xa0f   : > { %4175 = vpow2.f32 %v2688_v8  ;;  %3840 = vmatprep.subr.bf16.mxu1 %v2775_v17 }
 0xa10   : > { %3841 = vmatpush3.bf16.msra.mxu1 %v2775_v17 }
 0xa11   : > { %v5406_v13 = vpop.eup %4167  ;;  %3842 = vmatprep.subr.bf16.mxu1 %v2777_v28 }
 0xa12   : > { %2716 = vadd.xlane.f32.xlu0 %v5404_v38  ;;  %2712 = vadd.xlane.f32.xlu1 %v5406_v13  ;;  %v5410_v36 = vpop.eup %4169 }
 0xa14   : > { %3843 = vmatpush3.bf16.msra.mxu1 %v2777_v28 }
 0xa15   : > { %v5412_v23 = vpop.eup %4171 }
 0xa16   : > { %2718 = vadd.xlane.f32.xlu0 %v5410_v36  ;;  %2724 = vadd.xlane.f32.xlu1 %v5412_v23  ;;  %v5416_v53 = vpop.eup %4173 }
 0xa19   : > { %v5418_v49 = vpop.eup %4175 }
 0xa1a   : > { %2714 = vadd.xlane.f32.xlu0 %v5416_v53  ;;  %2720 = vadd.xlane.f32.xlu1 %v5418_v49 }
 0xa2b   : > { %2782 = vrot.lane.b32.xlu1 %v4597_v55, %s4224_s13 }
 0xa2f   : > { %1845 = vrot.lane.b32.xlu1 %v5076_v34, %s4225_s14 }
 0xa30   : > { %2780 = vrot.lane.b32.xlu0 %v4604_v58, %s4224_s13 }
 0xa33   : > { %1847 = vrot.lane.b32.xlu1 %v5070_v30, %s4225_s14 }
 0xa35   : > { %v2647_v19 = vpop.xlane.xlu1 %2646 }
 0xa36   : > { %v2663_v58 = vsub.f32 %v5365_v14, %v2647_v19 }
 0xa37   : > { %1849 = vrot.lane.b32.xlu1 %v5074_v59, %s4225_s14 }
 0xa38   : > { %v2694_v59 = vmul.f32 1.442695, %v2663_v58 }
 0xa39   : > { %v2643_v63 = vpop.xlane.xlu1 %2642 }
 0xa3a   : > { %v2661_v55 = vsub.f32 %v5369_v27, %v2643_v63 }
 0xa3b   : > { %2376 = vrot.lane.b32.xlu1 %v5302_v29, %s4226_s15 }
 0xa3c   : > { %v2690_v30 = vmul.f32 1.442695, %v2661_v55 }
 0xa3d   : > { %v2779_v62 = vpop.permute.xlu1 %2778 }
 0xa3e   : > { %3844 = vmatprep.subr.bf16.mxu1 %v2779_v62  ;;  %4177 = vpow2.f32 %v2690_v30 }
 0xa3f   : > { %2380 = vrot.lane.b32.xlu1 %v5300_v45, %s4226_s15  ;;  %3845 = vmatpush3.bf16.msra.mxu1 %v2779_v62  ;;  %4179 = vpow2.f32 %v2694_v59 }
 0xa43   : > { %1853 = vrot.lane.b32.xlu1 %v5084_v31, %s4225_s14  ;;  %v5666_v31 = vld [vmem:[#allocation5_spill] sm:$0xff] }
 0xa47   : > { %1857 = vrot.lane.b32.xlu1 %v5082_v24, %s4225_s14  ;;  %v5665_v24 = vld [vmem:[#allocation3_spill] sm:$0xff] }
 0xa48   : > { %v5444_v34 = vpop.eup %4177 }
 0xa49   : > { %v5449_v45 = vpop.eup %4179 }
 0xa4b   : > { %2384 = vrot.lane.b32.xlu1 %v5310_v51, %s4226_s15  ;;  %v5671_v51 = vld [vmem:[#allocation8_spill] sm:$0xff] }
 0xa4f   : > { %2722 = vadd.xlane.f32.xlu0 %v5444_v34  ;;  %2388 = vrot.lane.b32.xlu1 %v5308_v48, %s4226_s15 }
 0xa53   : > { %2726 = vadd.xlane.f32.xlu0 %v5449_v45  ;;  %1861 = vrot.lane.b32.xlu1 %v5092_v11, %s4225_s14  ;;  %v5668_v11 = vld [vmem:[#allocation7_spill] sm:$0xff] }
 0xa57   : > { %1865 = vrot.lane.b32.xlu1 %v5090_v6, %s4225_s14  ;;  %v5667_v6 = vld [vmem:[#allocation4_spill] sm:$0xff] }
 0xa5b   : > { %2392 = vrot.lane.b32.xlu1 %v5318_v41, %s4226_s15 }
 0xa5f   : > { %2396 = vrot.lane.b32.xlu1 %v5316_v37, %s4226_s15 }
 0xa63   : > { %1869 = vrot.lane.b32.xlu1 %v5100_v26, %s4225_s14  ;;  %v5669_v26 = vld [vmem:[#allocation6_spill] sm:$0xff] }
 0xa67   : > { %1873 = vrot.lane.b32.xlu1 %v5098_v7, %s4225_s14 }
 0xa69   : > { %1843 = vrot.lane.b32.xlu0 %v5665_v24, %s4225_s14 }
 0xa6b   : > { %2400 = vrot.lane.b32.xlu1 %v5326_v15, %s4226_s15 }
 0xa6d   : > { %2374 = vrot.lane.b32.xlu0 %v5298_v33, %s4226_s15 }
 0xa71   : > { %2378 = vrot.lane.b32.xlu0 %v5296_v0, %s4226_s15 }
 0xa75   : > { %1851 = vrot.lane.b32.xlu0 %v5666_v31, %s4225_s14 }
 0xa79   : > { %1855 = vrot.lane.b32.xlu0 %v5667_v6, %s4225_s14 }
 0xa7d   : > { %2382 = vrot.lane.b32.xlu0 %v5306_v2, %s4226_s15 }
 0xa81   : > { %2386 = vrot.lane.b32.xlu0 %v5304_v3, %s4226_s15  ;;  %v5670_v3 = vld [vmem:[#allocation9_spill] sm:$0xff] }
 0xa85   : > { %1859 = vrot.lane.b32.xlu0 %v5668_v11, %s4225_s14 }
 0xa87   : > { %v2701_v7 = vpop.xlane.xlu1 %2700 }
 0xa89   : > { %1863 = vrot.lane.b32.xlu0 %v5669_v26, %s4225_s14 }
 0xa8b   : > { %v2697_v0 = vpop.xlane.xlu1 %2696 }
 0xa8c   : > { %4181 = vrcp.f32 %v2697_v0 }
 0xa8d   : > { %2390 = vrot.lane.b32.xlu0 %v5314_v12, %s4226_s15 }
 0xa8f   : > { %v2703_v33 = vpop.xlane.xlu1 %2702 }
 0xa91   : > { %2394 = vrot.lane.b32.xlu0 %v5312_v9, %s4226_s15 }
 0xa93   : > { %v2699_v29 = vpop.xlane.xlu1 %2698  ;;  %v2709_v2 = vpop.xlane.xlu0 %2708 }
 0xa94   : > { %4183 = vrcp.f32 %v2699_v29 }
 0xa95   : > { %1867 = vrot.lane.b32.xlu0 %v5670_v3, %s4225_s14  ;;  %4185 = vrcp.f32 %v2703_v33 }
 0xa96   : > { %v4182_v15 = vpop.eup %4181 }
 0xa97   : > { %v2705_v48 = vpop.xlane.xlu0 %2704  ;;  %v2707_v37 = vpop.xlane.xlu1 %2706  ;;  %v2744_v27 = vmul.f32 %v4182_v15, %v5378_v54 }
 0xa98   : > { %4187 = vrcp.f32 %v2707_v37 }
 0xa99   : > { %1871 = vrot.lane.b32.xlu0 %v5671_v51, %s4225_s14  ;;  %4189 = vrcp.f32 %v2705_v48 }
 0xa9a   : > { %4191 = vrcp.f32 %v2701_v7 }
 0xa9b   : > { %v2711_v41 = vpop.xlane.xlu0 %2710 }
 0xa9c   : > { %4193 = vrcp.f32 %v2711_v41 }
 0xa9d   : > { %2398 = vrot.lane.b32.xlu0 %v5322_v57, %s4226_s15 }
 0xa9e   : > { %v4184_v12 = vpop.eup %4183 }
 0xa9f   : > { %v2713_v14 = vpop.xlane.xlu1 %2712  ;;  %v2717_v9 = vpop.xlane.xlu0 %2716  ;;  %v2745_v4 = vmul.f32 %v4184_v12, %v5386_v10 }
 0xaa0   : > { %v4186_v57 = vpop.eup %4185 }
 0xaa1   : > { %v2760_v43 = vpack.c.bf16 %v2745_v4, %v2744_v27  ;;  %v2747_v32 = vmul.f32 %v4186_v57, %v5381_v60 }
 0xaa2   : > { %v4188_v42 = vpop.eup %4187 }
 0xaa3   : > { %3850 = vmatprep.mubr.bf16.mxu1 %v2760_v43  ;;  %v5496_v1 = vpop.xlane.xlu1 %2724  ;;  %v2719_v46 = vpop.xlane.xlu0 %2718  ;;  %v2749_v44 = vmul.f32 %v4188_v42, %v5394_v22 }
 0xaa4   : > { %v4190_v10 = vpop.eup %4189 }
 0xaa5   : > { %v4192_v61 = vpop.eup %4191  ;;  %v2748_v47 = vmul.f32 %v4190_v10, %v5396_v21 }
 0xaa6   : > { %v2746_v39 = vmul.f32 %v4192_v61, %v5374_v40  ;;  %v4194_v8 = vpop.eup %4193 }
 0xaa7   : > { %v5498_v35 = vpop.xlane.xlu1 %2720  ;;  %v2715_v25 = vpop.xlane.xlu0 %2714  ;;  %v2762_v28 = vpack.c.bf16 %v2749_v44, %v2748_v47  ;;  %v2751_v22 = vmul.f32 %v4194_v8, %v5401_v50  ;;  %v3956_v44 = vld [vmem:[%s5653_s7 + $0x8] sm:$0xff]  }
 0xaa8   : > { %4195 = vrcp.f32 %v2715_v25  ;;  %v2761_v16 = vpack.c.bf16 %v2747_v32, %v2746_v39  ;;  %v3043_v39 = vsel %vm490_vm0, %v3956_v44, 0 }
 0xaa9   : > { %4197 = vrcp.f32 %v2709_v2 }
 0xaaa   : > { %4199 = vrcp.f32 %v2713_v14 }
 0xaab   : > { %v2783_v54 = vpop.permute.xlu1 %2782  ;;  %v2781_v5 = vpop.permute.xlu0 %2780  ;;  %4201 = vrcp.f32 %v2719_v46 }
 0xaac   : > { %3846 = vmatprep.subr.bf16.mxu1 %v2781_v5  ;;  %4203 = vrcp.f32 %v2717_v9 }
 0xaad   : > { %3847 = vmatpush3.bf16.msra.mxu1 %v2781_v5  ;;  %4205 = vrcp.f32 %v5498_v35 }
 0xaae   : > { %3848 = vmatprep.subr.bf16.mxu1 %v2783_v54 }
 0xaaf   : > { %v1846_v18 = vpop.permute.xlu1 %1845 }
 0xab0   : > { %1893 = vst.msk [vmem:[#allocation2 + $0x8] sm:$0xff] %vm1891_vm3, %v1846_v18  ;;  %v3955_v18 = vld [vmem:[%s5653_s7] sm:$0xff]  }
 0xab1   : > { %3849 = vmatpush3.bf16.msra.mxu1 %v2783_v54  ;;  %v3040_v47 = vsel %vm490_vm0, %v3955_v18, 0 }
 0xab2   : > { %v4196_v19 = vpop.eup %4195  ;;  %3924 = vmatprep.subr.msk.bf16.mxu1 %vm490_vm0, %v3955_v18 }
 0xab3   : > { %v1848_v17 = vpop.permute.xlu1 %1847  ;;  %v4198_v60 = vpop.eup %4197  ;;  %v2753_v40 = vmul.f32 %v4196_v19, %v5416_v53 }
 0xab4   : > { %1894 = vst.msk [vmem:[#allocation2 + $0x10] sm:$0xff] %vm1891_vm3, %v1848_v17  ;;  %3851 = vmatmul.mubr.bf16.vlgmr.msra.gmra.mrb[64].mxu1 %v2761_v16  ;;  %v4200_v21 = vpop.eup %4199  ;;  %v2750_v55 = vmul.f32 %v4198_v60, %v5388_v20 }
 0xab5   : > { %3854 = vmatprep.mubr.bf16.mxu1 %v2762_v28  ;;  %v2752_v62 = vmul.f32 %v4200_v21, %v5406_v13  ;;  %v4202_v30 = vpop.eup %4201 }
 0xab6   : > { %v2763_v58 = vpack.c.bf16 %v2751_v22, %v2750_v55  ;;  %v4204_v31 = vpop.eup %4203  ;;  %v2755_v50 = vmul.f32 %v4202_v30, %v5410_v36 }
 0xab7   : > { %v1850_v63 = vpop.permute.xlu1 %1849  ;;  %v2764_v24 = vpack.c.bf16 %v2753_v40, %v2752_v62  ;;  %v2754_v53 = vmul.f32 %v4204_v31, %v5404_v38  ;;  %v4206_v51 = vpop.eup %4205 }
 0xab8   : > { %1895 = vst.msk [vmem:[#allocation2 + $0x18] sm:$0xff] %vm1891_vm3, %v1850_v63  ;;  %v2756_v12 = vmul.f32 %v4206_v51, %v5418_v49 }
 0xab9   : > { %v2765_v20 = vpack.c.bf16 %v2755_v50, %v2754_v53 }
 0xaba   : > { %3867 = vmatpush3.bf16.xpose.msra.mxu1 %v3040_v47 }
 0xabb   : > { %v2377_v59 = vpop.permute.xlu1 %2376  ;;  %3925 = vmatprep.subr.msk.bf16.mxu1 %vm490_vm0, %v3956_v44 }
 0xabc   : > { %2424 = vst.msk [vmem:[#allocation2 + $0x8] sm:$0xff] %vm2422_vm4, %v2377_v59  ;;  %3855 = vmatmul.mubr.bf16.gmra.mrb[68].mxu1 %v2763_v58 }
 0xabd   : > { %3858 = vmatprep.mubr.bf16.mxu1 %v2764_v24 }
 0xabf   : > { %v2381_v6 = vpop.permute.xlu1 %2380 }
 0xac0   : > { %2426 = vst.msk [vmem:[#allocation2 + $0x18] sm:$0xff] %vm2422_vm4, %v2381_v6 }
 0xac2   : > { %3869 = vmatpush3.bf16.xpose.msra.mxu1 %v3043_v39 }
 0xac3   : > { %v1854_v11 = vpop.permute.xlu1 %1853 }
 0xac4   : > { %1897 = vst.msk [vmem:[#allocation2 + $0x28] sm:$0xff] %vm1891_vm3, %v1854_v11  ;;  %3859 = vmatmul.mubr.bf16.gmra.mrb[72].mxu1 %v2765_v20 }
 0xac7   : > { %v1858_v13 = vpop.permute.xlu1 %1857 }
 0xac8   : > { %1899 = vst.msk [vmem:[#allocation2 + $0x38] sm:$0xff] %vm1891_vm3, %v1858_v13 }
 0xacb   : > { %v2385_v7 = vpop.permute.xlu1 %2384 }
 0xacc   : > { %2428 = vst.msk [vmem:[#allocation2 + $0x28] sm:$0xff] %vm2422_vm4, %v2385_v7 }
 0xacf   : > { %v2389_v26 = vpop.permute.xlu1 %2388 }
 0xad0   : > { %2430 = vst.msk [vmem:[#allocation2 + $0x38] sm:$0xff] %vm2422_vm4, %v2389_v26 }
 0xad3   : > { %v1862_v36 = vpop.permute.xlu1 %1861 }
 0xad4   : > { %1901 = vst.msk [vmem:[#allocation2 + $0x48] sm:$0xff] %vm1891_vm3, %v1862_v36 }
 0xad7   : > { %v1866_v0 = vpop.permute.xlu1 %1865 }
 0xad8   : > { %1903 = vst.msk [vmem:[#allocation2 + $0x58] sm:$0xff] %vm1891_vm3, %v1866_v0 }
 0xadb   : > { %v2393_v38 = vpop.permute.xlu1 %2392 }
 0xadc   : > { %2432 = vst.msk [vmem:[#allocation2 + $0x48] sm:$0xff] %vm2422_vm4, %v2393_v38  ;;  %v2723_v33 = vpop.xlane.xlu0 %2722 }
 0xadd   : > { %4207 = vrcp.f32 %v2723_v33 }
 0xade   : > { %4209 = vrcp.f32 %v5496_v1 }
 0xadf   : > { %v2397_v29 = vpop.permute.xlu1 %2396 }
 0xae0   : > { %2434 = vst.msk [vmem:[#allocation2 + $0x58] sm:$0xff] %vm2422_vm4, %v2397_v29  ;;  %v2727_v2 = vpop.xlane.xlu0 %2726 }
 0xae1   : > { %4211 = vrcp.f32 %v2727_v2 }
 0xae3   : > { %v1870_v3 = vpop.permute.xlu1 %1869 }
 0xae4   : > { %1905 = vst.msk [vmem:[#allocation2 + $0x68] sm:$0xff] %vm1891_vm3, %v1870_v3  ;;  %v1844_v48 = vpop.permute.xlu0 %1843 }
 0xae5   : > { %1892 = vst.msk [vmem:[#allocation2] sm:$0xff] %vm1891_vm3, %v1844_v48 }
 0xae7   : > { %v4208_v37 = vpop.eup %4207  ;;  %v1874_v41 = vpop.permute.xlu1 %1873 }
 0xae8   : > { %1907 = vst.msk [vmem:[#allocation2 + $0x78] sm:$0xff] %vm1891_vm3, %v1874_v41  ;;  %v2375_v15 = vpop.permute.xlu0 %2374  ;;  %v2757_v14 = vmul.f32 %v4208_v37, %v5444_v34  ;;  %v4210_v9 = vpop.eup %4209 }
 0xae9   : > { %2423 = vst.msk [vmem:[#allocation2] sm:$0xff] %vm2422_vm4, %v2375_v15  ;;  %v2758_v46 = vmul.f32 %v4210_v9, %v5412_v23 }
 0xaea   : > { %v2766_v27 = vpack.c.bf16 %v2757_v14, %v2756_v12 }
 0xaeb   : > { %v4212_v4 = vpop.eup %4211  ;;  %v2401_v43 = vpop.permute.xlu1 %2400 }
 0xaec   : > { %2436 = vst.msk [vmem:[#allocation2 + $0x68] sm:$0xff] %vm2422_vm4, %v2401_v43  ;;  %3862 = vmatprep.mubr.bf16.mxu1 %v2766_v27  ;;  %v2379_v1 = vpop.permute.xlu0 %2378  ;;  %v2759_v35 = vmul.f32 %v4212_v4, %v5449_v45 }
 0xaed   : > { %2425 = vst.msk [vmem:[#allocation2 + $0x10] sm:$0xff] %vm2422_vm4, %v2379_v1 }
 0xaee   : > { %v2767_v25 = vpack.c.bf16 %v2759_v35, %v2758_v46 }
 0xaf0   : > { %3863 = vmatmul.mubr.bf16.gmra.mrb[76].mxu1 %v2767_v25  ;;  %v1852_v49 = vpop.permute.xlu0 %1851 }
 0xaf1   : > { %1896 = vst.msk [vmem:[#allocation2 + $0x20] sm:$0xff] %vm1891_vm3, %v1852_v49 }
 0xaf4   : > { %v1856_v34 = vpop.permute.xlu0 %1855 }
 0xaf5   : > { %1898 = vst.msk [vmem:[#allocation2 + $0x30] sm:$0xff] %vm1891_vm3, %v1856_v34 }
 0xaf8   : > { %v2383_v57 = vpop.permute.xlu0 %2382 }
 0xaf9   : > { %2427 = vst.msk [vmem:[#allocation2 + $0x20] sm:$0xff] %vm2422_vm4, %v2383_v57 }
 0xafc   : > { %v2387_v42 = vpop.permute.xlu0 %2386 }
 0xafd   : > { %2429 = vst.msk [vmem:[#allocation2 + $0x30] sm:$0xff] %vm2422_vm4, %v2387_v42 }
 0xb00   : > { %v1860_v54 = vpop.permute.xlu0 %1859 }
 0xb01   : > { %1900 = vst.msk [vmem:[#allocation2 + $0x40] sm:$0xff] %vm1891_vm3, %v1860_v54 }
 0xb04   : > { %v1864_v23 = vpop.permute.xlu0 %1863 }
 0xb05   : > { %1902 = vst.msk [vmem:[#allocation2 + $0x50] sm:$0xff] %vm1891_vm3, %v1864_v23 }
 0xb08   : > { %v2391_v45 = vpop.permute.xlu0 %2390 }
 0xb09   : > { %2431 = vst.msk [vmem:[#allocation2 + $0x40] sm:$0xff] %vm2422_vm4, %v2391_v45 }
 0xb0c   : > { %v2395_v5 = vpop.permute.xlu0 %2394 }
 0xb0d   : > { %2433 = vst.msk [vmem:[#allocation2 + $0x50] sm:$0xff] %vm2422_vm4, %v2395_v5 }
 0xb10   : > { %v1868_v10 = vpop.permute.xlu0 %1867 }
 0xb11   : > { %1904 = vst.msk [vmem:[#allocation2 + $0x60] sm:$0xff] %vm1891_vm3, %v1868_v10 }
 0xb14   : > { %v1872_v61 = vpop.permute.xlu0 %1871 }
 0xb15   : > { %1906 = vst.msk [vmem:[#allocation2 + $0x70] sm:$0xff] %vm1891_vm3, %v1872_v61  ;;  %v3365_v61 = vld [vmem:[%s5654_s8] ss:$0 sm:$0xff] }
 0xb18   : > { %v2399_v32 = vpop.permute.xlu0 %2398 }
 0xb19   : > { %2435 = vst.msk [vmem:[#allocation2 + $0x60] sm:$0xff] %vm2422_vm4, %v2399_v32 }
 0xb87   : > { %v3852_v16 = vpop.f32.mrb[64].mxu1 }
 0xb88   : > { %2909 = vrot.lane.b32.xlu0 %v3852_v16, %s4227_s23  ;;  %v2826_v8 = vpop.f32.mrb[65].mxu1 }
 0xb89   : > { %v3853_v17 = vpop.f32.mrb[66].mxu1 }
 0xb8a   : > { %2911 = vrot.lane.b32.xlu1 %v3853_v17, %s4227_s23  ;;  %v2829_v28 = vpop.f32.mrb[67].mxu1 }
 0xb8c   : > { %2905 = vrot.lane.b32.xlu0 %v2826_v8, %s4227_s23 }
 0xb8e   : > { %2907 = vrot.lane.b32.xlu1 %v2829_v28, %s4227_s23 }
 0xb8f   : > { %v3856_v19 = vpop.f32.mrb[68].mxu1 }
 0xb90   : > { %2917 = vrot.lane.b32.xlu0 %v3856_v19, %s4227_s23  ;;  %v2842_v60 = vpop.f32.mrb[69].mxu1 }
 0xb91   : > { %v3857_v21 = vpop.f32.mrb[70].mxu1 }
 0xb92   : > { %2919 = vrot.lane.b32.xlu1 %v3857_v21, %s4227_s23  ;;  %v2845_v22 = vpop.f32.mrb[71].mxu1 }
 0xb94   : > { %2913 = vrot.lane.b32.xlu0 %v2842_v60, %s4227_s23 }
 0xb96   : > { %2915 = vrot.lane.b32.xlu1 %v2845_v22, %s4227_s23 }
 0xb97   : > { %v3860_v63 = vpop.f32.mrb[72].mxu1 }
 0xb98   : > { %2925 = vrot.lane.b32.xlu0 %v3860_v63, %s4227_s23  ;;  %v2858_v40 = vpop.f32.mrb[73].mxu1 }
 0xb99   : > { %v3861_v55 = vpop.f32.mrb[74].mxu1 }
 0xb9a   : > { %2927 = vrot.lane.b32.xlu1 %v3861_v55, %s4227_s23  ;;  %v2861_v62 = vpop.f32.mrb[75].mxu1 }
 0xb9c   : > { %2921 = vrot.lane.b32.xlu0 %v2858_v40, %s4227_s23 }
 0xb9e   : > { %2923 = vrot.lane.b32.xlu1 %v2861_v62, %s4227_s23 }
 0xba0   : > { %2402 = vrot.lane.b32.xlu0 %v5320_v52, %s4226_s15 }
 0xba2   : > { %2404 = vrot.lane.b32.xlu1 %v5324_v56, %s4226_s15 }
 0xbc3   : > { %v3864_v58 = vpop.f32.mrb[76].mxu1 }
 0xbc4   : > { %v2874_v30 = vpop.f32.mrb[77].mxu1 }
 0xbc5   : > { %2929 = vrot.lane.b32.xlu0 %v2874_v30, %s4227_s23  ;;  %v3865_v59 = vpop.f32.mrb[78].mxu1 }
 0xbc6   : > { %v2877_v24 = vpop.f32.mrb[79].mxu1 }
 0xbc7   : > { %2931 = vrot.lane.b32.xlu1 %v2877_v24, %s4227_s23 }
 0xbc9   : > { %2933 = vrot.lane.b32.xlu0 %v3864_v58, %s4227_s23 }
 0xbcb   : > { %2935 = vrot.lane.b32.xlu1 %v3865_v59, %s4227_s23 }
 0xbfa   : > { %v2910_v31 = vpop.permute.xlu0 %2909 }
 0xbfb   : > { %2956 = vst.msk [vmem:[#allocation2 + $0x10] sm:$0xff] %vm2953_vm5, %v2910_v31 }
 0xbfc   : > { %v2912_v52 = vpop.permute.xlu1 %2911 }
 0xbfd   : > { %2957 = vst.msk [vmem:[#allocation2 + $0x18] sm:$0xff] %vm2953_vm5, %v2912_v52 }
 0xbfe   : > { %v2906_v56 = vpop.permute.xlu0 %2905 }
 0xbff   : > { %2954 = vst.msk [vmem:[#allocation2] sm:$0xff] %vm2953_vm5, %v2906_v56 }
 0xc00   : > { %v2908_v50 = vpop.permute.xlu1 %2907 }
 0xc01   : > { %2955 = vst.msk [vmem:[#allocation2 + $0x8] sm:$0xff] %vm2953_vm5, %v2908_v50 }
 0xc02   : > { %v2918_v6 = vpop.permute.xlu0 %2917  ;;  %v2972_v0 = vld [vmem:[#allocation2 + $0x10] sm:$0xff] }
 0xc03   : > { %2960 = vst.msk [vmem:[#allocation2 + $0x30] sm:$0xff] %vm2953_vm5, %v2918_v6 }
 0xc04   : > { %v2920_v53 = vpop.permute.xlu1 %2919  ;;  %v2973_v11 = vld [vmem:[#allocation2 + $0x18] sm:$0xff] }
 0xc05   : > { %2961 = vst.msk [vmem:[#allocation2 + $0x38] sm:$0xff] %vm2953_vm5, %v2920_v53  ;;  %v2987_v33 = vpack.c.bf16 %v2973_v11, %v2972_v0 }
 0xc06   : > { %v2914_v20 = vpop.permute.xlu0 %2913  ;;  %v2970_v7 = vld [vmem:[#allocation2] sm:$0xff] }
 0xc07   : > { %2958 = vst.msk [vmem:[#allocation2 + $0x20] sm:$0xff] %vm2953_vm5, %v2914_v20 }
 0xc08   : > { %v2916_v13 = vpop.permute.xlu1 %2915  ;;  %v2971_v26 = vld [vmem:[#allocation2 + $0x8] sm:$0xff] }
 0xc09   : > { %2959 = vst.msk [vmem:[#allocation2 + $0x28] sm:$0xff] %vm2953_vm5, %v2916_v13  ;;  %v2986_v36 = vpack.c.bf16 %v2971_v26, %v2970_v7 }
 0xc0a   : > { %v2926_v38 = vpop.permute.xlu0 %2925  ;;  %v2976_v15 = vld [vmem:[#allocation2 + $0x30] sm:$0xff] }
 0xc0b   : > { %2964 = vst.msk [vmem:[#allocation2 + $0x50] sm:$0xff] %vm2953_vm5, %v2926_v38  ;;  %3870 = vmatprep.mubr.msk.bf16.mxu1 %vm490_vm0, %v2986_v36 }
 0xc0c   : > { %v2928_v29 = vpop.permute.xlu1 %2927  ;;  %3871 = vmatmul.mubr.msk.bf16.vlgmr.msra.gmra.mrb[80].mxu1 %vm490_vm0, %v2987_v33  ;;  %v2977_v3 = vld [vmem:[#allocation2 + $0x38] sm:$0xff] }
 0xc0d   : > { %2965 = vst.msk [vmem:[#allocation2 + $0x58] sm:$0xff] %vm2953_vm5, %v2928_v29  ;;  %v2989_v14 = vpack.c.bf16 %v2977_v3, %v2976_v15 }
 0xc0e   : > { %v2922_v2 = vpop.permute.xlu0 %2921  ;;  %v2974_v51 = vld [vmem:[#allocation2 + $0x20] sm:$0xff] }
 0xc0f   : > { %2962 = vst.msk [vmem:[#allocation2 + $0x40] sm:$0xff] %vm2953_vm5, %v2922_v2 }
 0xc10   : > { %v2924_v48 = vpop.permute.xlu1 %2923  ;;  %v2975_v37 = vld [vmem:[#allocation2 + $0x28] sm:$0xff] }
 0xc11   : > { %2963 = vst.msk [vmem:[#allocation2 + $0x48] sm:$0xff] %vm2953_vm5, %v2924_v48  ;;  %v2988_v41 = vpack.c.bf16 %v2975_v37, %v2974_v51 }
 0xc12   : > { %v2403_v12 = vpop.permute.xlu0 %2402  ;;  %v2980_v46 = vld [vmem:[#allocation2 + $0x50] sm:$0xff] }
 0xc13   : > { %2437 = vst.msk [vmem:[#allocation2 + $0x70] sm:$0xff] %vm2422_vm4, %v2403_v12  ;;  %3874 = vmatprep.mubr.msk.bf16.mxu1 %vm490_vm0, %v2988_v41 }
 0xc14   : > { %v2405_v9 = vpop.permute.xlu1 %2404  ;;  %3875 = vmatmul.mubr.msk.bf16.gmra.mrb[84].mxu1 %vm490_vm0, %v2989_v14  ;;  %v2981_v27 = vld [vmem:[#allocation2 + $0x58] sm:$0xff] }
 0xc15   : > { %2438 = vst.msk [vmem:[#allocation2 + $0x78] sm:$0xff] %vm2422_vm4, %v2405_v9  ;;  %v2991_v35 = vpack.c.bf16 %v2981_v27, %v2980_v46 }
 0xc16   : > { %v2978_v4 = vld [vmem:[#allocation2 + $0x40] sm:$0xff] }
 0xc18   : > { %v2979_v43 = vld [vmem:[#allocation2 + $0x48] sm:$0xff] }
 0xc19   : > { %v2990_v1 = vpack.c.bf16 %v2979_v43, %v2978_v4 }
 0xc1b   : > { %3878 = vmatprep.mubr.msk.bf16.mxu1 %vm490_vm0, %v2990_v1 }
 0xc1c   : > { %3879 = vmatmul.mubr.msk.bf16.gmra.mrb[88].mxu1 %vm490_vm0, %v2991_v35 }
 0xc37   : > { %v2930_v25 = vpop.permute.xlu0 %2929 }
 0xc38   : > { %2966 = vst.msk [vmem:[#allocation2 + $0x60] sm:$0xff] %vm2953_vm5, %v2930_v25 }
 0xc39   : > { %v2932_v49 = vpop.permute.xlu1 %2931 }
 0xc3a   : > { %2967 = vst.msk [vmem:[#allocation2 + $0x68] sm:$0xff] %vm2953_vm5, %v2932_v49 }
 0xc3b   : > { %v2934_v34 = vpop.permute.xlu0 %2933 }
 0xc3c   : > { %2968 = vst.msk [vmem:[#allocation2 + $0x70] sm:$0xff] %vm2953_vm5, %v2934_v34 }
 0xc3d   : > { %v2936_v57 = vpop.permute.xlu1 %2935 }
 0xc3e   : > { %2969 = vst.msk [vmem:[#allocation2 + $0x78] sm:$0xff] %vm2953_vm5, %v2936_v57 }
 0xc3f   : > { %v2982_v42 = vld [vmem:[#allocation2 + $0x60] sm:$0xff] }
 0xc41   : > { %v2983_v54 = vld [vmem:[#allocation2 + $0x68] sm:$0xff] }
 0xc42   : > { %v2992_v23 = vpack.c.bf16 %v2983_v54, %v2982_v42 }
 0xc43   : > { %v2984_v45 = vld [vmem:[#allocation2 + $0x70] sm:$0xff] }
 0xc44   : > { %3882 = vmatprep.mubr.msk.bf16.mxu1 %vm490_vm0, %v2992_v23 }
 0xc45   : > { %v2985_v5 = vld [vmem:[#allocation2 + $0x78] sm:$0xff] }
 0xc46   : > { %v2993_v10 = vpack.c.bf16 %v2985_v5, %v2984_v45 }
 0xc48   : > { %3883 = vmatmul.mubr.msk.bf16.gmra.mrb[92].mxu1 %vm490_vm0, %v2993_v10 }
 0xcdf   : > { %v3872_v32 = vpop.f32.mrb[80].mxu1 }
 0xce0   : > { %v3088_v18 = vadd.f32 %v3872_v32, %v3365_v61  ;;  %v3079_v47 = vpop.f32.mrb[81].mxu1 }
 0xce1   : > { %v3080_v44 = vadd.f32 %v3365_v61, %v3079_v47  ;;  %v3873_v39 = vpop.f32.mrb[82].mxu1 }
 0xce2   : > { %3144 = vst.msk [vmem:[%s5609_s27 + $0x10] sm:$0xff] %vm490_vm0, %v3088_v18  ;;  %v3091_v16 = vadd.f32 %v3873_v39, %v3365_v61  ;;  %v3082_v8 = vpop.f32.mrb[83].mxu1 }
 0xce3   : > { %3142 = vst.msk [vmem:[%s5609_s27] sm:$0xff] %vm490_vm0, %v3080_v44  ;;  %v3083_v17 = vadd.f32 %v3365_v61, %v3082_v8 }
 0xce4   : > { %3145 = vst.msk [vmem:[%s5609_s27 + $0x18] sm:$0xff] %vm490_vm0, %v3091_v16 }
 0xce5   : > { %3143 = vst.msk [vmem:[%s5609_s27 + $0x8] sm:$0xff] %vm490_vm0, %v3083_v17 }
 0xce7   : > { %v3876_v28 = vpop.f32.mrb[84].mxu1 }
 0xce8   : > { %v3104_v19 = vadd.f32 %v3876_v28, %v3365_v61  ;;  %v3095_v60 = vpop.f32.mrb[85].mxu1 }
 0xce9   : > { %v3096_v21 = vadd.f32 %v3365_v61, %v3095_v60  ;;  %v3877_v22 = vpop.f32.mrb[86].mxu1 }
 0xcea   : > { %3148 = vst.msk [vmem:[%s5609_s27 + $0x30] sm:$0xff] %vm490_vm0, %v3104_v19  ;;  %v3107_v63 = vadd.f32 %v3877_v22, %v3365_v61  ;;  %v3098_v40 = vpop.f32.mrb[87].mxu1 }
 0xceb   : > { %3146 = vst.msk [vmem:[%s5609_s27 + $0x20] sm:$0xff] %vm490_vm0, %v3096_v21  ;;  %v3099_v55 = vadd.f32 %v3365_v61, %v3098_v40 }
 0xcec   : > { %3149 = vst.msk [vmem:[%s5609_s27 + $0x38] sm:$0xff] %vm490_vm0, %v3107_v63 }
 0xced   : > { %3147 = vst.msk [vmem:[%s5609_s27 + $0x28] sm:$0xff] %vm490_vm0, %v3099_v55 }
 0xcef   : > { %v3880_v62 = vpop.f32.mrb[88].mxu1 }
 0xcf0   : > { %v3120_v58 = vadd.f32 %v3880_v62, %v3365_v61  ;;  %v3111_v30 = vpop.f32.mrb[89].mxu1 }
 0xcf1   : > { %v3112_v59 = vadd.f32 %v3365_v61, %v3111_v30  ;;  %v3881_v24 = vpop.f32.mrb[90].mxu1 }
 0xcf2   : > { %3152 = vst.msk [vmem:[%s5609_s27 + $0x50] sm:$0xff] %vm490_vm0, %v3120_v58  ;;  %v3123_v31 = vadd.f32 %v3881_v24, %v3365_v61  ;;  %v3114_v52 = vpop.f32.mrb[91].mxu1 }
 0xcf3   : > { %3150 = vst.msk [vmem:[%s5609_s27 + $0x40] sm:$0xff] %vm490_vm0, %v3112_v59  ;;  %v3115_v56 = vadd.f32 %v3365_v61, %v3114_v52 }
 0xcf4   : > { %3153 = vst.msk [vmem:[%s5609_s27 + $0x58] sm:$0xff] %vm490_vm0, %v3123_v31 }
 0xcf5   : > { %3151 = vst.msk [vmem:[%s5609_s27 + $0x48] sm:$0xff] %vm490_vm0, %v3115_v56 }
 0xd1b   : > { %v3884_v50 = vpop.f32.mrb[92].mxu1 }
 0xd1c   : > { %v3136_v6 = vadd.f32 %v3884_v50, %v3365_v61  ;;  %v3127_v53 = vpop.f32.mrb[93].mxu1 }
 0xd1d   : > { %v3128_v20 = vadd.f32 %v3365_v61, %v3127_v53  ;;  %v3885_v11 = vpop.f32.mrb[94].mxu1 }
 0xd1e   : > { %3156 = vst.msk [vmem:[%s5609_s27 + $0x70] sm:$0xff] %vm490_vm0, %v3136_v6  ;;  %v3139_v13 = vadd.f32 %v3885_v11, %v3365_v61  ;;  %v3130_v7 = vpop.f32.mrb[95].mxu1 }
 0xd1f   : > { %3154 = vst.msk [vmem:[%s5609_s27 + $0x60] sm:$0xff] %vm490_vm0, %v3128_v20  ;;  %v3131_v26 = vadd.f32 %v3365_v61, %v3130_v7 }
 0xd20   : > { %3157 = vst.msk [vmem:[%s5609_s27 + $0x78] sm:$0xff] %vm490_vm0, %v3139_v13 }
 0xd21   : > { %3155 = vst.msk [vmem:[%s5609_s27 + $0x68] sm:$0xff] %vm490_vm0, %v3131_v26 }
 0xd22 PF: > { %s22_s17 = sadd.s32 1, %s4219_s17  }
 0xd23   : > { %p19_p4 = scmp.ge.s32.totalorder %s22_s17, 4  }
 0xd25   :  { %21 = sbr.rel (!%p19_p4) target bundleno = 1 (0x1), region = 110 }

</bundles_post_ra>
